<compile_context>
chip_gen: v7x
topology: tpu7x:2x2x1
jax: 0.10.0
libtpu: 0.0.40
codegen_flags: <defaults>
</compile_context>

<pallas_src>
import functools
import math

import jax
import jax.numpy as jnp
from jax.experimental import pallas as pl
from jax.experimental.pallas import tpu as pltpu

# ----------------------------- configuration ---------------------------------
HIDDEN = 32            # hidden_size (must be divisible by NUM_HEADS)
NUM_HEADS = 8
HEAD_DIM = HIDDEN // NUM_HEADS
NUM_RBF = 50
RBF_PAD = 64           # NUM_RBF padded to a lane-friendly size (zero weight rows for the padding)
N_LAYERS = 3
EDGE_SIZE = 4
CUTOFF_LOWER = 0.0
CUTOFF_UPPER = 5.0


# ------------------------------ fused kernel ----------------------------------
def _fused_encoder_kernel(
        # inputs
        H_ref, Zf_ref, blk_id_ref, bat_id_ref,
        src_col_ref, dst_col_ref, dst_row_ref,
        eattr_ref, edgeW_ref, edgeb_ref,
        means_ref, betas_ref,
        lng_ref, lnb_ref, wqkv_ref, bqkv_ref, wvec_ref, wo_ref, bo_ref,
        wdkv_ref, bdkv_ref, outg_ref, outb_ref, hm_ref, hmt_ref,
        # outputs
        hblk_ref, brepr_ref, grepr_ref,
        *, use_edge_attr):
    f32 = jnp.float32
    Hd = hm_ref.shape[0]             # hidden
    L = lng_ref.shape[0]             # number of layers
    n_atoms = H_ref.shape[0]
    N = hblk_ref.shape[0]            # n_blocks
    E = src_col_ref.shape[0]
    G = grepr_ref.shape[0]           # n_graphs

    # ---- scatter_mean(H / Z, block_id): in-kernel one-hot built from int32 ids, run on MXU ----
    P_T = (jax.lax.broadcasted_iota(jnp.int32, (N, n_atoms), 0)
           == blk_id_ref[...]).astype(f32)                               # [N, n_atoms]
    inv_counts = 1.0 / jnp.maximum(jnp.sum(P_T, axis=1, keepdims=True), 1.0)
    H_blk = jnp.dot(P_T, H_ref[...], preferred_element_type=f32) * inv_counts      # [N, H]
    Z_blk = jnp.dot(P_T, Zf_ref[...], preferred_element_type=f32) * inv_counts     # [N, 3]
    hblk_ref[...] = H_blk

    # ---- gather / scatter one-hot matrices from edge index vectors (stay in vregs) ----
    iota_EN = jax.lax.broadcasted_iota(jnp.int32, (E, N), 1)
    G_src = (src_col_ref[...] == iota_EN).astype(f32)                    # [E, N] gather at source j
    G_dst = (dst_col_ref[...] == iota_EN).astype(f32)                    # [E, N] gather at target i
    S_t = (jax.lax.broadcasted_iota(jnp.int32, (N, E), 0)
           == dst_row_ref[...]).astype(f32)                              # [N, E] scatter-sum at dst

    # ---- per-edge geometry / filter / RBF (all in registers) ----
    zs = jnp.dot(G_src, Z_blk, preferred_element_type=f32)               # [E, 3]
    zd = jnp.dot(G_dst, Z_blk, preferred_element_type=f32)
    rel = zs - zd
    r2 = jnp.sum(rel * rel, axis=-1, keepdims=True)
    r = jnp.sqrt(r2 + 1e-12)                                             # stable norm
    mask = (r > 0.01).astype(f32)                                        # edge filter of TorchMDEncoder
    unit = rel * (1.0 / jnp.maximum(r, 1e-9))
    cut = 0.5 * (jnp.cos(r * (math.pi / CUTOFF_UPPER)) + 1.0)
    cut = cut * (r < CUTOFF_UPPER).astype(f32)
    alpha = 5.0 / (CUTOFF_UPPER - CUTOFF_LOWER)
    # padded RBF lanes (>= NUM_RBF) carry garbage but hit all-zero Wdk/Wdv/edge_W rows.
    rbf = cut * jnp.exp(-betas_ref[...] *
                        (jnp.exp(alpha * (CUTOFF_LOWER - r)) - means_ref[...]) ** 2)   # [E, RBF_PAD]

    f_ij = rbf
    if use_edge_attr:
        f_ij = f_ij + (jnp.dot(eattr_ref[...], edgeW_ref[...],
                               preferred_element_type=f32) + edgeb_ref[...])

    # ---- dk/dv for ALL layers in one matmul: [E, RBF_PAD] x [RBF_PAD, L*4H] ----
    dkv_all = jnp.dot(f_ij, wdkv_ref[...], preferred_element_type=f32) + bdkv_ref[...]
    dkv_all = dkv_all * jax.nn.sigmoid(dkv_all)                          # SiLU

    hm = hm_ref[...]                                                     # [H, nh] per-head sum
    hmt = hmt_ref[...]                                                   # [nh, H] per-head bcast

    x = H_blk                                                            # [N, H]
    vec = jnp.zeros((N, 3 * Hd), f32)                                    # [N, 3H] xyz on lanes

    # ---- EquivariantMultiHeadAttention layers (statically unrolled) ----
    for l in range(L):
        # pre-LayerNorm
        mu = jnp.mean(x, axis=-1, keepdims=True)
        xc = x - mu
        var = jnp.mean(xc * xc, axis=-1, keepdims=True)
        xl = xc * jax.lax.rsqrt(var + 1e-5) * lng_ref[l] + lnb_ref[l]

        qkv = jnp.dot(xl, wqkv_ref[l], preferred_element_type=f32) + bqkv_ref[l]   # [N, 5H]
        q = qkv[:, :Hd]
        kv = qkv[:, Hd:]                                                 # [N, 4H] = k | v(3H)
        vecp = jnp.dot(vec, wvec_ref[l], preferred_element_type=f32)     # [N, 9H] block-diag vec_proj

        dkv = dkv_all[:, l * 4 * Hd:(l + 1) * 4 * Hd]                    # [E, 4H]
        dk = dkv[:, :Hd]
        dv = dkv[:, Hd:]                                                 # [E, 3H]

        # in-kernel gathers via one-hot matmuls
        q_i = jnp.dot(G_dst, q, preferred_element_type=f32)              # [E, H]
        kv_j = jnp.dot(G_src, kv, preferred_element_type=f32)            # [E, 4H]
        k_j = kv_j[:, :Hd]
        v_j = kv_j[:, Hd:]                                               # [E, 3H]
        vec_j = jnp.dot(G_src, vec, preferred_element_type=f32)          # [E, 3H]

        # attention (per-head sum / broadcast expressed as tiny MXU matmuls)
        qk = q_i * k_j * dk
        attn = jnp.dot(qk, hm, preferred_element_type=f32)               # [E, nh]
        attn = attn * jax.nn.sigmoid(attn) * cut                         # SiLU + cosine cutoff
        attn_full = jnp.dot(attn, hmt, preferred_element_type=f32)       # [E, H]

        vdv = v_j * dv
        xv = vdv[:, :Hd]
        v1m = vdv[:, Hd:2 * Hd]
        v2m = vdv[:, 2 * Hd:]

        # lane-dense [E, 4H] = [x_msg | vec_msg_x | vec_msg_y | vec_msg_z], masked edges -> 0
        msg = jnp.concatenate(
            [xv * attn_full]
            + [vec_j[:, s * Hd:(s + 1) * Hd] * v1m + v2m * unit[:, s:s + 1] for s in range(3)],
            axis=1) * mask

        agg = jnp.dot(S_t, msg, preferred_element_type=f32)              # [N, 4H] scatter-sum at dst
        x_agg = agg[:, :Hd]
        vec_agg = agg[:, Hd:]

        o = jnp.dot(x_agg, wo_ref[l], preferred_element_type=f32) + bo_ref[l]      # [N, 3H]
        o1 = o[:, :Hd]
        o2 = o[:, Hd:2 * Hd]
        o3 = o[:, 2 * Hd:]

        vec_dot = jnp.zeros((N, Hd), f32)
        for s in range(3):
            base = s * 3 * Hd
            vec_dot = vec_dot + vecp[:, base:base + Hd] * vecp[:, base + Hd:base + 2 * Hd]

        dvec = jnp.concatenate(
            [vecp[:, s * 3 * Hd + 2 * Hd:(s + 1) * 3 * Hd] * o1 + vec_agg[:, s * Hd:(s + 1) * Hd]
             for s in range(3)], axis=1)

        x = x + vec_dot * o2 + o3
        vec = vec + dvec

    # ---- out_norm LayerNorm + F.normalize ----
    mu = jnp.mean(x, axis=-1, keepdims=True)
    xc = x - mu
    var = jnp.mean(xc * xc, axis=-1, keepdims=True)
    xo = xc * jax.lax.rsqrt(var + 1e-5) * outg_ref[...] + outb_ref[...]
    nrm = jnp.sqrt(jnp.sum(xo * xo, axis=-1, keepdims=True))
    block_repr = xo / jnp.maximum(nrm, 1e-12)
    brepr_ref[...] = block_repr

    # ---- graph pooling: scatter_sum over batch_id (one-hot matmul) then normalize ----
    B_pool = (jax.lax.broadcasted_iota(jnp.int32, (G, N), 0)
              == bat_id_ref[...]).astype(f32)                            # [n_graphs, N]
    gsum = jnp.dot(B_pool, block_repr, preferred_element_type=f32)
    gn = jnp.sqrt(jnp.sum(gsum * gsum, axis=-1, keepdims=True))
    grepr_ref[...] = gsum / jnp.maximum(gn, 1e-12)


# ----------------------------- parameter init ---------------------------------
def _init_linear(key, fan_in, fan_out, bias=True):
    k1, _ = jax.random.split(key)
    bound = math.sqrt(6.0 / (fan_in + fan_out))   # xavier_uniform, zero bias (torchmd-net reset)
    w = jax.random.uniform(k1, (fan_in, fan_out), jnp.float32, -bound, bound)
    b = jnp.zeros((fan_out,), jnp.float32) if bias else None
    return w, b


def init_params(key, hidden, edge_size, n_layers):
    keys = jax.random.split(key, 8 * n_layers + 4)
    ki = iter(keys)
    hd = hidden // NUM_HEADS
    pad_rbf = RBF_PAD - NUM_RBF
    p = {}

    # edge_linear: edge_size -> num_rbf (zero-padded to RBF_PAD columns)
    eW, eb = _init_linear(next(ki), edge_size, NUM_RBF)
    p["edge_W"] = jnp.pad(eW, ((0, 0), (0, pad_rbf)))
    p["edge_b"] = jnp.pad(eb.reshape(1, -1), ((0, 0), (0, pad_rbf)))

    # ExpNormalSmearing (trainable params, torchmd-net deterministic init), zero-padded
    start = math.exp(-CUTOFF_UPPER + CUTOFF_LOWER)
    means = jnp.linspace(start, 1.0, NUM_RBF).reshape(1, -1)
    betas = jnp.full((1, NUM_RBF), (2.0 / NUM_RBF * (1.0 - start)) ** -2)
    p["rbf_means"] = jnp.pad(means, ((0, 0), (0, pad_rbf))).astype(jnp.float32)
    p["rbf_betas"] = jnp.pad(betas, ((0, 0), (0, pad_rbf))).astype(jnp.float32)

    # column permutation mapping torch's [nh, 3*hd] interleaved v/dv layout -> [x|vec1|vec2] blocks
    v_perm = jnp.array(
        [h * 3 * hd + part * hd + d
         for part in range(3) for h in range(NUM_HEADS) for d in range(hd)],
        dtype=jnp.int32)

    ln_g, ln_b, Wqkv, bqkv, Wvec_bd, Wo_s, bo_s, Wdkv_cols, bdkv_cols = ([] for _ in range(9))
    for _ in range(n_layers):
        ln_g.append(jnp.ones((1, hidden), jnp.float32))
        ln_b.append(jnp.zeros((1, hidden), jnp.float32))

        Wq, bq = _init_linear(next(ki), hidden, hidden)
        Wk, bk = _init_linear(next(ki), hidden, hidden)
        Wv, bv = _init_linear(next(ki), hidden, 3 * hidden)
        Wv, bv = Wv[:, v_perm], bv[v_perm]
        Wqkv.append(jnp.concatenate([Wq, Wk, Wv], axis=1))                 # [H, 5H]
        bqkv.append(jnp.concatenate([bq, bk, bv]).reshape(1, -1))          # [1, 5H]

        Wo, bo = _init_linear(next(ki), hidden, 3 * hidden)
        Wo_s.append(Wo)
        bo_s.append(bo.reshape(1, -1))

        Wvec, _ = _init_linear(next(ki), hidden, 3 * hidden, bias=False)
        bd = jnp.zeros((3 * hidden, 9 * hidden), jnp.float32)              # block-diag vec_proj
        for s in range(3):
            bd = bd.at[s * hidden:(s + 1) * hidden,
                       s * 3 * hidden:(s + 1) * 3 * hidden].set(Wvec)
        Wvec_bd.append(bd)

        Wdk, bdk = _init_linear(next(ki), NUM_RBF, hidden)
        Wdv, bdv = _init_linear(next(ki), NUM_RBF, 3 * hidden)
        Wdv, bdv = Wdv[:, v_perm], bdv[v_perm]
        wdkv = jnp.concatenate([Wdk, Wdv], axis=1)                         # [NUM_RBF, 4H]
        wdkv = jnp.pad(wdkv, ((0, pad_rbf), (0, 0)))                       # zero rows for padded RBF
        Wdkv_cols.append(wdkv)
        bdkv_cols.append(jnp.concatenate([bdk, bdv]).reshape(1, -1))

    p["ln_g"] = jnp.stack(ln_g)            # [L, 1, H]
    p["ln_b"] = jnp.stack(ln_b)
    p["Wqkv"] = jnp.stack(Wqkv)            # [L, H, 5H]
    p["bqkv"] = jnp.stack(bqkv)            # [L, 1, 5H]
    p["Wvec_bd"] = jnp.stack(Wvec_bd)      # [L, 3H, 9H]
    p["Wo"] = jnp.stack(Wo_s)              # [L, H, 3H]
    p["bo"] = jnp.stack(bo_s)              # [L, 1, 3H]
    p["Wdkv"] = jnp.concatenate(Wdkv_cols, axis=1)   # [RBF_PAD, L*4H]
    p["bdkv"] = jnp.concatenate(bdkv_cols, axis=1)   # [1, L*4H]
    p["out_g"] = jnp.ones((1, hidden), jnp.float32)
    p["out_b"] = jnp.zeros((1, hidden), jnp.float32)

    # [H, nh] per-head summation matrix (used instead of in-kernel reshapes)
    hm = jnp.zeros((hidden, NUM_HEADS), jnp.float32)
    hm = hm.at[jnp.arange(hidden), jnp.arange(hidden) // hd].set(1.0)
    p["head_mat"] = hm
    p["head_mat_t"] = hm.T
    return p


# -------------------------------- forward -------------------------------------
@functools.partial(jax.jit, static_argnums=(7, 8))
def torchmd_encoder_forward(params, H, Z, block_id, batch_id, edges, edge_attr,
                            n_blocks, n_graphs):
    n_atoms, hidden = H.shape
    Zf = Z.reshape(n_atoms, -1).astype(jnp.float32)                      # squeeze() -> [n_atoms, 3]

    src, dst = edges[0].astype(jnp.int32), edges[1].astype(jnp.int32)
    E = src.shape[0]
    E_pad = int(-(-E // 8) * 8)                                          # multiple of 8 sublanes
    pad = E_pad - E
    if pad:
        # padded self-edges (src=dst=0) have r ~ 0 and are zeroed by the r > 0.01 mask
        src = jnp.concatenate([src, jnp.zeros((pad,), jnp.int32)])
        dst = jnp.concatenate([dst, jnp.zeros((pad,), jnp.int32)])

    use_edge_attr = edge_attr is not None
    if use_edge_attr:
        ea = edge_attr.astype(jnp.float32)
        if pad:
            ea = jnp.concatenate([ea, jnp.zeros((pad, ea.shape[1]), jnp.float32)], axis=0)
    else:
        ea = jnp.zeros((E_pad, 1), jnp.float32)

    src_col = src.reshape(E_pad, 1)
    dst_col = dst.reshape(E_pad, 1)
    dst_row = dst.reshape(1, E_pad)
    blk_row = block_id.reshape(1, n_atoms).astype(jnp.int32)
    bat_row = batch_id.reshape(1, n_blocks).astype(jnp.int32)

    out_shapes = (
        jax.ShapeDtypeStruct((n_blocks, hidden), jnp.float32),   # H_blk (pooled H)
        jax.ShapeDtypeStruct((n_blocks, hidden), jnp.float32),   # block_repr
        jax.ShapeDtypeStruct((n_graphs, hidden), jnp.float32),   # graph_repr
    )
    kern = functools.partial(_fused_encoder_kernel, use_edge_attr=use_edge_attr)
    H_blk, block_repr, graph_repr = pl.pallas_call(
        kern,
        out_shape=out_shapes,
        compiler_params=pltpu.CompilerParams(vmem_limit_bytes=64 * 1024 * 1024),
    )(
        H.astype(jnp.float32), Zf, blk_row, bat_row,
        src_col, dst_col, dst_row,
        ea, params["edge_W"], params["edge_b"],
        params["rbf_means"], params["rbf_betas"],
        params["ln_g"], params["ln_b"], params["Wqkv"], params["bqkv"],
        params["Wvec_bd"], params["Wo"], params["bo"],
        params["Wdkv"], params["bdkv"],
        params["out_g"], params["out_b"],
        params["head_mat"], params["head_mat_t"],
    )
    return H_blk, block_repr, graph_repr, None


# --------------------------------- main ----------------------------------------
if __name__ == "__main__":
    key = jax.random.PRNGKey(0)
    k1, k2, k3, k4 = jax.random.split(key, 4)

    n_atoms, n_blocks, n_graphs = 24, 8, 2
    atoms_per_block = n_atoms // n_blocks
    blocks_per_graph = n_blocks // n_graphs

    H_in = jax.random.normal(k1, (n_atoms, HIDDEN), jnp.float32)
    Z_in = jax.random.normal(k2, (n_atoms, 1, 3), jnp.float32) * 1.5
    block_id = jnp.repeat(jnp.arange(n_blocks, dtype=jnp.int32), atoms_per_block)
    batch_id = jnp.repeat(jnp.arange(n_graphs, dtype=jnp.int32), blocks_per_graph)

    # fully connected (no self-loops) block graph within each of the 2 graphs -> 24 edges
    srcs, dsts = [], []
    for g in range(n_graphs):
        base = g * blocks_per_graph
        for a in range(blocks_per_graph):
            for b in range(blocks_per_graph):
                if a != b:
                    srcs.append(base + a)
                    dsts.append(base + b)
    edges = jnp.array([srcs, dsts], dtype=jnp.int32)
    edge_attr = jax.random.normal(k3, (edges.shape[1], EDGE_SIZE), jnp.float32)

    params = init_params(k4, HIDDEN, EDGE_SIZE, N_LAYERS)

    H_blk, block_repr, graph_repr, _ = torchmd_encoder_forward(
        params, H_in, Z_in, block_id, batch_id, edges, edge_attr, n_blocks, n_graphs)
    jax.block_until_ready((H_blk, block_repr, graph_repr))

    assert H_blk.shape == (n_blocks, HIDDEN)
    assert block_repr.shape == (n_blocks, HIDDEN)
    assert graph_repr.shape == (n_graphs, HIDDEN)
    assert bool(jnp.all(jnp.isfinite(H_blk)))
    assert bool(jnp.all(jnp.isfinite(block_repr))) and bool(jnp.all(jnp.isfinite(graph_repr)))
    print("KERNEL_OK")
</pallas_src>

<mosaic_0001>
module attributes {stable_mosaic.version = 11 : i64} {
  func.func @_fused_encoder_kernel(%arg0: memref<24x32xf32, #tpu.memory_space<vmem>>, %arg1: memref<24x3xf32, #tpu.memory_space<vmem>>, %arg2: memref<1x24xi32, #tpu.memory_space<vmem>>, %arg3: memref<1x8xi32, #tpu.memory_space<vmem>>, %arg4: memref<24x1xi32, #tpu.memory_space<vmem>>, %arg5: memref<24x1xi32, #tpu.memory_space<vmem>>, %arg6: memref<1x24xi32, #tpu.memory_space<vmem>>, %arg7: memref<24x4xf32, #tpu.memory_space<vmem>>, %arg8: memref<4x64xf32, #tpu.memory_space<vmem>>, %arg9: memref<1x64xf32, #tpu.memory_space<vmem>>, %arg10: memref<1x64xf32, #tpu.memory_space<vmem>>, %arg11: memref<1x64xf32, #tpu.memory_space<vmem>>, %arg12: memref<3x1x32xf32, #tpu.memory_space<vmem>>, %arg13: memref<3x1x32xf32, #tpu.memory_space<vmem>>, %arg14: memref<3x32x160xf32, #tpu.memory_space<vmem>>, %arg15: memref<3x1x160xf32, #tpu.memory_space<vmem>>, %arg16: memref<3x96x288xf32, #tpu.memory_space<vmem>>, %arg17: memref<3x32x96xf32, #tpu.memory_space<vmem>>, %arg18: memref<3x1x96xf32, #tpu.memory_space<vmem>>, %arg19: memref<64x384xf32, #tpu.memory_space<vmem>>, %arg20: memref<1x384xf32, #tpu.memory_space<vmem>>, %arg21: memref<1x32xf32, #tpu.memory_space<vmem>>, %arg22: memref<1x32xf32, #tpu.memory_space<vmem>>, %arg23: memref<32x8xf32, #tpu.memory_space<vmem>>, %arg24: memref<8x32xf32, #tpu.memory_space<vmem>>, %arg25: memref<8x32xf32, #tpu.memory_space<vmem>>, %arg26: memref<8x32xf32, #tpu.memory_space<vmem>>, %arg27: memref<2x32xf32, #tpu.memory_space<vmem>>) attributes {dimension_semantics = [], scalar_prefetch = 0 : i64, scratch_operands = 0 : i64, tpu.core_type = #tpu.core_type<tc>} {
    %0 = tpu.iota {dimensions = array<i32: 0>} : vector<8x24xi32>
    %c0 = arith.constant 0 : index
    %c0_0 = arith.constant 0 : index
    %1 = vector.load %arg2[%c0, %c0_0] : memref<1x24xi32, #tpu.memory_space<vmem>>, vector<1x24xi32>
    %2 = vector.broadcast %1 : vector<1x24xi32> to vector<8x24xi32>
    %3 = arith.cmpi eq, %0, %2 : vector<8x24xi32>
    %4 = arith.extui %3 : vector<8x24xi1> to vector<8x24xi32>
    %5 = arith.sitofp %4 : vector<8x24xi32> to vector<8x24xf32>
    %cst = arith.constant dense<0.000000e+00> : vector<8xf32>
    %6 = vector.multi_reduction <add>, %5, %cst [1] : vector<8x24xf32> to vector<8xf32>
    %7 = vector.shape_cast %6 : vector<8xf32> to vector<8x1xf32>
    %cst_1 = arith.constant 1.000000e+00 : f32
    %8 = vector.broadcast %cst_1 : f32 to vector<8x1xf32>
    %9 = arith.maximumf %7, %8 : vector<8x1xf32>
    %cst_2 = arith.constant 1.000000e+00 : f32
    %10 = vector.broadcast %cst_2 : f32 to vector<8x1xf32>
    %11 = arith.divf %10, %9 : vector<8x1xf32>
    %c0_3 = arith.constant 0 : index
    %c0_4 = arith.constant 0 : index
    %12 = vector.load %arg0[%c0_3, %c0_4] : memref<24x32xf32, #tpu.memory_space<vmem>>, vector<24x32xf32>
    %cst_5 = arith.constant dense<0.000000e+00> : vector<8x32xf32>
    %13 = tpu.matmul %5, %12, %cst_5 {dimension_numbers = #tpu.dot_dimension_numbers<[1], [0], [0], [1], [0, 0, 1, 1], [], []>} : vector<8x24xf32>, vector<24x32xf32>, vector<8x32xf32> -> vector<8x32xf32>
    %14 = vector.broadcast %11 : vector<8x1xf32> to vector<8x32xf32>
    %15 = arith.mulf %13, %14 : vector<8x32xf32>
    %c0_6 = arith.constant 0 : index
    %c0_7 = arith.constant 0 : index
    %16 = vector.load %arg1[%c0_6, %c0_7] : memref<24x3xf32, #tpu.memory_space<vmem>>, vector<24x3xf32>
    %cst_8 = arith.constant dense<0.000000e+00> : vector<8x3xf32>
    %17 = tpu.matmul %5, %16, %cst_8 {dimension_numbers = #tpu.dot_dimension_numbers<[1], [0], [0], [1], [0, 0, 1, 1], [], []>} : vector<8x24xf32>, vector<24x3xf32>, vector<8x3xf32> -> vector<8x3xf32>
    %18 = vector.broadcast %11 : vector<8x1xf32> to vector<8x3xf32>
    %19 = arith.mulf %17, %18 : vector<8x3xf32>
    %c0_9 = arith.constant 0 : index
    %c0_10 = arith.constant 0 : index
    %20 = vector.load %arg25[%c0_9, %c0_10] : memref<8x32xf32, #tpu.memory_space<vmem>>, vector<8x32xf32>
    tpu.vector_store %arg25[%c0_9, %c0_10], %15 {strides = array<i32>} : memref<8x32xf32, #tpu.memory_space<vmem>>, vector<8x32xf32>,
    %21 = tpu.iota {dimensions = array<i32: 1>} : vector<24x8xi32>
    %c0_11 = arith.constant 0 : index
    %c0_12 = arith.constant 0 : index
    %22 = vector.load %arg4[%c0_11, %c0_12] : memref<24x1xi32, #tpu.memory_space<vmem>>, vector<24x1xi32>
    %23 = vector.broadcast %22 : vector<24x1xi32> to vector<24x8xi32>
    %24 = arith.cmpi eq, %23, %21 : vector<24x8xi32>
    %25 = arith.extui %24 : vector<24x8xi1> to vector<24x8xi32>
    %26 = arith.sitofp %25 : vector<24x8xi32> to vector<24x8xf32>
    %c0_13 = arith.constant 0 : index
    %c0_14 = arith.constant 0 : index
    %27 = vector.load %arg5[%c0_13, %c0_14] : memref<24x1xi32, #tpu.memory_space<vmem>>, vector<24x1xi32>
    %28 = vector.broadcast %27 : vector<24x1xi32> to vector<24x8xi32>
    %29 = arith.cmpi eq, %28, %21 : vector<24x8xi32>
    %30 = arith.extui %29 : vector<24x8xi1> to vector<24x8xi32>
    %31 = arith.sitofp %30 : vector<24x8xi32> to vector<24x8xf32>
    %32 = tpu.iota {dimensions = array<i32: 0>} : vector<8x24xi32>
    %c0_15 = arith.constant 0 : index
    %c0_16 = arith.constant 0 : index
    %33 = vector.load %arg6[%c0_15, %c0_16] : memref<1x24xi32, #tpu.memory_space<vmem>>, vector<1x24xi32>
    %34 = vector.broadcast %33 : vector<1x24xi32> to vector<8x24xi32>
    %35 = arith.cmpi eq, %32, %34 : vector<8x24xi32>
    %36 = arith.extui %35 : vector<8x24xi1> to vector<8x24xi32>
    %37 = arith.sitofp %36 : vector<8x24xi32> to vector<8x24xf32>
    %cst_17 = arith.constant dense<0.000000e+00> : vector<24x3xf32>
    %38 = tpu.matmul %26, %19, %cst_17 {dimension_numbers = #tpu.dot_dimension_numbers<[1], [0], [0], [1], [0, 0, 1, 1], [], []>} : vector<24x8xf32>, vector<8x3xf32>, vector<24x3xf32> -> vector<24x3xf32>
    %cst_18 = arith.constant dense<0.000000e+00> : vector<24x3xf32>
    %39 = tpu.matmul %31, %19, %cst_18 {dimension_numbers = #tpu.dot_dimension_numbers<[1], [0], [0], [1], [0, 0, 1, 1], [], []>} : vector<24x8xf32>, vector<8x3xf32>, vector<24x3xf32> -> vector<24x3xf32>
    %40 = arith.subf %38, %39 : vector<24x3xf32>
    %41 = arith.mulf %40, %40 : vector<24x3xf32>
    %cst_19 = arith.constant dense<0.000000e+00> : vector<24xf32>
    %42 = vector.multi_reduction <add>, %41, %cst_19 [1] : vector<24x3xf32> to vector<24xf32>
    %43 = vector.shape_cast %42 : vector<24xf32> to vector<24x1xf32>
    %cst_20 = arith.constant 9.99999996E-13 : f32
    %44 = vector.broadcast %cst_20 : f32 to vector<24x1xf32>
    %45 = arith.addf %43, %44 : vector<24x1xf32>
    %46 = math.sqrt %45 : vector<24x1xf32>
    %cst_21 = arith.constant 0.00999999977 : f32
    %47 = vector.broadcast %cst_21 : f32 to vector<24x1xf32>
    %48 = arith.cmpf ogt, %46, %47 : vector<24x1xf32>
    %49 = arith.extui %48 : vector<24x1xi1> to vector<24x1xi32>
    %50 = arith.sitofp %49 : vector<24x1xi32> to vector<24x1xf32>
    %cst_22 = arith.constant 9.99999971E-10 : f32
    %51 = vector.broadcast %cst_22 : f32 to vector<24x1xf32>
    %52 = arith.maximumf %46, %51 : vector<24x1xf32>
    %cst_23 = arith.constant 1.000000e+00 : f32
    %53 = vector.broadcast %cst_23 : f32 to vector<24x1xf32>
    %54 = arith.divf %53, %52 : vector<24x1xf32>
    %55 = vector.broadcast %54 : vector<24x1xf32> to vector<24x3xf32>
    %56 = arith.mulf %40, %55 : vector<24x3xf32>
    %cst_24 = arith.constant 0.628318548 : f32
    %57 = vector.broadcast %cst_24 : f32 to vector<24x1xf32>
    %58 = arith.mulf %46, %57 : vector<24x1xf32>
    %59 = math.cos %58 : vector<24x1xf32>
    %cst_25 = arith.constant 1.000000e+00 : f32
    %60 = vector.broadcast %cst_25 : f32 to vector<24x1xf32>
    %61 = arith.addf %59, %60 : vector<24x1xf32>
    %cst_26 = arith.constant 5.000000e-01 : f32
    %62 = vector.broadcast %cst_26 : f32 to vector<24x1xf32>
    %63 = arith.mulf %62, %61 : vector<24x1xf32>
    %cst_27 = arith.constant 5.000000e+00 : f32
    %64 = vector.broadcast %cst_27 : f32 to vector<24x1xf32>
    %65 = arith.cmpf olt, %46, %64 : vector<24x1xf32>
    %66 = arith.extui %65 : vector<24x1xi1> to vector<24x1xi32>
    %67 = arith.sitofp %66 : vector<24x1xi32> to vector<24x1xf32>
    %68 = arith.mulf %63, %67 : vector<24x1xf32>
    %c0_28 = arith.constant 0 : index
    %c0_29 = arith.constant 0 : index
    %69 = vector.load %arg11[%c0_28, %c0_29] : memref<1x64xf32, #tpu.memory_space<vmem>>, vector<1x64xf32>
    %cst_30 = arith.constant 0.000000e+00 : f32
    %70 = vector.broadcast %cst_30 : f32 to vector<1x64xf32>
    %71 = arith.subf %70, %69 : vector<1x64xf32>
    %cst_31 = arith.constant 0.000000e+00 : f32
    %72 = vector.broadcast %cst_31 : f32 to vector<24x1xf32>
    %73 = arith.subf %72, %46 : vector<24x1xf32>
    %cst_32 = arith.constant 1.000000e+00 : f32
    %74 = vector.broadcast %cst_32 : f32 to vector<24x1xf32>
    %75 = arith.mulf %74, %73 : vector<24x1xf32>
    %76 = math.exp %75 : vector<24x1xf32>
    %c0_33 = arith.constant 0 : index
    %c0_34 = arith.constant 0 : index
    %77 = vector.load %arg10[%c0_33, %c0_34] : memref<1x64xf32, #tpu.memory_space<vmem>>, vector<1x64xf32>
    %78 = vector.broadcast %76 : vector<24x1xf32> to vector<24x64xf32>
    %79 = vector.broadcast %77 : vector<1x64xf32> to vector<24x64xf32>
    %80 = arith.subf %78, %79 : vector<24x64xf32>
    %81 = arith.mulf %80, %80 : vector<24x64xf32>
    %82 = vector.broadcast %71 : vector<1x64xf32> to vector<24x64xf32>
    %83 = arith.mulf %82, %81 : vector<24x64xf32>
    %84 = math.exp %83 : vector<24x64xf32>
    %85 = vector.broadcast %68 : vector<24x1xf32> to vector<24x64xf32>
    %86 = arith.mulf %85, %84 : vector<24x64xf32>
    %c0_35 = arith.constant 0 : index
    %c0_36 = arith.constant 0 : index
    %87 = vector.load %arg7[%c0_35, %c0_36] : memref<24x4xf32, #tpu.memory_space<vmem>>, vector<24x4xf32>
    %c0_37 = arith.constant 0 : index
    %c0_38 = arith.constant 0 : index
    %88 = vector.load %arg8[%c0_37, %c0_38] : memref<4x64xf32, #tpu.memory_space<vmem>>, vector<4x64xf32>
    %cst_39 = arith.constant dense<0.000000e+00> : vector<24x64xf32>
    %89 = tpu.matmul %87, %88, %cst_39 {dimension_numbers = #tpu.dot_dimension_numbers<[1], [0], [0], [1], [0, 0, 1, 1], [], []>} : vector<24x4xf32>, vector<4x64xf32>, vector<24x64xf32> -> vector<24x64xf32>
    %c0_40 = arith.constant 0 : index
    %c0_41 = arith.constant 0 : index
    %90 = vector.load %arg9[%c0_40, %c0_41] : memref<1x64xf32, #tpu.memory_space<vmem>>, vector<1x64xf32>
    %91 = vector.broadcast %90 : vector<1x64xf32> to vector<24x64xf32>
    %92 = arith.addf %89, %91 : vector<24x64xf32>
    %93 = arith.addf %86, %92 : vector<24x64xf32>
    %c0_42 = arith.constant 0 : index
    %c0_43 = arith.constant 0 : index
    %94 = vector.load %arg19[%c0_42, %c0_43] : memref<64x384xf32, #tpu.memory_space<vmem>>, vector<64x384xf32>
    %cst_44 = arith.constant dense<0.000000e+00> : vector<24x384xf32>
    %95 = tpu.matmul %93, %94, %cst_44 {dimension_numbers = #tpu.dot_dimension_numbers<[1], [0], [0], [1], [0, 0, 1, 1], [], []>} : vector<24x64xf32>, vector<64x384xf32>, vector<24x384xf32> -> vector<24x384xf32>
    %c0_45 = arith.constant 0 : index
    %c0_46 = arith.constant 0 : index
    %96 = vector.load %arg20[%c0_45, %c0_46] : memref<1x384xf32, #tpu.memory_space<vmem>>, vector<1x384xf32>
    %97 = vector.broadcast %96 : vector<1x384xf32> to vector<24x384xf32>
    %98 = arith.addf %95, %97 : vector<24x384xf32>
    %99 = arith.negf %98 : vector<24x384xf32>
    %100 = math.exp %99 : vector<24x384xf32>
    %cst_47 = arith.constant 1.000000e+00 : f32
    %101 = vector.broadcast %cst_47 : f32 to vector<24x384xf32>
    %102 = arith.addf %101, %100 : vector<24x384xf32>
    %103 = arith.divf %101, %102 : vector<24x384xf32>
    %104 = arith.mulf %98, %103 : vector<24x384xf32>
    %c0_48 = arith.constant 0 : index
    %c0_49 = arith.constant 0 : index
    %105 = vector.load %arg23[%c0_48, %c0_49] : memref<32x8xf32, #tpu.memory_space<vmem>>, vector<32x8xf32>
    %c0_50 = arith.constant 0 : index
    %c0_51 = arith.constant 0 : index
    %106 = vector.load %arg24[%c0_50, %c0_51] : memref<8x32xf32, #tpu.memory_space<vmem>>, vector<8x32xf32>
    %cst_52 = arith.constant 0.000000e+00 : f32
    %107 = vector.broadcast %cst_52 : f32 to vector<8x96xf32>
    %cst_53 = arith.constant dense<0.000000e+00> : vector<8xf32>
    %108 = vector.multi_reduction <add>, %15, %cst_53 [1] : vector<8x32xf32> to vector<8xf32>
    %109 = vector.shape_cast %108 : vector<8xf32> to vector<8x1xf32>
    %cst_54 = arith.constant 3.200000e+01 : f32
    %110 = vector.broadcast %cst_54 : f32 to vector<8x1xf32>
    %111 = arith.divf %109, %110 : vector<8x1xf32>
    %112 = vector.broadcast %111 : vector<8x1xf32> to vector<8x32xf32>
    %113 = arith.subf %15, %112 : vector<8x32xf32>
    %114 = arith.mulf %113, %113 : vector<8x32xf32>
    %cst_55 = arith.constant dense<0.000000e+00> : vector<8xf32>
    %115 = vector.multi_reduction <add>, %114, %cst_55 [1] : vector<8x32xf32> to vector<8xf32>
    %116 = vector.shape_cast %115 : vector<8xf32> to vector<8x1xf32>
    %cst_56 = arith.constant 3.200000e+01 : f32
    %117 = vector.broadcast %cst_56 : f32 to vector<8x1xf32>
    %118 = arith.divf %116, %117 : vector<8x1xf32>
    %cst_57 = arith.constant 9.99999974E-6 : f32
    %119 = vector.broadcast %cst_57 : f32 to vector<8x1xf32>
    %120 = arith.addf %118, %119 : vector<8x1xf32>
    %121 = math.rsqrt %120 : vector<8x1xf32>
    %122 = vector.broadcast %121 : vector<8x1xf32> to vector<8x32xf32>
    %123 = arith.mulf %113, %122 : vector<8x32xf32>
    %c0_58 = arith.constant 0 : index
    %c0_59 = arith.constant 0 : index
    %c0_60 = arith.constant 0 : index
    %124 = vector.load %arg12[%c0_58, %c0_59, %c0_60] : memref<3x1x32xf32, #tpu.memory_space<vmem>>, vector<1x1x32xf32>
    %125 = vector.shape_cast %124 : vector<1x1x32xf32> to vector<1x32xf32>
    %126 = vector.broadcast %125 : vector<1x32xf32> to vector<8x32xf32>
    %127 = arith.mulf %123, %126 : vector<8x32xf32>
    %c0_61 = arith.constant 0 : index
    %c0_62 = arith.constant 0 : index
    %c0_63 = arith.constant 0 : index
    %128 = vector.load %arg13[%c0_61, %c0_62, %c0_63] : memref<3x1x32xf32, #tpu.memory_space<vmem>>, vector<1x1x32xf32>
    %129 = vector.shape_cast %128 : vector<1x1x32xf32> to vector<1x32xf32>
    %130 = vector.broadcast %129 : vector<1x32xf32> to vector<8x32xf32>
    %131 = arith.addf %127, %130 : vector<8x32xf32>
    %c0_64 = arith.constant 0 : index
    %c0_65 = arith.constant 0 : index
    %c0_66 = arith.constant 0 : index
    %132 = vector.load %arg14[%c0_64, %c0_65, %c0_66] : memref<3x32x160xf32, #tpu.memory_space<vmem>>, vector<1x32x160xf32>
    %133 = vector.shape_cast %132 : vector<1x32x160xf32> to vector<32x160xf32>
    %cst_67 = arith.constant dense<0.000000e+00> : vector<8x160xf32>
    %134 = tpu.matmul %131, %133, %cst_67 {dimension_numbers = #tpu.dot_dimension_numbers<[1], [0], [0], [1], [0, 0, 1, 1], [], []>} : vector<8x32xf32>, vector<32x160xf32>, vector<8x160xf32> -> vector<8x160xf32>
    %c0_68 = arith.constant 0 : index
    %c0_69 = arith.constant 0 : index
    %c0_70 = arith.constant 0 : index
    %135 = vector.load %arg15[%c0_68, %c0_69, %c0_70] : memref<3x1x160xf32, #tpu.memory_space<vmem>>, vector<1x1x160xf32>
    %136 = vector.shape_cast %135 : vector<1x1x160xf32> to vector<1x160xf32>
    %137 = vector.broadcast %136 : vector<1x160xf32> to vector<8x160xf32>
    %138 = arith.addf %134, %137 : vector<8x160xf32>
    %139 = vector.extract_strided_slice %138 {offsets = [0, 0], sizes = [8, 32], strides = [1, 1]} : vector<8x160xf32> to vector<8x32xf32>
    %140 = vector.extract_strided_slice %138 {offsets = [0, 32], sizes = [8, 128], strides = [1, 1]} : vector<8x160xf32> to vector<8x128xf32>
    %c0_71 = arith.constant 0 : index
    %c0_72 = arith.constant 0 : index
    %c0_73 = arith.constant 0 : index
    %141 = vector.load %arg16[%c0_71, %c0_72, %c0_73] : memref<3x96x288xf32, #tpu.memory_space<vmem>>, vector<1x96x288xf32>
    %142 = vector.shape_cast %141 : vector<1x96x288xf32> to vector<96x288xf32>
    %cst_74 = arith.constant dense<0.000000e+00> : vector<8x288xf32>
    %143 = tpu.matmul %107, %142, %cst_74 {dimension_numbers = #tpu.dot_dimension_numbers<[1], [0], [0], [1], [0, 0, 1, 1], [], []>} : vector<8x96xf32>, vector<96x288xf32>, vector<8x288xf32> -> vector<8x288xf32>
    %144 = vector.extract_strided_slice %104 {offsets = [0, 0], sizes = [24, 128], strides = [1, 1]} : vector<24x384xf32> to vector<24x128xf32>
    %145 = vector.extract_strided_slice %144 {offsets = [0, 0], sizes = [24, 32], strides = [1, 1]} : vector<24x128xf32> to vector<24x32xf32>
    %146 = vector.extract_strided_slice %144 {offsets = [0, 32], sizes = [24, 96], strides = [1, 1]} : vector<24x128xf32> to vector<24x96xf32>
    %cst_75 = arith.constant dense<0.000000e+00> : vector<24x32xf32>
    %147 = tpu.matmul %31, %139, %cst_75 {dimension_numbers = #tpu.dot_dimension_numbers<[1], [0], [0], [1], [0, 0, 1, 1], [], []>} : vector<24x8xf32>, vector<8x32xf32>, vector<24x32xf32> -> vector<24x32xf32>
    %cst_76 = arith.constant dense<0.000000e+00> : vector<24x128xf32>
    %148 = tpu.matmul %26, %140, %cst_76 {dimension_numbers = #tpu.dot_dimension_numbers<[1], [0], [0], [1], [0, 0, 1, 1], [], []>} : vector<24x8xf32>, vector<8x128xf32>, vector<24x128xf32> -> vector<24x128xf32>
    %149 = vector.extract_strided_slice %148 {offsets = [0, 0], sizes = [24, 32], strides = [1, 1]} : vector<24x128xf32> to vector<24x32xf32>
    %150 = vector.extract_strided_slice %148 {offsets = [0, 32], sizes = [24, 96], strides = [1, 1]} : vector<24x128xf32> to vector<24x96xf32>
    %cst_77 = arith.constant dense<0.000000e+00> : vector<24x96xf32>
    %151 = tpu.matmul %26, %107, %cst_77 {dimension_numbers = #tpu.dot_dimension_numbers<[1], [0], [0], [1], [0, 0, 1, 1], [], []>} : vector<24x8xf32>, vector<8x96xf32>, vector<24x96xf32> -> vector<24x96xf32>
    %152 = arith.mulf %147, %149 : vector<24x32xf32>
    %153 = arith.mulf %152, %145 : vector<24x32xf32>
    %cst_78 = arith.constant dense<0.000000e+00> : vector<24x8xf32>
    %154 = tpu.matmul %153, %105, %cst_78 {dimension_numbers = #tpu.dot_dimension_numbers<[1], [0], [0], [1], [0, 0, 1, 1], [], []>} : vector<24x32xf32>, vector<32x8xf32>, vector<24x8xf32> -> vector<24x8xf32>
    %155 = arith.negf %154 : vector<24x8xf32>
    %156 = math.exp %155 : vector<24x8xf32>
    %cst_79 = arith.constant 1.000000e+00 : f32
    %157 = vector.broadcast %cst_79 : f32 to vector<24x8xf32>
    %158 = arith.addf %157, %156 : vector<24x8xf32>
    %159 = arith.divf %157, %158 : vector<24x8xf32>
    %160 = arith.mulf %154, %159 : vector<24x8xf32>
    %161 = vector.broadcast %68 : vector<24x1xf32> to vector<24x8xf32>
    %162 = arith.mulf %160, %161 : vector<24x8xf32>
    %cst_80 = arith.constant dense<0.000000e+00> : vector<24x32xf32>
    %163 = tpu.matmul %162, %106, %cst_80 {dimension_numbers = #tpu.dot_dimension_numbers<[1], [0], [0], [1], [0, 0, 1, 1], [], []>} : vector<24x8xf32>, vector<8x32xf32>, vector<24x32xf32> -> vector<24x32xf32>
    %164 = arith.mulf %150, %146 : vector<24x96xf32>
    %165 = vector.extract_strided_slice %164 {offsets = [0, 0], sizes = [24, 32], strides = [1, 1]} : vector<24x96xf32> to vector<24x32xf32>
    %166 = vector.extract_strided_slice %164 {offsets = [0, 32], sizes = [24, 32], strides = [1, 1]} : vector<24x96xf32> to vector<24x32xf32>
    %167 = vector.extract_strided_slice %164 {offsets = [0, 64], sizes = [24, 32], strides = [1, 1]} : vector<24x96xf32> to vector<24x32xf32>
    %168 = arith.mulf %165, %163 : vector<24x32xf32>
    %169 = vector.extract_strided_slice %151 {offsets = [0, 0], sizes = [24, 32], strides = [1, 1]} : vector<24x96xf32> to vector<24x32xf32>
    %170 = arith.mulf %169, %166 : vector<24x32xf32>
    %171 = vector.extract_strided_slice %56 {offsets = [0, 0], sizes = [24, 1], strides = [1, 1]} : vector<24x3xf32> to vector<24x1xf32>
    %172 = vector.broadcast %171 : vector<24x1xf32> to vector<24x32xf32>
    %173 = arith.mulf %167, %172 : vector<24x32xf32>
    %174 = arith.addf %170, %173 : vector<24x32xf32>
    %175 = vector.extract_strided_slice %151 {offsets = [0, 32], sizes = [24, 32], strides = [1, 1]} : vector<24x96xf32> to vector<24x32xf32>
    %176 = arith.mulf %175, %166 : vector<24x32xf32>
    %177 = vector.extract_strided_slice %56 {offsets = [0, 1], sizes = [24, 1], strides = [1, 1]} : vector<24x3xf32> to vector<24x1xf32>
    %178 = vector.broadcast %177 : vector<24x1xf32> to vector<24x32xf32>
    %179 = arith.mulf %167, %178 : vector<24x32xf32>
    %180 = arith.addf %176, %179 : vector<24x32xf32>
    %181 = vector.extract_strided_slice %151 {offsets = [0, 64], sizes = [24, 32], strides = [1, 1]} : vector<24x96xf32> to vector<24x32xf32>
    %182 = arith.mulf %181, %166 : vector<24x32xf32>
    %183 = vector.extract_strided_slice %56 {offsets = [0, 2], sizes = [24, 1], strides = [1, 1]} : vector<24x3xf32> to vector<24x1xf32>
    %184 = vector.broadcast %183 : vector<24x1xf32> to vector<24x32xf32>
    %185 = arith.mulf %167, %184 : vector<24x32xf32>
    %186 = arith.addf %182, %185 : vector<24x32xf32>
    %187 = tpu.concatenate %168, %174, %180, %186 in 1 : vector<24x32xf32>, vector<24x32xf32>, vector<24x32xf32>, vector<24x32xf32> -> vector<24x128xf32>
    %188 = vector.broadcast %50 : vector<24x1xf32> to vector<24x128xf32>
    %189 = arith.mulf %187, %188 : vector<24x128xf32>
    %cst_81 = arith.constant dense<0.000000e+00> : vector<8x128xf32>
    %190 = tpu.matmul %37, %189, %cst_81 {dimension_numbers = #tpu.dot_dimension_numbers<[1], [0], [0], [1], [0, 0, 1, 1], [], []>} : vector<8x24xf32>, vector<24x128xf32>, vector<8x128xf32> -> vector<8x128xf32>
    %191 = vector.extract_strided_slice %190 {offsets = [0, 0], sizes = [8, 32], strides = [1, 1]} : vector<8x128xf32> to vector<8x32xf32>
    %192 = vector.extract_strided_slice %190 {offsets = [0, 32], sizes = [8, 96], strides = [1, 1]} : vector<8x128xf32> to vector<8x96xf32>
    %c0_82 = arith.constant 0 : index
    %c0_83 = arith.constant 0 : index
    %c0_84 = arith.constant 0 : index
    %193 = vector.load %arg17[%c0_82, %c0_83, %c0_84] : memref<3x32x96xf32, #tpu.memory_space<vmem>>, vector<1x32x96xf32>
    %194 = vector.shape_cast %193 : vector<1x32x96xf32> to vector<32x96xf32>
    %cst_85 = arith.constant dense<0.000000e+00> : vector<8x96xf32>
    %195 = tpu.matmul %191, %194, %cst_85 {dimension_numbers = #tpu.dot_dimension_numbers<[1], [0], [0], [1], [0, 0, 1, 1], [], []>} : vector<8x32xf32>, vector<32x96xf32>, vector<8x96xf32> -> vector<8x96xf32>
    %c0_86 = arith.constant 0 : index
    %c0_87 = arith.constant 0 : index
    %c0_88 = arith.constant 0 : index
    %196 = vector.load %arg18[%c0_86, %c0_87, %c0_88] : memref<3x1x96xf32, #tpu.memory_space<vmem>>, vector<1x1x96xf32>
    %197 = vector.shape_cast %196 : vector<1x1x96xf32> to vector<1x96xf32>
    %198 = vector.broadcast %197 : vector<1x96xf32> to vector<8x96xf32>
    %199 = arith.addf %195, %198 : vector<8x96xf32>
    %200 = vector.extract_strided_slice %199 {offsets = [0, 0], sizes = [8, 32], strides = [1, 1]} : vector<8x96xf32> to vector<8x32xf32>
    %201 = vector.extract_strided_slice %199 {offsets = [0, 32], sizes = [8, 32], strides = [1, 1]} : vector<8x96xf32> to vector<8x32xf32>
    %202 = vector.extract_strided_slice %199 {offsets = [0, 64], sizes = [8, 32], strides = [1, 1]} : vector<8x96xf32> to vector<8x32xf32>
    %cst_89 = arith.constant 0.000000e+00 : f32
    %203 = vector.broadcast %cst_89 : f32 to vector<8x32xf32>
    %204 = vector.extract_strided_slice %143 {offsets = [0, 0], sizes = [8, 32], strides = [1, 1]} : vector<8x288xf32> to vector<8x32xf32>
    %205 = vector.extract_strided_slice %143 {offsets = [0, 32], sizes = [8, 32], strides = [1, 1]} : vector<8x288xf32> to vector<8x32xf32>
    %206 = arith.mulf %204, %205 : vector<8x32xf32>
    %207 = arith.addf %203, %206 : vector<8x32xf32>
    %208 = vector.extract_strided_slice %143 {offsets = [0, 96], sizes = [8, 32], strides = [1, 1]} : vector<8x288xf32> to vector<8x32xf32>
    %209 = vector.extract_strided_slice %143 {offsets = [0, 128], sizes = [8, 32], strides = [1, 1]} : vector<8x288xf32> to vector<8x32xf32>
    %210 = arith.mulf %208, %209 : vector<8x32xf32>
    %211 = arith.addf %207, %210 : vector<8x32xf32>
    %212 = vector.extract_strided_slice %143 {offsets = [0, 192], sizes = [8, 32], strides = [1, 1]} : vector<8x288xf32> to vector<8x32xf32>
    %213 = vector.extract_strided_slice %143 {offsets = [0, 224], sizes = [8, 32], strides = [1, 1]} : vector<8x288xf32> to vector<8x32xf32>
    %214 = arith.mulf %212, %213 : vector<8x32xf32>
    %215 = arith.addf %211, %214 : vector<8x32xf32>
    %216 = vector.extract_strided_slice %143 {offsets = [0, 64], sizes = [8, 32], strides = [1, 1]} : vector<8x288xf32> to vector<8x32xf32>
    %217 = arith.mulf %216, %200 : vector<8x32xf32>
    %218 = vector.extract_strided_slice %192 {offsets = [0, 0], sizes = [8, 32], strides = [1, 1]} : vector<8x96xf32> to vector<8x32xf32>
    %219 = arith.addf %217, %218 : vector<8x32xf32>
    %220 = vector.extract_strided_slice %143 {offsets = [0, 160], sizes = [8, 32], strides = [1, 1]} : vector<8x288xf32> to vector<8x32xf32>
    %221 = arith.mulf %220, %200 : vector<8x32xf32>
    %222 = vector.extract_strided_slice %192 {offsets = [0, 32], sizes = [8, 32], strides = [1, 1]} : vector<8x96xf32> to vector<8x32xf32>
    %223 = arith.addf %221, %222 : vector<8x32xf32>
    %224 = vector.extract_strided_slice %143 {offsets = [0, 256], sizes = [8, 32], strides = [1, 1]} : vector<8x288xf32> to vector<8x32xf32>
    %225 = arith.mulf %224, %200 : vector<8x32xf32>
    %226 = vector.extract_strided_slice %192 {offsets = [0, 64], sizes = [8, 32], strides = [1, 1]} : vector<8x96xf32> to vector<8x32xf32>
    %227 = arith.addf %225, %226 : vector<8x32xf32>
    %228 = tpu.concatenate %219, %223, %227 in 1 : vector<8x32xf32>, vector<8x32xf32>, vector<8x32xf32> -> vector<8x96xf32>
    %229 = arith.mulf %215, %201 : vector<8x32xf32>
    %230 = arith.addf %15, %229 : vector<8x32xf32>
    %231 = arith.addf %230, %202 : vector<8x32xf32>
    %232 = arith.addf %107, %228 : vector<8x96xf32>
    %cst_90 = arith.constant dense<0.000000e+00> : vector<8xf32>
    %233 = vector.multi_reduction <add>, %231, %cst_90 [1] : vector<8x32xf32> to vector<8xf32>
    %234 = vector.shape_cast %233 : vector<8xf32> to vector<8x1xf32>
    %cst_91 = arith.constant 3.200000e+01 : f32
    %235 = vector.broadcast %cst_91 : f32 to vector<8x1xf32>
    %236 = arith.divf %234, %235 : vector<8x1xf32>
    %237 = vector.broadcast %236 : vector<8x1xf32> to vector<8x32xf32>
    %238 = arith.subf %231, %237 : vector<8x32xf32>
    %239 = arith.mulf %238, %238 : vector<8x32xf32>
    %cst_92 = arith.constant dense<0.000000e+00> : vector<8xf32>
    %240 = vector.multi_reduction <add>, %239, %cst_92 [1] : vector<8x32xf32> to vector<8xf32>
    %241 = vector.shape_cast %240 : vector<8xf32> to vector<8x1xf32>
    %cst_93 = arith.constant 3.200000e+01 : f32
    %242 = vector.broadcast %cst_93 : f32 to vector<8x1xf32>
    %243 = arith.divf %241, %242 : vector<8x1xf32>
    %cst_94 = arith.constant 9.99999974E-6 : f32
    %244 = vector.broadcast %cst_94 : f32 to vector<8x1xf32>
    %245 = arith.addf %243, %244 : vector<8x1xf32>
    %246 = math.rsqrt %245 : vector<8x1xf32>
    %247 = vector.broadcast %246 : vector<8x1xf32> to vector<8x32xf32>
    %248 = arith.mulf %238, %247 : vector<8x32xf32>
    %c1 = arith.constant 1 : index
    %c0_95 = arith.constant 0 : index
    %c0_96 = arith.constant 0 : index
    %249 = vector.load %arg12[%c1, %c0_95, %c0_96] : memref<3x1x32xf32, #tpu.memory_space<vmem>>, vector<1x1x32xf32>
    %250 = vector.shape_cast %249 : vector<1x1x32xf32> to vector<1x32xf32>
    %251 = vector.broadcast %250 : vector<1x32xf32> to vector<8x32xf32>
    %252 = arith.mulf %248, %251 : vector<8x32xf32>
    %c1_97 = arith.constant 1 : index
    %c0_98 = arith.constant 0 : index
    %c0_99 = arith.constant 0 : index
    %253 = vector.load %arg13[%c1_97, %c0_98, %c0_99] : memref<3x1x32xf32, #tpu.memory_space<vmem>>, vector<1x1x32xf32>
    %254 = vector.shape_cast %253 : vector<1x1x32xf32> to vector<1x32xf32>
    %255 = vector.broadcast %254 : vector<1x32xf32> to vector<8x32xf32>
    %256 = arith.addf %252, %255 : vector<8x32xf32>
    %c1_100 = arith.constant 1 : index
    %c0_101 = arith.constant 0 : index
    %c0_102 = arith.constant 0 : index
    %257 = vector.load %arg14[%c1_100, %c0_101, %c0_102] : memref<3x32x160xf32, #tpu.memory_space<vmem>>, vector<1x32x160xf32>
    %258 = vector.shape_cast %257 : vector<1x32x160xf32> to vector<32x160xf32>
    %cst_103 = arith.constant dense<0.000000e+00> : vector<8x160xf32>
    %259 = tpu.matmul %256, %258, %cst_103 {dimension_numbers = #tpu.dot_dimension_numbers<[1], [0], [0], [1], [0, 0, 1, 1], [], []>} : vector<8x32xf32>, vector<32x160xf32>, vector<8x160xf32> -> vector<8x160xf32>
    %c1_104 = arith.constant 1 : index
    %c0_105 = arith.constant 0 : index
    %c0_106 = arith.constant 0 : index
    %260 = vector.load %arg15[%c1_104, %c0_105, %c0_106] : memref<3x1x160xf32, #tpu.memory_space<vmem>>, vector<1x1x160xf32>
    %261 = vector.shape_cast %260 : vector<1x1x160xf32> to vector<1x160xf32>
    %262 = vector.broadcast %261 : vector<1x160xf32> to vector<8x160xf32>
    %263 = arith.addf %259, %262 : vector<8x160xf32>
    %264 = vector.extract_strided_slice %263 {offsets = [0, 0], sizes = [8, 32], strides = [1, 1]} : vector<8x160xf32> to vector<8x32xf32>
    %265 = vector.extract_strided_slice %263 {offsets = [0, 32], sizes = [8, 128], strides = [1, 1]} : vector<8x160xf32> to vector<8x128xf32>
    %c1_107 = arith.constant 1 : index
    %c0_108 = arith.constant 0 : index
    %c0_109 = arith.constant 0 : index
    %266 = vector.load %arg16[%c1_107, %c0_108, %c0_109] : memref<3x96x288xf32, #tpu.memory_space<vmem>>, vector<1x96x288xf32>
    %267 = vector.shape_cast %266 : vector<1x96x288xf32> to vector<96x288xf32>
    %cst_110 = arith.constant dense<0.000000e+00> : vector<8x288xf32>
    %268 = tpu.matmul %232, %267, %cst_110 {dimension_numbers = #tpu.dot_dimension_numbers<[1], [0], [0], [1], [0, 0, 1, 1], [], []>} : vector<8x96xf32>, vector<96x288xf32>, vector<8x288xf32> -> vector<8x288xf32>
    %269 = vector.extract_strided_slice %104 {offsets = [0, 128], sizes = [24, 128], strides = [1, 1]} : vector<24x384xf32> to vector<24x128xf32>
    %270 = vector.extract_strided_slice %269 {offsets = [0, 0], sizes = [24, 32], strides = [1, 1]} : vector<24x128xf32> to vector<24x32xf32>
    %271 = vector.extract_strided_slice %269 {offsets = [0, 32], sizes = [24, 96], strides = [1, 1]} : vector<24x128xf32> to vector<24x96xf32>
    %cst_111 = arith.constant dense<0.000000e+00> : vector<24x32xf32>
    %272 = tpu.matmul %31, %264, %cst_111 {dimension_numbers = #tpu.dot_dimension_numbers<[1], [0], [0], [1], [0, 0, 1, 1], [], []>} : vector<24x8xf32>, vector<8x32xf32>, vector<24x32xf32> -> vector<24x32xf32>
    %cst_112 = arith.constant dense<0.000000e+00> : vector<24x128xf32>
    %273 = tpu.matmul %26, %265, %cst_112 {dimension_numbers = #tpu.dot_dimension_numbers<[1], [0], [0], [1], [0, 0, 1, 1], [], []>} : vector<24x8xf32>, vector<8x128xf32>, vector<24x128xf32> -> vector<24x128xf32>
    %274 = vector.extract_strided_slice %273 {offsets = [0, 0], sizes = [24, 32], strides = [1, 1]} : vector<24x128xf32> to vector<24x32xf32>
    %275 = vector.extract_strided_slice %273 {offsets = [0, 32], sizes = [24, 96], strides = [1, 1]} : vector<24x128xf32> to vector<24x96xf32>
    %cst_113 = arith.constant dense<0.000000e+00> : vector<24x96xf32>
    %276 = tpu.matmul %26, %232, %cst_113 {dimension_numbers = #tpu.dot_dimension_numbers<[1], [0], [0], [1], [0, 0, 1, 1], [], []>} : vector<24x8xf32>, vector<8x96xf32>, vector<24x96xf32> -> vector<24x96xf32>
    %277 = arith.mulf %272, %274 : vector<24x32xf32>
    %278 = arith.mulf %277, %270 : vector<24x32xf32>
    %cst_114 = arith.constant dense<0.000000e+00> : vector<24x8xf32>
    %279 = tpu.matmul %278, %105, %cst_114 {dimension_numbers = #tpu.dot_dimension_numbers<[1], [0], [0], [1], [0, 0, 1, 1], [], []>} : vector<24x32xf32>, vector<32x8xf32>, vector<24x8xf32> -> vector<24x8xf32>
    %280 = arith.negf %279 : vector<24x8xf32>
    %281 = math.exp %280 : vector<24x8xf32>
    %cst_115 = arith.constant 1.000000e+00 : f32
    %282 = vector.broadcast %cst_115 : f32 to vector<24x8xf32>
    %283 = arith.addf %282, %281 : vector<24x8xf32>
    %284 = arith.divf %282, %283 : vector<24x8xf32>
    %285 = arith.mulf %279, %284 : vector<24x8xf32>
    %286 = vector.broadcast %68 : vector<24x1xf32> to vector<24x8xf32>
    %287 = arith.mulf %285, %286 : vector<24x8xf32>
    %cst_116 = arith.constant dense<0.000000e+00> : vector<24x32xf32>
    %288 = tpu.matmul %287, %106, %cst_116 {dimension_numbers = #tpu.dot_dimension_numbers<[1], [0], [0], [1], [0, 0, 1, 1], [], []>} : vector<24x8xf32>, vector<8x32xf32>, vector<24x32xf32> -> vector<24x32xf32>
    %289 = arith.mulf %275, %271 : vector<24x96xf32>
    %290 = vector.extract_strided_slice %289 {offsets = [0, 0], sizes = [24, 32], strides = [1, 1]} : vector<24x96xf32> to vector<24x32xf32>
    %291 = vector.extract_strided_slice %289 {offsets = [0, 32], sizes = [24, 32], strides = [1, 1]} : vector<24x96xf32> to vector<24x32xf32>
    %292 = vector.extract_strided_slice %289 {offsets = [0, 64], sizes = [24, 32], strides = [1, 1]} : vector<24x96xf32> to vector<24x32xf32>
    %293 = arith.mulf %290, %288 : vector<24x32xf32>
    %294 = vector.extract_strided_slice %276 {offsets = [0, 0], sizes = [24, 32], strides = [1, 1]} : vector<24x96xf32> to vector<24x32xf32>
    %295 = arith.mulf %294, %291 : vector<24x32xf32>
    %296 = vector.extract_strided_slice %56 {offsets = [0, 0], sizes = [24, 1], strides = [1, 1]} : vector<24x3xf32> to vector<24x1xf32>
    %297 = vector.broadcast %296 : vector<24x1xf32> to vector<24x32xf32>
    %298 = arith.mulf %292, %297 : vector<24x32xf32>
    %299 = arith.addf %295, %298 : vector<24x32xf32>
    %300 = vector.extract_strided_slice %276 {offsets = [0, 32], sizes = [24, 32], strides = [1, 1]} : vector<24x96xf32> to vector<24x32xf32>
    %301 = arith.mulf %300, %291 : vector<24x32xf32>
    %302 = vector.extract_strided_slice %56 {offsets = [0, 1], sizes = [24, 1], strides = [1, 1]} : vector<24x3xf32> to vector<24x1xf32>
    %303 = vector.broadcast %302 : vector<24x1xf32> to vector<24x32xf32>
    %304 = arith.mulf %292, %303 : vector<24x32xf32>
    %305 = arith.addf %301, %304 : vector<24x32xf32>
    %306 = vector.extract_strided_slice %276 {offsets = [0, 64], sizes = [24, 32], strides = [1, 1]} : vector<24x96xf32> to vector<24x32xf32>
    %307 = arith.mulf %306, %291 : vector<24x32xf32>
    %308 = vector.extract_strided_slice %56 {offsets = [0, 2], sizes = [24, 1], strides = [1, 1]} : vector<24x3xf32> to vector<24x1xf32>
    %309 = vector.broadcast %308 : vector<24x1xf32> to vector<24x32xf32>
    %310 = arith.mulf %292, %309 : vector<24x32xf32>
    %311 = arith.addf %307, %310 : vector<24x32xf32>
    %312 = tpu.concatenate %293, %299, %305, %311 in 1 : vector<24x32xf32>, vector<24x32xf32>, vector<24x32xf32>, vector<24x32xf32> -> vector<24x128xf32>
    %313 = vector.broadcast %50 : vector<24x1xf32> to vector<24x128xf32>
    %314 = arith.mulf %312, %313 : vector<24x128xf32>
    %cst_117 = arith.constant dense<0.000000e+00> : vector<8x128xf32>
    %315 = tpu.matmul %37, %314, %cst_117 {dimension_numbers = #tpu.dot_dimension_numbers<[1], [0], [0], [1], [0, 0, 1, 1], [], []>} : vector<8x24xf32>, vector<24x128xf32>, vector<8x128xf32> -> vector<8x128xf32>
    %316 = vector.extract_strided_slice %315 {offsets = [0, 0], sizes = [8, 32], strides = [1, 1]} : vector<8x128xf32> to vector<8x32xf32>
    %317 = vector.extract_strided_slice %315 {offsets = [0, 32], sizes = [8, 96], strides = [1, 1]} : vector<8x128xf32> to vector<8x96xf32>
    %c1_118 = arith.constant 1 : index
    %c0_119 = arith.constant 0 : index
    %c0_120 = arith.constant 0 : index
    %318 = vector.load %arg17[%c1_118, %c0_119, %c0_120] : memref<3x32x96xf32, #tpu.memory_space<vmem>>, vector<1x32x96xf32>
    %319 = vector.shape_cast %318 : vector<1x32x96xf32> to vector<32x96xf32>
    %cst_121 = arith.constant dense<0.000000e+00> : vector<8x96xf32>
    %320 = tpu.matmul %316, %319, %cst_121 {dimension_numbers = #tpu.dot_dimension_numbers<[1], [0], [0], [1], [0, 0, 1, 1], [], []>} : vector<8x32xf32>, vector<32x96xf32>, vector<8x96xf32> -> vector<8x96xf32>
    %c1_122 = arith.constant 1 : index
    %c0_123 = arith.constant 0 : index
    %c0_124 = arith.constant 0 : index
    %321 = vector.load %arg18[%c1_122, %c0_123, %c0_124] : memref<3x1x96xf32, #tpu.memory_space<vmem>>, vector<1x1x96xf32>
    %322 = vector.shape_cast %321 : vector<1x1x96xf32> to vector<1x96xf32>
    %323 = vector.broadcast %322 : vector<1x96xf32> to vector<8x96xf32>
    %324 = arith.addf %320, %323 : vector<8x96xf32>
    %325 = vector.extract_strided_slice %324 {offsets = [0, 0], sizes = [8, 32], strides = [1, 1]} : vector<8x96xf32> to vector<8x32xf32>
    %326 = vector.extract_strided_slice %324 {offsets = [0, 32], sizes = [8, 32], strides = [1, 1]} : vector<8x96xf32> to vector<8x32xf32>
    %327 = vector.extract_strided_slice %324 {offsets = [0, 64], sizes = [8, 32], strides = [1, 1]} : vector<8x96xf32> to vector<8x32xf32>
    %cst_125 = arith.constant 0.000000e+00 : f32
    %328 = vector.broadcast %cst_125 : f32 to vector<8x32xf32>
    %329 = vector.extract_strided_slice %268 {offsets = [0, 0], sizes = [8, 32], strides = [1, 1]} : vector<8x288xf32> to vector<8x32xf32>
    %330 = vector.extract_strided_slice %268 {offsets = [0, 32], sizes = [8, 32], strides = [1, 1]} : vector<8x288xf32> to vector<8x32xf32>
    %331 = arith.mulf %329, %330 : vector<8x32xf32>
    %332 = arith.addf %328, %331 : vector<8x32xf32>
    %333 = vector.extract_strided_slice %268 {offsets = [0, 96], sizes = [8, 32], strides = [1, 1]} : vector<8x288xf32> to vector<8x32xf32>
    %334 = vector.extract_strided_slice %268 {offsets = [0, 128], sizes = [8, 32], strides = [1, 1]} : vector<8x288xf32> to vector<8x32xf32>
    %335 = arith.mulf %333, %334 : vector<8x32xf32>
    %336 = arith.addf %332, %335 : vector<8x32xf32>
    %337 = vector.extract_strided_slice %268 {offsets = [0, 192], sizes = [8, 32], strides = [1, 1]} : vector<8x288xf32> to vector<8x32xf32>
    %338 = vector.extract_strided_slice %268 {offsets = [0, 224], sizes = [8, 32], strides = [1, 1]} : vector<8x288xf32> to vector<8x32xf32>
    %339 = arith.mulf %337, %338 : vector<8x32xf32>
    %340 = arith.addf %336, %339 : vector<8x32xf32>
    %341 = vector.extract_strided_slice %268 {offsets = [0, 64], sizes = [8, 32], strides = [1, 1]} : vector<8x288xf32> to vector<8x32xf32>
    %342 = arith.mulf %341, %325 : vector<8x32xf32>
    %343 = vector.extract_strided_slice %317 {offsets = [0, 0], sizes = [8, 32], strides = [1, 1]} : vector<8x96xf32> to vector<8x32xf32>
    %344 = arith.addf %342, %343 : vector<8x32xf32>
    %345 = vector.extract_strided_slice %268 {offsets = [0, 160], sizes = [8, 32], strides = [1, 1]} : vector<8x288xf32> to vector<8x32xf32>
    %346 = arith.mulf %345, %325 : vector<8x32xf32>
    %347 = vector.extract_strided_slice %317 {offsets = [0, 32], sizes = [8, 32], strides = [1, 1]} : vector<8x96xf32> to vector<8x32xf32>
    %348 = arith.addf %346, %347 : vector<8x32xf32>
    %349 = vector.extract_strided_slice %268 {offsets = [0, 256], sizes = [8, 32], strides = [1, 1]} : vector<8x288xf32> to vector<8x32xf32>
    %350 = arith.mulf %349, %325 : vector<8x32xf32>
    %351 = vector.extract_strided_slice %317 {offsets = [0, 64], sizes = [8, 32], strides = [1, 1]} : vector<8x96xf32> to vector<8x32xf32>
    %352 = arith.addf %350, %351 : vector<8x32xf32>
    %353 = tpu.concatenate %344, %348, %352 in 1 : vector<8x32xf32>, vector<8x32xf32>, vector<8x32xf32> -> vector<8x96xf32>
    %354 = arith.mulf %340, %326 : vector<8x32xf32>
    %355 = arith.addf %231, %354 : vector<8x32xf32>
    %356 = arith.addf %355, %327 : vector<8x32xf32>
    %357 = arith.addf %232, %353 : vector<8x96xf32>
    %cst_126 = arith.constant dense<0.000000e+00> : vector<8xf32>
    %358 = vector.multi_reduction <add>, %356, %cst_126 [1] : vector<8x32xf32> to vector<8xf32>
    %359 = vector.shape_cast %358 : vector<8xf32> to vector<8x1xf32>
    %cst_127 = arith.constant 3.200000e+01 : f32
    %360 = vector.broadcast %cst_127 : f32 to vector<8x1xf32>
    %361 = arith.divf %359, %360 : vector<8x1xf32>
    %362 = vector.broadcast %361 : vector<8x1xf32> to vector<8x32xf32>
    %363 = arith.subf %356, %362 : vector<8x32xf32>
    %364 = arith.mulf %363, %363 : vector<8x32xf32>
    %cst_128 = arith.constant dense<0.000000e+00> : vector<8xf32>
    %365 = vector.multi_reduction <add>, %364, %cst_128 [1] : vector<8x32xf32> to vector<8xf32>
    %366 = vector.shape_cast %365 : vector<8xf32> to vector<8x1xf32>
    %cst_129 = arith.constant 3.200000e+01 : f32
    %367 = vector.broadcast %cst_129 : f32 to vector<8x1xf32>
    %368 = arith.divf %366, %367 : vector<8x1xf32>
    %cst_130 = arith.constant 9.99999974E-6 : f32
    %369 = vector.broadcast %cst_130 : f32 to vector<8x1xf32>
    %370 = arith.addf %368, %369 : vector<8x1xf32>
    %371 = math.rsqrt %370 : vector<8x1xf32>
    %372 = vector.broadcast %371 : vector<8x1xf32> to vector<8x32xf32>
    %373 = arith.mulf %363, %372 : vector<8x32xf32>
    %c2 = arith.constant 2 : index
    %c0_131 = arith.constant 0 : index
    %c0_132 = arith.constant 0 : index
    %374 = vector.load %arg12[%c2, %c0_131, %c0_132] : memref<3x1x32xf32, #tpu.memory_space<vmem>>, vector<1x1x32xf32>
    %375 = vector.shape_cast %374 : vector<1x1x32xf32> to vector<1x32xf32>
    %376 = vector.broadcast %375 : vector<1x32xf32> to vector<8x32xf32>
    %377 = arith.mulf %373, %376 : vector<8x32xf32>
    %c2_133 = arith.constant 2 : index
    %c0_134 = arith.constant 0 : index
    %c0_135 = arith.constant 0 : index
    %378 = vector.load %arg13[%c2_133, %c0_134, %c0_135] : memref<3x1x32xf32, #tpu.memory_space<vmem>>, vector<1x1x32xf32>
    %379 = vector.shape_cast %378 : vector<1x1x32xf32> to vector<1x32xf32>
    %380 = vector.broadcast %379 : vector<1x32xf32> to vector<8x32xf32>
    %381 = arith.addf %377, %380 : vector<8x32xf32>
    %c2_136 = arith.constant 2 : index
    %c0_137 = arith.constant 0 : index
    %c0_138 = arith.constant 0 : index
    %382 = vector.load %arg14[%c2_136, %c0_137, %c0_138] : memref<3x32x160xf32, #tpu.memory_space<vmem>>, vector<1x32x160xf32>
    %383 = vector.shape_cast %382 : vector<1x32x160xf32> to vector<32x160xf32>
    %cst_139 = arith.constant dense<0.000000e+00> : vector<8x160xf32>
    %384 = tpu.matmul %381, %383, %cst_139 {dimension_numbers = #tpu.dot_dimension_numbers<[1], [0], [0], [1], [0, 0, 1, 1], [], []>} : vector<8x32xf32>, vector<32x160xf32>, vector<8x160xf32> -> vector<8x160xf32>
    %c2_140 = arith.constant 2 : index
    %c0_141 = arith.constant 0 : index
    %c0_142 = arith.constant 0 : index
    %385 = vector.load %arg15[%c2_140, %c0_141, %c0_142] : memref<3x1x160xf32, #tpu.memory_space<vmem>>, vector<1x1x160xf32>
    %386 = vector.shape_cast %385 : vector<1x1x160xf32> to vector<1x160xf32>
    %387 = vector.broadcast %386 : vector<1x160xf32> to vector<8x160xf32>
    %388 = arith.addf %384, %387 : vector<8x160xf32>
    %389 = vector.extract_strided_slice %388 {offsets = [0, 0], sizes = [8, 32], strides = [1, 1]} : vector<8x160xf32> to vector<8x32xf32>
    %390 = vector.extract_strided_slice %388 {offsets = [0, 32], sizes = [8, 128], strides = [1, 1]} : vector<8x160xf32> to vector<8x128xf32>
    %c2_143 = arith.constant 2 : index
    %c0_144 = arith.constant 0 : index
    %c0_145 = arith.constant 0 : index
    %391 = vector.load %arg16[%c2_143, %c0_144, %c0_145] : memref<3x96x288xf32, #tpu.memory_space<vmem>>, vector<1x96x288xf32>
    %392 = vector.shape_cast %391 : vector<1x96x288xf32> to vector<96x288xf32>
    %cst_146 = arith.constant dense<0.000000e+00> : vector<8x288xf32>
    %393 = tpu.matmul %357, %392, %cst_146 {dimension_numbers = #tpu.dot_dimension_numbers<[1], [0], [0], [1], [0, 0, 1, 1], [], []>} : vector<8x96xf32>, vector<96x288xf32>, vector<8x288xf32> -> vector<8x288xf32>
    %394 = vector.extract_strided_slice %104 {offsets = [0, 256], sizes = [24, 128], strides = [1, 1]} : vector<24x384xf32> to vector<24x128xf32>
    %395 = vector.extract_strided_slice %394 {offsets = [0, 0], sizes = [24, 32], strides = [1, 1]} : vector<24x128xf32> to vector<24x32xf32>
    %396 = vector.extract_strided_slice %394 {offsets = [0, 32], sizes = [24, 96], strides = [1, 1]} : vector<24x128xf32> to vector<24x96xf32>
    %cst_147 = arith.constant dense<0.000000e+00> : vector<24x32xf32>
    %397 = tpu.matmul %31, %389, %cst_147 {dimension_numbers = #tpu.dot_dimension_numbers<[1], [0], [0], [1], [0, 0, 1, 1], [], []>} : vector<24x8xf32>, vector<8x32xf32>, vector<24x32xf32> -> vector<24x32xf32>
    %cst_148 = arith.constant dense<0.000000e+00> : vector<24x128xf32>
    %398 = tpu.matmul %26, %390, %cst_148 {dimension_numbers = #tpu.dot_dimension_numbers<[1], [0], [0], [1], [0, 0, 1, 1], [], []>} : vector<24x8xf32>, vector<8x128xf32>, vector<24x128xf32> -> vector<24x128xf32>
    %399 = vector.extract_strided_slice %398 {offsets = [0, 0], sizes = [24, 32], strides = [1, 1]} : vector<24x128xf32> to vector<24x32xf32>
    %400 = vector.extract_strided_slice %398 {offsets = [0, 32], sizes = [24, 96], strides = [1, 1]} : vector<24x128xf32> to vector<24x96xf32>
    %cst_149 = arith.constant dense<0.000000e+00> : vector<24x96xf32>
    %401 = tpu.matmul %26, %357, %cst_149 {dimension_numbers = #tpu.dot_dimension_numbers<[1], [0], [0], [1], [0, 0, 1, 1], [], []>} : vector<24x8xf32>, vector<8x96xf32>, vector<24x96xf32> -> vector<24x96xf32>
    %402 = arith.mulf %397, %399 : vector<24x32xf32>
    %403 = arith.mulf %402, %395 : vector<24x32xf32>
    %cst_150 = arith.constant dense<0.000000e+00> : vector<24x8xf32>
    %404 = tpu.matmul %403, %105, %cst_150 {dimension_numbers = #tpu.dot_dimension_numbers<[1], [0], [0], [1], [0, 0, 1, 1], [], []>} : vector<24x32xf32>, vector<32x8xf32>, vector<24x8xf32> -> vector<24x8xf32>
    %405 = arith.negf %404 : vector<24x8xf32>
    %406 = math.exp %405 : vector<24x8xf32>
    %cst_151 = arith.constant 1.000000e+00 : f32
    %407 = vector.broadcast %cst_151 : f32 to vector<24x8xf32>
    %408 = arith.addf %407, %406 : vector<24x8xf32>
    %409 = arith.divf %407, %408 : vector<24x8xf32>
    %410 = arith.mulf %404, %409 : vector<24x8xf32>
    %411 = vector.broadcast %68 : vector<24x1xf32> to vector<24x8xf32>
    %412 = arith.mulf %410, %411 : vector<24x8xf32>
    %cst_152 = arith.constant dense<0.000000e+00> : vector<24x32xf32>
    %413 = tpu.matmul %412, %106, %cst_152 {dimension_numbers = #tpu.dot_dimension_numbers<[1], [0], [0], [1], [0, 0, 1, 1], [], []>} : vector<24x8xf32>, vector<8x32xf32>, vector<24x32xf32> -> vector<24x32xf32>
    %414 = arith.mulf %400, %396 : vector<24x96xf32>
    %415 = vector.extract_strided_slice %414 {offsets = [0, 0], sizes = [24, 32], strides = [1, 1]} : vector<24x96xf32> to vector<24x32xf32>
    %416 = vector.extract_strided_slice %414 {offsets = [0, 32], sizes = [24, 32], strides = [1, 1]} : vector<24x96xf32> to vector<24x32xf32>
    %417 = vector.extract_strided_slice %414 {offsets = [0, 64], sizes = [24, 32], strides = [1, 1]} : vector<24x96xf32> to vector<24x32xf32>
    %418 = arith.mulf %415, %413 : vector<24x32xf32>
    %419 = vector.extract_strided_slice %401 {offsets = [0, 0], sizes = [24, 32], strides = [1, 1]} : vector<24x96xf32> to vector<24x32xf32>
    %420 = arith.mulf %419, %416 : vector<24x32xf32>
    %421 = vector.extract_strided_slice %56 {offsets = [0, 0], sizes = [24, 1], strides = [1, 1]} : vector<24x3xf32> to vector<24x1xf32>
    %422 = vector.broadcast %421 : vector<24x1xf32> to vector<24x32xf32>
    %423 = arith.mulf %417, %422 : vector<24x32xf32>
    %424 = arith.addf %420, %423 : vector<24x32xf32>
    %425 = vector.extract_strided_slice %401 {offsets = [0, 32], sizes = [24, 32], strides = [1, 1]} : vector<24x96xf32> to vector<24x32xf32>
    %426 = arith.mulf %425, %416 : vector<24x32xf32>
    %427 = vector.extract_strided_slice %56 {offsets = [0, 1], sizes = [24, 1], strides = [1, 1]} : vector<24x3xf32> to vector<24x1xf32>
    %428 = vector.broadcast %427 : vector<24x1xf32> to vector<24x32xf32>
    %429 = arith.mulf %417, %428 : vector<24x32xf32>
    %430 = arith.addf %426, %429 : vector<24x32xf32>
    %431 = vector.extract_strided_slice %401 {offsets = [0, 64], sizes = [24, 32], strides = [1, 1]} : vector<24x96xf32> to vector<24x32xf32>
    %432 = arith.mulf %431, %416 : vector<24x32xf32>
    %433 = vector.extract_strided_slice %56 {offsets = [0, 2], sizes = [24, 1], strides = [1, 1]} : vector<24x3xf32> to vector<24x1xf32>
    %434 = vector.broadcast %433 : vector<24x1xf32> to vector<24x32xf32>
    %435 = arith.mulf %417, %434 : vector<24x32xf32>
    %436 = arith.addf %432, %435 : vector<24x32xf32>
    %437 = tpu.concatenate %418, %424, %430, %436 in 1 : vector<24x32xf32>, vector<24x32xf32>, vector<24x32xf32>, vector<24x32xf32> -> vector<24x128xf32>
    %438 = vector.broadcast %50 : vector<24x1xf32> to vector<24x128xf32>
    %439 = arith.mulf %437, %438 : vector<24x128xf32>
    %cst_153 = arith.constant dense<0.000000e+00> : vector<8x128xf32>
    %440 = tpu.matmul %37, %439, %cst_153 {dimension_numbers = #tpu.dot_dimension_numbers<[1], [0], [0], [1], [0, 0, 1, 1], [], []>} : vector<8x24xf32>, vector<24x128xf32>, vector<8x128xf32> -> vector<8x128xf32>
    %441 = vector.extract_strided_slice %440 {offsets = [0, 0], sizes = [8, 32], strides = [1, 1]} : vector<8x128xf32> to vector<8x32xf32>
    %c2_154 = arith.constant 2 : index
    %c0_155 = arith.constant 0 : index
    %c0_156 = arith.constant 0 : index
    %442 = vector.load %arg17[%c2_154, %c0_155, %c0_156] : memref<3x32x96xf32, #tpu.memory_space<vmem>>, vector<1x32x96xf32>
    %443 = vector.shape_cast %442 : vector<1x32x96xf32> to vector<32x96xf32>
    %cst_157 = arith.constant dense<0.000000e+00> : vector<8x96xf32>
    %444 = tpu.matmul %441, %443, %cst_157 {dimension_numbers = #tpu.dot_dimension_numbers<[1], [0], [0], [1], [0, 0, 1, 1], [], []>} : vector<8x32xf32>, vector<32x96xf32>, vector<8x96xf32> -> vector<8x96xf32>
    %c2_158 = arith.constant 2 : index
    %c0_159 = arith.constant 0 : index
    %c0_160 = arith.constant 0 : index
    %445 = vector.load %arg18[%c2_158, %c0_159, %c0_160] : memref<3x1x96xf32, #tpu.memory_space<vmem>>, vector<1x1x96xf32>
    %446 = vector.shape_cast %445 : vector<1x1x96xf32> to vector<1x96xf32>
    %447 = vector.broadcast %446 : vector<1x96xf32> to vector<8x96xf32>
    %448 = arith.addf %444, %447 : vector<8x96xf32>
    %449 = vector.extract_strided_slice %448 {offsets = [0, 32], sizes = [8, 32], strides = [1, 1]} : vector<8x96xf32> to vector<8x32xf32>
    %450 = vector.extract_strided_slice %448 {offsets = [0, 64], sizes = [8, 32], strides = [1, 1]} : vector<8x96xf32> to vector<8x32xf32>
    %cst_161 = arith.constant 0.000000e+00 : f32
    %451 = vector.broadcast %cst_161 : f32 to vector<8x32xf32>
    %452 = vector.extract_strided_slice %393 {offsets = [0, 0], sizes = [8, 32], strides = [1, 1]} : vector<8x288xf32> to vector<8x32xf32>
    %453 = vector.extract_strided_slice %393 {offsets = [0, 32], sizes = [8, 32], strides = [1, 1]} : vector<8x288xf32> to vector<8x32xf32>
    %454 = arith.mulf %452, %453 : vector<8x32xf32>
    %455 = arith.addf %451, %454 : vector<8x32xf32>
    %456 = vector.extract_strided_slice %393 {offsets = [0, 96], sizes = [8, 32], strides = [1, 1]} : vector<8x288xf32> to vector<8x32xf32>
    %457 = vector.extract_strided_slice %393 {offsets = [0, 128], sizes = [8, 32], strides = [1, 1]} : vector<8x288xf32> to vector<8x32xf32>
    %458 = arith.mulf %456, %457 : vector<8x32xf32>
    %459 = arith.addf %455, %458 : vector<8x32xf32>
    %460 = vector.extract_strided_slice %393 {offsets = [0, 192], sizes = [8, 32], strides = [1, 1]} : vector<8x288xf32> to vector<8x32xf32>
    %461 = vector.extract_strided_slice %393 {offsets = [0, 224], sizes = [8, 32], strides = [1, 1]} : vector<8x288xf32> to vector<8x32xf32>
    %462 = arith.mulf %460, %461 : vector<8x32xf32>
    %463 = arith.addf %459, %462 : vector<8x32xf32>
    %464 = arith.mulf %463, %449 : vector<8x32xf32>
    %465 = arith.addf %356, %464 : vector<8x32xf32>
    %466 = arith.addf %465, %450 : vector<8x32xf32>
    %cst_162 = arith.constant dense<0.000000e+00> : vector<8xf32>
    %467 = vector.multi_reduction <add>, %466, %cst_162 [1] : vector<8x32xf32> to vector<8xf32>
    %468 = vector.shape_cast %467 : vector<8xf32> to vector<8x1xf32>
    %cst_163 = arith.constant 3.200000e+01 : f32
    %469 = vector.broadcast %cst_163 : f32 to vector<8x1xf32>
    %470 = arith.divf %468, %469 : vector<8x1xf32>
    %471 = vector.broadcast %470 : vector<8x1xf32> to vector<8x32xf32>
    %472 = arith.subf %466, %471 : vector<8x32xf32>
    %473 = arith.mulf %472, %472 : vector<8x32xf32>
    %cst_164 = arith.constant dense<0.000000e+00> : vector<8xf32>
    %474 = vector.multi_reduction <add>, %473, %cst_164 [1] : vector<8x32xf32> to vector<8xf32>
    %475 = vector.shape_cast %474 : vector<8xf32> to vector<8x1xf32>
    %cst_165 = arith.constant 3.200000e+01 : f32
    %476 = vector.broadcast %cst_165 : f32 to vector<8x1xf32>
    %477 = arith.divf %475, %476 : vector<8x1xf32>
    %cst_166 = arith.constant 9.99999974E-6 : f32
    %478 = vector.broadcast %cst_166 : f32 to vector<8x1xf32>
    %479 = arith.addf %477, %478 : vector<8x1xf32>
    %480 = math.rsqrt %479 : vector<8x1xf32>
    %481 = vector.broadcast %480 : vector<8x1xf32> to vector<8x32xf32>
    %482 = arith.mulf %472, %481 : vector<8x32xf32>
    %c0_167 = arith.constant 0 : index
    %c0_168 = arith.constant 0 : index
    %483 = vector.load %arg21[%c0_167, %c0_168] : memref<1x32xf32, #tpu.memory_space<vmem>>, vector<1x32xf32>
    %484 = vector.broadcast %483 : vector<1x32xf32> to vector<8x32xf32>
    %485 = arith.mulf %482, %484 : vector<8x32xf32>
    %c0_169 = arith.constant 0 : index
    %c0_170 = arith.constant 0 : index
    %486 = vector.load %arg22[%c0_169, %c0_170] : memref<1x32xf32, #tpu.memory_space<vmem>>, vector<1x32xf32>
    %487 = vector.broadcast %486 : vector<1x32xf32> to vector<8x32xf32>
    %488 = arith.addf %485, %487 : vector<8x32xf32>
    %489 = arith.mulf %488, %488 : vector<8x32xf32>
    %cst_171 = arith.constant dense<0.000000e+00> : vector<8xf32>
    %490 = vector.multi_reduction <add>, %489, %cst_171 [1] : vector<8x32xf32> to vector<8xf32>
    %491 = vector.shape_cast %490 : vector<8xf32> to vector<8x1xf32>
    %492 = math.sqrt %491 : vector<8x1xf32>
    %cst_172 = arith.constant 9.99999996E-13 : f32
    %493 = vector.broadcast %cst_172 : f32 to vector<8x1xf32>
    %494 = arith.maximumf %492, %493 : vector<8x1xf32>
    %495 = vector.broadcast %494 : vector<8x1xf32> to vector<8x32xf32>
    %496 = arith.divf %488, %495 : vector<8x32xf32>
    %c0_173 = arith.constant 0 : index
    %c0_174 = arith.constant 0 : index
    %497 = vector.load %arg26[%c0_173, %c0_174] : memref<8x32xf32, #tpu.memory_space<vmem>>, vector<8x32xf32>
    tpu.vector_store %arg26[%c0_173, %c0_174], %496 {strides = array<i32>} : memref<8x32xf32, #tpu.memory_space<vmem>>, vector<8x32xf32>,
    %498 = tpu.iota {dimensions = array<i32: 0>} : vector<2x8xi32>
    %c0_175 = arith.constant 0 : index
    %c0_176 = arith.constant 0 : index
    %499 = vector.load %arg3[%c0_175, %c0_176] : memref<1x8xi32, #tpu.memory_space<vmem>>, vector<1x8xi32>
    %500 = vector.broadcast %499 : vector<1x8xi32> to vector<2x8xi32>
    %501 = arith.cmpi eq, %498, %500 : vector<2x8xi32>
    %502 = arith.extui %501 : vector<2x8xi1> to vector<2x8xi32>
    %503 = arith.sitofp %502 : vector<2x8xi32> to vector<2x8xf32>
    %cst_177 = arith.constant dense<0.000000e+00> : vector<2x32xf32>
    %504 = tpu.matmul %503, %496, %cst_177 {dimension_numbers = #tpu.dot_dimension_numbers<[1], [0], [0], [1], [0, 0, 1, 1], [], []>} : vector<2x8xf32>, vector<8x32xf32>, vector<2x32xf32> -> vector<2x32xf32>
    %505 = arith.mulf %504, %504 : vector<2x32xf32>
    %cst_178 = arith.constant dense<0.000000e+00> : vector<2xf32>
    %506 = vector.multi_reduction <add>, %505, %cst_178 [1] : vector<2x32xf32> to vector<2xf32>
    %507 = vector.shape_cast %506 : vector<2xf32> to vector<2x1xf32>
    %508 = math.sqrt %507 : vector<2x1xf32>
    %cst_179 = arith.constant 9.99999996E-13 : f32
    %509 = vector.broadcast %cst_179 : f32 to vector<2x1xf32>
    %510 = arith.maximumf %508, %509 : vector<2x1xf32>
    %511 = vector.broadcast %510 : vector<2x1xf32> to vector<2x32xf32>
    %512 = arith.divf %504, %511 : vector<2x32xf32>
    %c0_180 = arith.constant 0 : index
    %c0_181 = arith.constant 0 : index
    %513 = vector.load %arg27[%c0_180, %c0_181] : memref<2x32xf32, #tpu.memory_space<vmem>>, vector<2x32xf32>
    tpu.vector_store %arg27[%c0_180, %c0_181], %512 {strides = array<i32>} : memref<2x32xf32, #tpu.memory_space<vmem>>, vector<2x32xf32>,
    return
  }
}

</mosaic_0001>

<bundles_post_ra>
// kernel: torchmd_encoder_forward.1
= control target key start
LH: loop header
LB: loop body
LE: loop exit
PB: predicated region body
PF: predicated region fallthrough
CT: control target
= control target key end

     0   :  { %s8619_s0 = inlined_call_operand.hbm [shape: f32[24,32], index: 0, kind: input, shape index: {}]   ;;  %s8620_s1 = inlined_call_operand.hbm [shape: f32[24,3], index: 1, kind: input, shape index: {}]   ;;  %s8621_s2 = inlined_call_operand.hbm [shape: s32[1,24], index: 2, kind: input, shape index: {}]   ;;  %s8622_s3 = inlined_call_operand.hbm [shape: s32[1,8], index: 3, kind: input, shape index: {}]   ;;  %s8623_s4 = inlined_call_operand.hbm [shape: s32[24,1], index: 4, kind: input, shape index: {}]   ;;  %s8624_s5 = inlined_call_operand.hbm [shape: s32[24,1], index: 5, kind: input, shape index: {}]   ;;  %s8625_s6 = inlined_call_operand.hbm [shape: s32[1,24], index: 6, kind: input, shape index: {}]   ;;  %s8626_s7 = inlined_call_operand.hbm [shape: f32[24,4], index: 7, kind: input, shape index: {}]   ;;  %s8627_s8 = inlined_call_operand.hbm [shape: f32[4,64], index: 8, kind: input, shape index: {}]   ;;  %s8628_s9 = inlined_call_operand.hbm [shape: f32[1,64], index: 9, kind: input, shape index: {}]   ;;  %s8629_s10 = inlined_call_operand.hbm [shape: f32[1,64], index: 10, kind: input, shape index: {}]   ;;  %s8630_s11 = inlined_call_operand.hbm [shape: f32[1,64], index: 11, kind: input, shape index: {}]   ;;  %s8631_s12 = inlined_call_operand.hbm [shape: f32[3,1,32], index: 12, kind: input, shape index: {}]   ;;  %s8632_s13 = inlined_call_operand.hbm [shape: f32[3,1,32], index: 13, kind: input, shape index: {}]   ;;  %s8633_s14 = inlined_call_operand.hbm [shape: f32[3,32,160], index: 14, kind: input, shape index: {}]   ;;  %s8634_s15 = inlined_call_operand.hbm [shape: f32[3,1,160], index: 15, kind: input, shape index: {}]   ;;  %s8635_s16 = inlined_call_operand.hbm [shape: f32[3,96,288], index: 16, kind: input, shape index: {}]   ;;  %s8636_s17 = inlined_call_operand.hbm [shape: f32[3,32,96], index: 17, kind: input, shape index: {}]   ;;  %s8637_s18 = inlined_call_operand.hbm [shape: f32[3,1,96], index: 18, kind: input, shape index: {}]   ;;  %s8638_s19 = inlined_call_operand.hbm [shape: f32[64,384], index: 19, kind: input, shape index: {}]   ;;  %s8639_s20 = inlined_call_operand.hbm [shape: f32[1,384], index: 20, kind: input, shape index: {}]   ;;  %s8640_s21 = inlined_call_operand.hbm [shape: f32[1,32], index: 21, kind: input, shape index: {}]   ;;  %s8641_s22 = inlined_call_operand.hbm [shape: f32[1,32], index: 22, kind: input, shape index: {}]   ;;  %s8642_s23 = inlined_call_operand.hbm [shape: f32[32,8], index: 23, kind: input, shape index: {}]   ;;  %s8643_s24 = inlined_call_operand.hbm [shape: f32[8,32], index: 24, kind: input, shape index: {}]   ;;  %s8644_s25 = inlined_call_operand.hbm [shape: f32[8,32], index: 25, kind: output, shape index: {0}]   ;;  %s8645_s26 = inlined_call_operand.hbm [shape: f32[8,32], index: 26, kind: output, shape index: {1}]   ;;  %s8646_s27 = inlined_call_operand.hbm [shape: f32[2,32], index: 27, kind: output, shape index: {2}]  }
   0x1   :  { %8672 = sst [smem:[#allocation62_spill]] %s8619_s0 }
   0x2   :  { %8673 = sst [smem:[#allocation63_spill]] %s8620_s1 }
   0x3   :  { %8674 = sst [smem:[#allocation64_spill]] %s8621_s2 }
   0x4   :  { %8675 = sst [smem:[#allocation65_spill]] %s8622_s3 }
   0x5   :  { %8676 = sst [smem:[#allocation66_spill]] %s8623_s4 }
   0x6   :  { %8677 = sst [smem:[#allocation67_spill]] %s8624_s5 }
   0x7   :  { %8678 = sst [smem:[#allocation68_spill]] %s8625_s6 }
   0x8   :  { %8679 = sst [smem:[#allocation69_spill]] %s8626_s7 }
   0x9   :  { %8680 = sst [smem:[#allocation70_spill]] %s8627_s8 }
   0xa   :  { %8681 = sst [smem:[#allocation71_spill]] %s8628_s9 }
   0xb   :  { %8682 = sst [smem:[#allocation72_spill]] %s8629_s10 }
   0xc   :  { %8683 = sst [smem:[#allocation73_spill]] %s8630_s11 }
   0xd   :  { %8684 = sst [smem:[#allocation74_spill]] %s8644_s25 }
   0xe   :  { %8685 = sst [smem:[#allocation75_spill]] %s8645_s26 }
   0xf   :  { %8686 = sst [smem:[#allocation76_spill]] %s8646_s27 }
  0x10   :  { %33 = vsyncpa [#allocation3], 0 }
  0x11   :  { %34 = vsyncpa [#allocation6], 0 }
  0x12   :  { %35 = vsyncpa [#allocation9], 0 }
  0x13   :  { %36 = vsyncpa [#allocation12], 0 }
  0x14   :  { %37 = vsyncpa [#allocation15], 0 }
  0x15   :  { %38 = vsyncpa [#allocation18], 0 }
  0x16   :  { %39 = vsyncpa [#allocation21], 0 }
  0x17   :  { %40 = vsyncpa [#allocation24], 0 }
  0x18   :  { %41 = vsyncpa [#allocation27], 0 }
  0x19   :  { %42 = vsyncpa [#allocation30], 0 }
  0x1a   :  { %43 = vsyncpa [#allocation33], 0 }
  0x1b   :  { %44 = vsyncpa [#allocation36], 0 }
  0x1c   :  { %45 = vsyncpa [#allocation39], 0 }
  0x1d   :  { %46 = vsyncpa [#allocation4], 0 }
  0x1e   :  { %47 = vsyncpa [#allocation43], 0  ;;  %s6896_s7 = smov [#allocation5]   ;;  %s6897_s8 = smov [#allocation8]  }
  0x1f   :  { %s65_s4 = sshll.u32 %s6896_s7, 4  ;;  %s88_s30 = sshll.u32 %s6897_s8, 4  ;;  %s66_s4 = int_to_ptr.vmem [resolvable:$true] %s65_s4  ;;  %s7087_s30 = int_to_ptr.vmem [resolvable:$true] %s88_s30 }
  0x20   :  { %s8687_s28 = sld [smem:[#allocation63_spill]] }
  0x26   :  { %s6250_s0 = scalar_lea.hbm %s8687_s28, 384 }
  0x27   :  { %p6251_p0 = scmp.ne.s32.totalorder %s8687_s28, %s6250_s0  ;;  %p6254_p1 = scmp.lt.u32.totalorder %s6250_s0, %s8687_s28 }
  0x29   :  { %p6256_p2 = pnand %p6254_p1, %p6251_p0 }
  0x2b   :  { %6259 = shalt.err (!%p6256_p2)
}
  0x2c   :  { %s6260_s11 = scalar_lea.vmem %s66_s4, 384  ;;  %p6265_p4 = scmp.lt.s32.totalorder %s66_s4, %s66_s4 }
  0x2d   :  { %p6261_p3 = scmp.ne.s32.totalorder %s66_s4, %s6260_s11  ;;  %p6266_p5 = scmp.lt.s32.totalorder %s6260_s11, %s6260_s11 }
  0x2f   :  { %p6267_p6 = por %p6266_p5, %p6265_p4 }
  0x31   :  { %p6268_p7 = pnand %p6267_p6, %p6261_p3 }
  0x33   :  { %6271 = shalt.err (!%p6268_p7)
}
  0x34   :  { %s8659_s2 = smov 128   ;;  %s8661_s3 = smov 8  }
  0x35   :  { %71 = dma.hbm_to_vmem [thread:$0]  %s8687_s28, 384, %s66_s4, [#allocation6], %s8659_s2, %s8659_s2, %s8661_s3  }
  0x36   :  { %s8688_s0 = sld [smem:[#allocation65_spill]] }
  0x3c   :  { %s6272_s10 = scalar_lea.hbm %s8688_s0, 16 }
  0x3d   :  { %p6273_p8 = scmp.ne.s32.totalorder %s8688_s0, %s6272_s10  ;;  %p6276_p9 = scmp.lt.u32.totalorder %s6272_s10, %s8688_s0 }
  0x3f   :  { %p6278_p10 = pnand %p6276_p9, %p6273_p8 }
  0x41   :  { %6281 = shalt.err (!%p6278_p10)
}
  0x42   :  { %s6282_s7 = scalar_lea.vmem %s7087_s30, 16  ;;  %s6286_s4 = scalar_lea.vmem %s7087_s30, 32 }
  0x43   :  { %p6283_p11 = scmp.ne.s32.totalorder %s7087_s30, %s6282_s7  ;;  %p6287_p12 = scmp.lt.s32.totalorder %s7087_s30, %s7087_s30 }
  0x44   :  { %p6288_p13 = scmp.lt.s32.totalorder %s6286_s4, %s6282_s7 }
  0x46   :  { %p6289_p0 = por %p6288_p13, %p6287_p12 }
  0x48   :  { %p6290_p1 = pnand %p6289_p0, %p6283_p11 }
  0x4a   :  { %6293 = shalt.err (!%p6290_p1)
}
  0x4b   :  { %91 = dma.hbm_to_vmem [thread:$0]  %s8688_s0, 16, %s7087_s30, [#allocation9]  }
  0x4c   :  { %s6900_s9 = smov [#allocation11]   ;;  %s6901_s10 = smov [#allocation14]  }
  0x4d   :  { %s109_s5 = sshll.u32 %s6900_s9, 4  ;;  %s131_s29 = sshll.u32 %s6901_s10, 4  ;;  %s110_s5 = int_to_ptr.vmem [resolvable:$true] %s109_s5  ;;  %s7122_s29 = int_to_ptr.vmem [resolvable:$true] %s131_s29 }
  0x4e   :  { %s8689_s11 = sld [smem:[#allocation67_spill]] }
  0x54   :  { %s6294_s2 = scalar_lea.hbm %s8689_s11, 384 }
  0x55   :  { %p6295_p2 = scmp.ne.s32.totalorder %s8689_s11, %s6294_s2  ;;  %p6298_p3 = scmp.lt.u32.totalorder %s6294_s2, %s8689_s11 }
  0x57   :  { %p6300_p4 = pnand %p6298_p3, %p6295_p2 }
  0x59   :  { %6303 = shalt.err (!%p6300_p4)
}
  0x5a   :  { %s6304_s30 = scalar_lea.vmem %s110_s5, 384  ;;  %p6309_p6 = scmp.lt.s32.totalorder %s110_s5, %s110_s5 }
  0x5b   :  { %p6305_p5 = scmp.ne.s32.totalorder %s110_s5, %s6304_s30  ;;  %p6310_p7 = scmp.lt.s32.totalorder %s6304_s30, %s6304_s30 }
  0x5d   :  { %p6311_p8 = por %p6310_p7, %p6309_p6 }
  0x5f   :  { %p6312_p9 = pnand %p6311_p8, %p6305_p5 }
  0x61   :  { %6315 = shalt.err (!%p6312_p9)
}
  0x62   :  { %s8690_s0 = smov 8   ;;  %s8691_s28 = smov 128  }
  0x63   :  { %115 = dma.hbm_to_vmem [thread:$0]  %s8689_s11, 384, %s110_s5, [#allocation12], %s8691_s28, %s8691_s28, %s8690_s0  }
  0x64   :  { %s8692_s27 = sld [smem:[#allocation69_spill]] }
  0x6a   :  { %s6316_s2 = scalar_lea.hbm %s8692_s27, 384 }
  0x6b   :  { %p6317_p10 = scmp.ne.s32.totalorder %s8692_s27, %s6316_s2  ;;  %p6320_p11 = scmp.lt.u32.totalorder %s6316_s2, %s8692_s27 }
  0x6d   :  { %p6322_p12 = pnand %p6320_p11, %p6317_p10 }
  0x6f   :  { %6325 = shalt.err (!%p6322_p12)
}
  0x70   :  { %s6326_s30 = scalar_lea.vmem %s7122_s29, 384  ;;  %p6331_p0 = scmp.lt.s32.totalorder %s7122_s29, %s7122_s29 }
  0x71   :  { %p6327_p13 = scmp.ne.s32.totalorder %s7122_s29, %s6326_s30  ;;  %p6332_p1 = scmp.lt.s32.totalorder %s6326_s30, %s6326_s30 }
  0x73   :  { %p6333_p2 = por %p6332_p1, %p6331_p0 }
  0x75   :  { %p6334_p3 = pnand %p6333_p2, %p6327_p13 }
  0x77   :  { %6337 = shalt.err (!%p6334_p3)
}
  0x78   :  { %137 = dma.hbm_to_vmem [thread:$0]  %s8692_s27, 384, %s7122_s29, [#allocation15], %s8691_s28, %s8691_s28, %s8690_s0  }
  0x79   :  { %s6902_s8 = smov [#allocation17]   ;;  %s6903_s10 = smov [#allocation20]  }
  0x7a   :  { %s154_s9 = sshll.u32 %s6902_s8, 4  ;;  %s174_s1 = sshll.u32 %s6903_s10, 4  ;;  %s155_s9 = int_to_ptr.vmem [resolvable:$true] %s154_s9  ;;  %s175_s1 = int_to_ptr.vmem [resolvable:$true] %s174_s1 }
  0x7b   :  { %s8693_s6 = sld [smem:[#allocation71_spill]] }
  0x81   :  { %s6338_s7 = scalar_lea.hbm %s8693_s6, 16 }
  0x82   :  { %p6339_p4 = scmp.ne.s32.totalorder %s8693_s6, %s6338_s7  ;;  %p6342_p5 = scmp.lt.u32.totalorder %s6338_s7, %s8693_s6 }
  0x84   :  { %p6344_p6 = pnand %p6342_p5, %p6339_p4 }
  0x86   :  { %6347 = shalt.err (!%p6344_p6)
}
  0x87   :  { %s6348_s29 = scalar_lea.vmem %s155_s9, 16  ;;  %s6352_s27 = scalar_lea.vmem %s155_s9, 32 }
  0x88   :  { %p6349_p7 = scmp.ne.s32.totalorder %s155_s9, %s6348_s29  ;;  %p6353_p8 = scmp.lt.s32.totalorder %s155_s9, %s155_s9 }
  0x89   :  { %p6354_p9 = scmp.lt.s32.totalorder %s6352_s27, %s6348_s29 }
  0x8b   :  { %p6355_p10 = por %p6354_p9, %p6353_p8 }
  0x8d   :  { %p6356_p11 = pnand %p6355_p10, %p6349_p7 }
  0x8f   :  { %6359 = shalt.err (!%p6356_p11)
}
  0x90   :  { %157 = dma.hbm_to_vmem [thread:$0]  %s8693_s6, 16, %s155_s9, [#allocation18]  }
  0x91   :  { %s8694_s2 = sld [smem:[#allocation73_spill]] }
  0x97   :  { %s6360_s3 = scalar_lea.hbm %s8694_s2, 16 }
  0x98   :  { %p6361_p12 = scmp.ne.s32.totalorder %s8694_s2, %s6360_s3  ;;  %p6364_p13 = scmp.lt.u32.totalorder %s6360_s3, %s8694_s2 }
  0x9a   :  { %p6366_p0 = pnand %p6364_p13, %p6361_p12 }
  0x9c   :  { %6369 = shalt.err (!%p6366_p0)
}
  0x9d   :  { %s6370_s30 = scalar_lea.vmem %s175_s1, 16  ;;  %s6374_s29 = scalar_lea.vmem %s175_s1, 32 }
  0x9e   :  { %p6371_p1 = scmp.ne.s32.totalorder %s175_s1, %s6370_s30  ;;  %p6375_p2 = scmp.lt.s32.totalorder %s175_s1, %s175_s1 }
  0x9f   :  { %p6376_p3 = scmp.lt.s32.totalorder %s6374_s29, %s6370_s30 }
  0xa1   :  { %p6377_p4 = por %p6376_p3, %p6375_p2 }
  0xa3   :  { %p6378_p5 = pnand %p6377_p4, %p6371_p1 }
  0xa5   :  { %6381 = shalt.err (!%p6378_p5)
}
  0xa6   :  { %177 = dma.hbm_to_vmem [thread:$0]  %s8694_s2, 16, %s175_s1, [#allocation21]  }
  0xa7   :  { %s6904_s27 = smov [#allocation23]   ;;  %s6905_s11 = smov [#allocation26]  }
  0xa8   :  { %s195_s5 = sshll.u32 %s6904_s27, 4  ;;  %s219_s8 = sshll.u32 %s6905_s11, 4  ;;  %s196_s5 = int_to_ptr.vmem [resolvable:$true] %s195_s5  ;;  %s7183_s8 = int_to_ptr.vmem [resolvable:$true] %s219_s8 }
  0xa9   :  { %s6382_s25 = scalar_lea.hbm %s8632_s13, 48 }
  0xaa   :  { %p6383_p6 = scmp.ne.s32.totalorder %s8632_s13, %s6382_s25  ;;  %p6386_p7 = scmp.lt.u32.totalorder %s6382_s25, %s8632_s13 }
  0xac   :  { %p6388_p8 = pnand %p6386_p7, %p6383_p6 }
  0xae   :  { %6391 = shalt.err (!%p6388_p8)
}
  0xaf   :  { %s6392_s1 = scalar_lea.vmem %s196_s5, 48  ;;  %s6396_s2 = scalar_lea.vmem %s196_s5, 64 }
  0xb0   :  { %p6393_p9 = scmp.ne.s32.totalorder %s196_s5, %s6392_s1  ;;  %p6397_p10 = scmp.lt.s32.totalorder %s196_s5, %s196_s5 }
  0xb1   :  { %p6398_p11 = scmp.lt.s32.totalorder %s6396_s2, %s6392_s1 }
  0xb3   :  { %p6399_p12 = por %p6398_p11, %p6397_p10 }
  0xb5   :  { %p6400_p13 = pnand %p6399_p12, %p6393_p9 }
  0xb7   :  { %6403 = shalt.err (!%p6400_p13)
}
  0xb8   :  { %s6906_s29 = smov 16   ;;  %s6907_s9 = smov 1  }
  0xb9   :  { %201 = dma.hbm_to_vmem [thread:$0]  %s8632_s13, 48, %s196_s5, [#allocation24], %s6906_s29, %s6906_s29, %s6907_s9  }
  0xba   :  { %s6404_s3 = scalar_lea.hbm %s8634_s15, 96 }
  0xbb   :  { %p6405_p0 = scmp.ne.s32.totalorder %s8634_s15, %s6404_s3  ;;  %p6408_p1 = scmp.lt.u32.totalorder %s6404_s3, %s8634_s15 }
  0xbd   :  { %p6410_p2 = pnand %p6408_p1, %p6405_p0 }
  0xbf   :  { %6413 = shalt.err (!%p6410_p2)
}
  0xc0   :  { %s6414_s30 = scalar_lea.vmem %s7183_s8, 96  ;;  %p6419_p4 = scmp.lt.s32.totalorder %s7183_s8, %s7183_s8 }
  0xc1   :  { %p6415_p3 = scmp.ne.s32.totalorder %s7183_s8, %s6414_s30  ;;  %p6420_p5 = scmp.lt.s32.totalorder %s6414_s30, %s6414_s30 }
  0xc3   :  { %p6421_p6 = por %p6420_p5, %p6419_p4 }
  0xc5   :  { %p6422_p7 = pnand %p6421_p6, %p6415_p3 }
  0xc7   :  { %6425 = shalt.err (!%p6422_p7)
}
  0xc8   :  { %s6908_s13 = smov 32   ;;  %s6909_s5 = smov 2  }
  0xc9   :  { %225 = dma.hbm_to_vmem [thread:$0]  %s8634_s15, 96, %s7183_s8, [#allocation27], %s6908_s13, %s6908_s13, %s6909_s5  }
  0xca   :  { %s6910_s6 = smov [#allocation29]   ;;  %s6426_s3 = scalar_lea.hbm %s8636_s17, 1536 }
  0xcb   :  { %s243_s27 = sshll.u32 %s6910_s6, 4  ;;  %p6427_p8 = scmp.ne.s32.totalorder %s8636_s17, %s6426_s3  ;;  %s244_s27 = int_to_ptr.vmem [resolvable:$true] %s243_s27 }
  0xcc   :  { %p6430_p9 = scmp.lt.u32.totalorder %s6426_s3, %s8636_s17 }
  0xce   :  { %p6432_p10 = pnand %p6430_p9, %p6427_p8 }
  0xd0   :  { %6435 = shalt.err (!%p6432_p10)
}
  0xd1   :  { %s6436_s30 = scalar_lea.vmem %s244_s27, 1536  ;;  %p6441_p12 = scmp.lt.s32.totalorder %s244_s27, %s244_s27 }
  0xd2   :  { %p6437_p11 = scmp.ne.s32.totalorder %s244_s27, %s6436_s30  ;;  %p6442_p13 = scmp.lt.s32.totalorder %s6436_s30, %s6436_s30 }
  0xd4   :  { %p6443_p0 = por %p6442_p13, %p6441_p12 }
  0xd6   :  { %p6444_p1 = pnand %p6443_p0, %p6437_p11 }
  0xd8   :  { %6447 = shalt.err (!%p6444_p1)
}
  0xd9   :  { %249 = dma.hbm_to_vmem [thread:$0]  %s8636_s17, 1536, %s244_s27, [#allocation30], %s8691_s28, %s8691_s28, %s8690_s0  }
  0xda   :  { %s6911_s5 = smov [#allocation32]   ;;  %s6912_s2 = smov [#allocation35]  }
  0xdb   :  { %s267_s1 = sshll.u32 %s6911_s5, 4  ;;  %s290_s6 = sshll.u32 %s6912_s2, 4  ;;  %s268_s1 = int_to_ptr.vmem [resolvable:$true] %s267_s1  ;;  %s291_s6 = int_to_ptr.vmem [resolvable:$true] %s290_s6 }
  0xdc   :  { %s6448_s3 = scalar_lea.hbm %s8638_s19, 3072 }
  0xdd   :  { %p6449_p2 = scmp.ne.s32.totalorder %s8638_s19, %s6448_s3  ;;  %p6452_p3 = scmp.lt.u32.totalorder %s6448_s3, %s8638_s19 }
  0xdf   :  { %p6454_p4 = pnand %p6452_p3, %p6449_p2 }
  0xe1   :  { %6457 = shalt.err (!%p6454_p4)
}
  0xe2   :  { %s6458_s17 = scalar_lea.vmem %s268_s1, 3072  ;;  %p6463_p6 = scmp.lt.s32.totalorder %s268_s1, %s268_s1 }
  0xe3   :  { %p6459_p5 = scmp.ne.s32.totalorder %s268_s1, %s6458_s17  ;;  %p6464_p7 = scmp.lt.s32.totalorder %s6458_s17, %s6458_s17 }
  0xe5   :  { %p6465_p8 = por %p6464_p7, %p6463_p6 }
  0xe7   :  { %p6466_p9 = pnand %p6465_p8, %p6459_p5 }
  0xe9   :  { %6469 = shalt.err (!%p6466_p9)
}
  0xea   :  { %s6913_s27 = smov 384   ;;  %s6914_s30 = smov 24  }
  0xeb   :  { %273 = dma.hbm_to_vmem [thread:$0]  %s8638_s19, 3072, %s268_s1, [#allocation33], %s6913_s27, %s6913_s27, %s6914_s30  }
  0xec   :  { %s6470_s11 = scalar_lea.hbm %s8640_s21, 16 }
  0xed   :  { %p6471_p10 = scmp.ne.s32.totalorder %s8640_s21, %s6470_s11  ;;  %p6474_p11 = scmp.lt.u32.totalorder %s6470_s11, %s8640_s21 }
  0xef   :  { %p6476_p12 = pnand %p6474_p11, %p6471_p10 }
  0xf1   :  { %6479 = shalt.err (!%p6476_p12)
}
  0xf2   :  { %s6480_s7 = scalar_lea.vmem %s291_s6, 16  ;;  %s6484_s4 = scalar_lea.vmem %s291_s6, 32 }
  0xf3   :  { %p6481_p13 = scmp.ne.s32.totalorder %s291_s6, %s6480_s7  ;;  %p6485_p0 = scmp.lt.s32.totalorder %s291_s6, %s291_s6 }
  0xf4   :  { %p6486_p1 = scmp.lt.s32.totalorder %s6484_s4, %s6480_s7 }
  0xf6   :  { %p6487_p2 = por %p6486_p1, %p6485_p0 }
  0xf8   :  { %p6488_p3 = pnand %p6487_p2, %p6481_p13 }
  0xfa   :  { %6491 = shalt.err (!%p6488_p3)
}
  0xfb   :  { %293 = dma.hbm_to_vmem [thread:$0]  %s8640_s21, 16, %s291_s6, [#allocation36]  }
  0xfc   :  { %s6915_s17 = smov [#allocation38]   ;;  %s6916_s8 = smov [#allocation2]  }
  0xfd   :  { %s309_s15 = sshll.u32 %s6915_s17, 4  ;;  %s53_s5 = sshll.u32 %s6916_s8, 4  ;;  %s310_s15 = int_to_ptr.vmem [resolvable:$true] %s309_s15  ;;  %s54_s5 = int_to_ptr.vmem [resolvable:$true] %s53_s5 }
  0xfe   :  { %s6492_s10 = scalar_lea.hbm %s8642_s23, 512 }
  0xff   :  { %p6493_p4 = scmp.ne.s32.totalorder %s8642_s23, %s6492_s10  ;;  %p6496_p5 = scmp.lt.u32.totalorder %s6492_s10, %s8642_s23 }
 0x101   :  { %p6498_p6 = pnand %p6496_p5, %p6493_p4 }
 0x103   :  { %6501 = shalt.err (!%p6498_p6)
}
 0x104   :  { %s6502_s21 = scalar_lea.vmem %s310_s15, 512  ;;  %p6507_p8 = scmp.lt.s32.totalorder %s310_s15, %s310_s15 }
 0x105   :  { %p6503_p7 = scmp.ne.s32.totalorder %s310_s15, %s6502_s21  ;;  %p6508_p9 = scmp.lt.s32.totalorder %s6502_s21, %s6502_s21 }
 0x107   :  { %p6509_p10 = por %p6508_p9, %p6507_p8 }
 0x109   :  { %p6510_p11 = pnand %p6509_p10, %p6503_p7 }
 0x10b   :  { %6513 = shalt.err (!%p6510_p11)
}
 0x10c   :  { %315 = dma.hbm_to_vmem [thread:$0]  %s8642_s23, 512, %s310_s15, [#allocation39], %s8691_s28, %s8691_s28, %s8690_s0  }
 0x10d   :  { %s8695_s17 = sld [smem:[#allocation62_spill]] }
 0x113   :  { %s6514_s8 = scalar_lea.hbm %s8695_s17, 384 }
 0x114   :  { %p6515_p12 = scmp.ne.s32.totalorder %s8695_s17, %s6514_s8  ;;  %p6518_p13 = scmp.lt.u32.totalorder %s6514_s8, %s8695_s17 }
 0x116   :  { %p6520_p0 = pnand %p6518_p13, %p6515_p12 }
 0x118   :  { %6523 = shalt.err (!%p6520_p0)
}
 0x119   :  { %s6524_s25 = scalar_lea.vmem %s54_s5, 384  ;;  %p6529_p2 = scmp.lt.s32.totalorder %s54_s5, %s54_s5 }
 0x11a   :  { %p6525_p1 = scmp.ne.s32.totalorder %s54_s5, %s6524_s25  ;;  %p6530_p3 = scmp.lt.s32.totalorder %s6524_s25, %s6524_s25 }
 0x11c   :  { %p6531_p4 = por %p6530_p3, %p6529_p2 }
 0x11e   :  { %p6532_p5 = pnand %p6531_p4, %p6525_p1 }
 0x120   :  { %6535 = shalt.err (!%p6532_p5)
}
 0x121   :  { %59 = dma.hbm_to_vmem [thread:$0]  %s8695_s17, 384, %s54_s5, [#allocation3], %s8691_s28, %s8691_s28, %s8690_s0  }
 0x122   :  { %s6917_s26 = smov [#allocation7]   ;;  %s6918_s21 = smov [#allocation10]  }
 0x123   :  { %s78_s7 = sshll.u32 %s6917_s26, 4  ;;  %s97_s6 = sshll.u32 %s6918_s21, 4  ;;  %s79_s7 = int_to_ptr.vmem [resolvable:$true] %s78_s7  ;;  %s98_s6 = int_to_ptr.vmem [resolvable:$true] %s97_s6 }
 0x124   :  { %s8696_s1 = sld [smem:[#allocation64_spill]] }
 0x12a   :  { %s6536_s8 = scalar_lea.hbm %s8696_s1, 16 }
 0x12b   :  { %p6537_p6 = scmp.ne.s32.totalorder %s8696_s1, %s6536_s8  ;;  %p6540_p7 = scmp.lt.u32.totalorder %s6536_s8, %s8696_s1 }
 0x12d   :  { %p6542_p8 = pnand %p6540_p7, %p6537_p6 }
 0x12f   :  { %6545 = shalt.err (!%p6542_p8)
}
 0x130   :  { %s6546_s5 = scalar_lea.vmem %s79_s7, 16  ;;  %s6550_s17 = scalar_lea.vmem %s79_s7, 32 }
 0x131   :  { %p6547_p9 = scmp.ne.s32.totalorder %s79_s7, %s6546_s5  ;;  %p6551_p10 = scmp.lt.s32.totalorder %s79_s7, %s79_s7 }
 0x132   :  { %p6552_p11 = scmp.lt.s32.totalorder %s6550_s17, %s6546_s5 }
 0x134   :  { %p6553_p12 = por %p6552_p11, %p6551_p10 }
 0x136   :  { %p6554_p13 = pnand %p6553_p12, %p6547_p9 }
 0x138   :  { %6557 = shalt.err (!%p6554_p13)
}
 0x139   :  { %81 = dma.hbm_to_vmem [thread:$0]  %s8696_s1, 16, %s79_s7, [#allocation6]  }
 0x13a   :  { %s8697_s21 = sld [smem:[#allocation66_spill]] }
 0x140   :  { %s6558_s4 = scalar_lea.hbm %s8697_s21, 384 }
 0x141   :  { %p6559_p0 = scmp.ne.s32.totalorder %s8697_s21, %s6558_s4  ;;  %p6562_p1 = scmp.lt.u32.totalorder %s6558_s4, %s8697_s21 }
 0x143   :  { %p6564_p2 = pnand %p6562_p1, %p6559_p0 }
 0x145   :  { %6567 = shalt.err (!%p6564_p2)
}
 0x146   :  { %s6568_s10 = scalar_lea.vmem %s98_s6, 384  ;;  %p6573_p4 = scmp.lt.s32.totalorder %s98_s6, %s98_s6 }
 0x147   :  { %p6569_p3 = scmp.ne.s32.totalorder %s98_s6, %s6568_s10  ;;  %p6574_p5 = scmp.lt.s32.totalorder %s6568_s10, %s6568_s10 }
 0x149   :  { %p6575_p6 = por %p6574_p5, %p6573_p4 }
 0x14b   :  { %p6576_p7 = pnand %p6575_p6, %p6569_p3 }
 0x14d   :  { %6579 = shalt.err (!%p6576_p7)
}
 0x14e   :  { %103 = dma.hbm_to_vmem [thread:$0]  %s8697_s21, 384, %s98_s6, [#allocation9], %s8691_s28, %s8691_s28, %s8690_s0  }
 0x14f   :  { %s6919_s3 = smov [#allocation13]   ;;  %s6920_s17 = smov [#allocation16]  }
 0x150   :  { %s122_s5 = sshll.u32 %s6919_s3, 4  ;;  %s144_s25 = sshll.u32 %s6920_s17, 4  ;;  %s123_s5 = int_to_ptr.vmem [resolvable:$true] %s122_s5  ;;  %s145_s25 = int_to_ptr.vmem [resolvable:$true] %s144_s25 }
 0x151   :  { %s8698_s26 = sld [smem:[#allocation68_spill]] }
 0x157   :  { %s6580_s4 = scalar_lea.hbm %s8698_s26, 16 }
 0x158   :  { %p6581_p8 = scmp.ne.s32.totalorder %s8698_s26, %s6580_s4  ;;  %p6584_p9 = scmp.lt.u32.totalorder %s6580_s4, %s8698_s26 }
 0x15a   :  { %p6586_p10 = pnand %p6584_p9, %p6581_p8 }
 0x15c   :  { %6589 = shalt.err (!%p6586_p10)
}
 0x15d   :  { %s6590_s0 = scalar_lea.vmem %s123_s5, 16  ;;  %s6594_s28 = scalar_lea.vmem %s123_s5, 32 }
 0x15e   :  { %p6591_p11 = scmp.ne.s32.totalorder %s123_s5, %s6590_s0  ;;  %p6595_p12 = scmp.lt.s32.totalorder %s123_s5, %s123_s5 }
 0x15f   :  { %p6596_p13 = scmp.lt.s32.totalorder %s6594_s28, %s6590_s0 }
 0x161   :  { %p6597_p0 = por %p6596_p13, %p6595_p12 }
 0x163   :  { %p6598_p1 = pnand %p6597_p0, %p6591_p11 }
 0x165   :  { %6601 = shalt.err (!%p6598_p1)
}
 0x166   :  { %125 = dma.hbm_to_vmem [thread:$0]  %s8698_s26, 16, %s123_s5, [#allocation12]  }
 0x167   :  { %s8699_s1 = sld [smem:[#allocation70_spill]] }
 0x16d   :  { %s6602_s3 = scalar_lea.hbm %s8699_s1, 64 }
 0x16e   :  { %p6603_p2 = scmp.ne.s32.totalorder %s8699_s1, %s6602_s3  ;;  %p6606_p3 = scmp.lt.u32.totalorder %s6602_s3, %s8699_s1 }
 0x170   :  { %p6608_p4 = pnand %p6606_p3, %p6603_p2 }
 0x172   :  { %6611 = shalt.err (!%p6608_p4)
}
 0x173   :  { %s6612_s19 = scalar_lea.vmem %s145_s25, 64  ;;  %p6617_p6 = scmp.lt.s32.totalorder %s145_s25, %s145_s25 }
 0x174   :  { %p6613_p5 = scmp.ne.s32.totalorder %s145_s25, %s6612_s19  ;;  %p6618_p7 = scmp.lt.s32.totalorder %s6612_s19, %s6612_s19 }
 0x176   :  { %p6619_p8 = por %p6618_p7, %p6617_p6 }
 0x178   :  { %p6620_p9 = pnand %p6619_p8, %p6613_p5 }
 0x17a   :  { %6623 = shalt.err (!%p6620_p9)
}
 0x17b   :  { %147 = dma.hbm_to_vmem [thread:$0]  %s8699_s1, 64, %s145_s25, [#allocation15]  }
 0x17c   :  { %s6921_s8 = smov [#allocation19]   ;;  %s6922_s11 = smov [#allocation22]  }
 0x17d   :  { %s164_s2 = sshll.u32 %s6921_s8, 4  ;;  %s183_s0 = sshll.u32 %s6922_s11, 4  ;;  %s165_s2 = int_to_ptr.vmem [resolvable:$true] %s164_s2  ;;  %s184_s0 = int_to_ptr.vmem [resolvable:$true] %s183_s0 }
 0x17e   :  { %s8700_s21 = sld [smem:[#allocation72_spill]] }
 0x184   :  { %s6624_s10 = scalar_lea.hbm %s8700_s21, 16 }
 0x185   :  { %p6625_p10 = scmp.ne.s32.totalorder %s8700_s21, %s6624_s10  ;;  %p6628_p11 = scmp.lt.u32.totalorder %s6624_s10, %s8700_s21 }
 0x187   :  { %p6630_p12 = pnand %p6628_p11, %p6625_p10 }
 0x189   :  { %6633 = shalt.err (!%p6630_p12)
}
 0x18a   :  { %s6634_s25 = scalar_lea.vmem %s165_s2, 16  ;;  %s6638_s1 = scalar_lea.vmem %s165_s2, 32 }
 0x18b   :  { %p6635_p13 = scmp.ne.s32.totalorder %s165_s2, %s6634_s25  ;;  %p6639_p0 = scmp.lt.s32.totalorder %s165_s2, %s165_s2 }
 0x18c   :  { %p6640_p1 = scmp.lt.s32.totalorder %s6638_s1, %s6634_s25 }
 0x18e   :  { %p6641_p2 = por %p6640_p1, %p6639_p0 }
 0x190   :  { %p6642_p3 = pnand %p6641_p2, %p6635_p13 }
 0x192   :  { %6645 = shalt.err (!%p6642_p3)
}
 0x193   :  { %167 = dma.hbm_to_vmem [thread:$0]  %s8700_s21, 16, %s165_s2, [#allocation18]  }
 0x194   :  { %s6646_s26 = scalar_lea.hbm %s8631_s12, 48 }
 0x195   :  { %p6647_p4 = scmp.ne.s32.totalorder %s8631_s12, %s6646_s26  ;;  %p6650_p5 = scmp.lt.u32.totalorder %s6646_s26, %s8631_s12 }
 0x197   :  { %p6652_p6 = pnand %p6650_p5, %p6647_p4 }
 0x199   :  { %6655 = shalt.err (!%p6652_p6)
}
 0x19a   :  { %s6656_s10 = scalar_lea.vmem %s184_s0, 48  ;;  %s6660_s7 = scalar_lea.vmem %s184_s0, 64 }
 0x19b   :  { %p6657_p7 = scmp.ne.s32.totalorder %s184_s0, %s6656_s10  ;;  %p6661_p8 = scmp.lt.s32.totalorder %s184_s0, %s184_s0 }
 0x19c   :  { %p6662_p9 = scmp.lt.s32.totalorder %s6660_s7, %s6656_s10 }
 0x19e   :  { %p6663_p10 = por %p6662_p9, %p6661_p8 }
 0x1a0   :  { %p6664_p11 = pnand %p6663_p10, %p6657_p7 }
 0x1a2   :  { %6667 = shalt.err (!%p6664_p11)
}
 0x1a3   :  { %189 = dma.hbm_to_vmem [thread:$0]  %s8631_s12, 48, %s184_s0, [#allocation21], %s6906_s29, %s6906_s29, %s6907_s9  }
 0x1a4   :  { %s6923_s3 = smov [#allocation25]   ;;  %s6668_s1 = scalar_lea.hbm %s8633_s14, 3072 }
 0x1a5   :  { %s207_s17 = sshll.u32 %s6923_s3, 4  ;;  %p6669_p12 = scmp.ne.s32.totalorder %s8633_s14, %s6668_s1  ;;  %s208_s17 = int_to_ptr.vmem [resolvable:$true] %s207_s17 }
 0x1a6   :  { %p6672_p13 = scmp.lt.u32.totalorder %s6668_s1, %s8633_s14 }
 0x1a8   :  { %p6674_p0 = pnand %p6672_p13, %p6669_p12 }
 0x1aa   :  { %6677 = shalt.err (!%p6674_p0)
}
 0x1ab   :  { %s6678_s26 = scalar_lea.vmem %s208_s17, 3072  ;;  %p6683_p2 = scmp.lt.s32.totalorder %s208_s17, %s208_s17 }
 0x1ac   :  { %p6679_p1 = scmp.ne.s32.totalorder %s208_s17, %s6678_s26  ;;  %p6684_p3 = scmp.lt.s32.totalorder %s6678_s26, %s6678_s26 }
 0x1ae   :  { %p6685_p4 = por %p6684_p3, %p6683_p2 }
 0x1b0   :  { %p6686_p5 = pnand %p6685_p4, %p6679_p1 }
 0x1b2   :  { %6689 = shalt.err (!%p6686_p5)
}
 0x1b3   :  { %s6924_s12 = smov 256   ;;  %s6925_s11 = smov [#allocation28]  }
 0x1b4   :  { %213 = dma.hbm_to_vmem [thread:$0]  %s8633_s14, 3072, %s208_s17, [#allocation24], %s6924_s12, %s6924_s12, %s6906_s29  }
 0x1b5   :  { %s231_s28 = sshll.u32 %s6925_s11, 4  ;;  %s6926_s6 = smov [#allocation31]   ;;  %s232_s28 = int_to_ptr.vmem [resolvable:$true] %s231_s28 }
 0x1b6   :  { %s255_s10 = sshll.u32 %s6926_s6, 4  ;;  %s6690_s21 = scalar_lea.hbm %s8635_s16, 13824  ;;  %s256_s10 = int_to_ptr.vmem [resolvable:$true] %s255_s10 }
 0x1b7   :  { %p6691_p6 = scmp.ne.s32.totalorder %s8635_s16, %s6690_s21  ;;  %p6694_p7 = scmp.lt.u32.totalorder %s6690_s21, %s8635_s16 }
 0x1b9   :  { %p6696_p8 = pnand %p6694_p7, %p6691_p6 }
 0x1bb   :  { %6699 = shalt.err (!%p6696_p8)
}
 0x1bc   :  { %s6700_s14 = scalar_lea.vmem %s232_s28, 13824  ;;  %p6705_p10 = scmp.lt.s32.totalorder %s232_s28, %s232_s28 }
 0x1bd   :  { %p6701_p9 = scmp.ne.s32.totalorder %s232_s28, %s6700_s14  ;;  %p6706_p11 = scmp.lt.s32.totalorder %s6700_s14, %s6700_s14 }
 0x1bf   :  { %p6707_p12 = por %p6706_p11, %p6705_p10 }
 0x1c1   :  { %p6708_p13 = pnand %p6707_p12, %p6701_p9 }
 0x1c3   :  { %6711 = shalt.err (!%p6708_p13)
}
 0x1c4   :  { %237 = dma.hbm_to_vmem [thread:$0]  %s8635_s16, 13824, %s232_s28, [#allocation27], %s6913_s27, %s6913_s27, %s6914_s30  }
 0x1c5   :  { %s6712_s5 = scalar_lea.hbm %s8637_s18, 48 }
 0x1c6   :  { %p6713_p0 = scmp.ne.s32.totalorder %s8637_s18, %s6712_s5  ;;  %p6716_p1 = scmp.lt.u32.totalorder %s6712_s5, %s8637_s18 }
 0x1c8   :  { %p6718_p2 = pnand %p6716_p1, %p6713_p0 }
 0x1ca   :  { %6721 = shalt.err (!%p6718_p2)
}
 0x1cb   :  { %s6722_s11 = scalar_lea.vmem %s256_s10, 48  ;;  %s6726_s6 = scalar_lea.vmem %s256_s10, 64 }
 0x1cc   :  { %p6723_p3 = scmp.ne.s32.totalorder %s256_s10, %s6722_s11  ;;  %p6727_p4 = scmp.lt.s32.totalorder %s256_s10, %s256_s10 }
 0x1cd   :  { %p6728_p5 = scmp.lt.s32.totalorder %s6726_s6, %s6722_s11 }
 0x1cf   :  { %p6729_p6 = por %p6728_p5, %p6727_p4 }
 0x1d1   :  { %p6730_p7 = pnand %p6729_p6, %p6723_p3 }
 0x1d3   :  { %6733 = shalt.err (!%p6730_p7)
}
 0x1d4   :  { %261 = dma.hbm_to_vmem [thread:$0]  %s8637_s18, 48, %s256_s10, [#allocation30], %s6906_s29, %s6906_s29, %s6907_s9  }
 0x1d5   :  { %s6927_s30 = smov [#allocation34]   ;;  %s6928_s7 = smov [#allocation37]  }
 0x1d6   :  { %s280_s28 = sshll.u32 %s6927_s30, 4  ;;  %s300_s2 = sshll.u32 %s6928_s7, 4  ;;  %s281_s28 = int_to_ptr.vmem [resolvable:$true] %s280_s28  ;;  %s301_s2 = int_to_ptr.vmem [resolvable:$true] %s300_s2 }
 0x1d7   :  { %s6734_s23 = scalar_lea.hbm %s8639_s20, 48 }
 0x1d8   :  { %p6735_p8 = scmp.ne.s32.totalorder %s8639_s20, %s6734_s23  ;;  %p6738_p9 = scmp.lt.u32.totalorder %s6734_s23, %s8639_s20 }
 0x1da   :  { %p6740_p10 = pnand %p6738_p9, %p6735_p8 }
 0x1dc   :  { %6743 = shalt.err (!%p6740_p10)
}
 0x1dd   :  { %s6744_s18 = scalar_lea.vmem %s281_s28, 48  ;;  %s6748_s29 = scalar_lea.vmem %s281_s28, 64 }
 0x1de   :  { %p6745_p11 = scmp.ne.s32.totalorder %s281_s28, %s6744_s18  ;;  %p6749_p12 = scmp.lt.s32.totalorder %s281_s28, %s281_s28 }
 0x1df   :  { %p6750_p13 = scmp.lt.s32.totalorder %s6748_s29, %s6744_s18 }
 0x1e1   :  { %p6751_p0 = por %p6750_p13, %p6749_p12 }
 0x1e3   :  { %p6752_p1 = pnand %p6751_p0, %p6745_p11 }
 0x1e5   :  { %6755 = shalt.err (!%p6752_p1)
}
 0x1e6   :  { %283 = dma.hbm_to_vmem [thread:$0]  %s8639_s20, 48, %s281_s28, [#allocation33]  }
 0x1e7   :  { %s6756_s19 = scalar_lea.hbm %s8641_s22, 16 }
 0x1e8   :  { %p6757_p2 = scmp.ne.s32.totalorder %s8641_s22, %s6756_s19  ;;  %p6760_p3 = scmp.lt.u32.totalorder %s6756_s19, %s8641_s22 }
 0x1ea   :  { %p6762_p4 = pnand %p6760_p3, %p6757_p2 }
 0x1ec   :  { %6765 = shalt.err (!%p6762_p4)
}
 0x1ed   :  { %s6766_s8 = scalar_lea.vmem %s301_s2, 16  ;;  %s6770_s11 = scalar_lea.vmem %s301_s2, 32 }
 0x1ee   :  { %p6767_p5 = scmp.ne.s32.totalorder %s301_s2, %s6766_s8  ;;  %p6771_p6 = scmp.lt.s32.totalorder %s301_s2, %s301_s2 }
 0x1ef   :  { %p6772_p7 = scmp.lt.s32.totalorder %s6770_s11, %s6766_s8 }
 0x1f1   :  { %p6773_p8 = por %p6772_p7, %p6771_p6 }
 0x1f3   :  { %p6774_p9 = pnand %p6773_p8, %p6767_p5 }
 0x1f5   :  { %6777 = shalt.err (!%p6774_p9)
}
 0x1f6   :  { %303 = dma.hbm_to_vmem [thread:$0]  %s8641_s22, 16, %s301_s2, [#allocation36]  }
 0x1f7   :  { %s6929_s16 = smov [#allocation40]   ;;  %s6778_s7 = scalar_lea.hbm %s8643_s24, 128 }
 0x1f8   :  { %s322_s27 = sshll.u32 %s6929_s16, 4  ;;  %p6779_p10 = scmp.ne.s32.totalorder %s8643_s24, %s6778_s7  ;;  %s323_s27 = int_to_ptr.vmem [resolvable:$true] %s322_s27 }
 0x1f9   :  { %p6782_p11 = scmp.lt.u32.totalorder %s6778_s7, %s8643_s24 }
 0x1fb   :  { %p6784_p12 = pnand %p6782_p11, %p6779_p10 }
 0x1fd   :  { %6787 = shalt.err (!%p6784_p12)
}
 0x1fe   :  { %s6788_s1 = scalar_lea.vmem %s323_s27, 128  ;;  %p6793_p0 = scmp.lt.s32.totalorder %s323_s27, %s323_s27 }
 0x1ff   :  { %p6789_p13 = scmp.ne.s32.totalorder %s323_s27, %s6788_s1  ;;  %p6794_p1 = scmp.lt.s32.totalorder %s6788_s1, %s6788_s1 }
 0x201   :  { %p6795_p2 = por %p6794_p1, %p6793_p0 }
 0x203   :  { %p6796_p3 = pnand %p6795_p2, %p6789_p13 }
 0x205   :  { %6799 = shalt.err (!%p6796_p3)
}
 0x206   :  { %325 = dma.hbm_to_vmem [thread:$0]  %s8643_s24, 128, %s323_s27, [#allocation39]  }
 0x207   :  { %6866 = dma.done.wait [#allocation3], 384  }
 0x208   :  { %6867 = vsyncadd [#allocation3], 4294966912 }
 0x209   :  { %6868 = dma.done.wait [#allocation6], 400  }
 0x20a   :  { %6869 = vsyncadd [#allocation6], 4294966896 }
 0x20b   :  { %6870 = dma.done.wait [#allocation9], 400  }
 0x20c   :  { %6871 = vsyncadd [#allocation9], 4294966896 }
 0x20d   :  { %6872 = dma.done.wait [#allocation12], 400  }
 0x20e   :  { %6873 = vsyncadd [#allocation12], 4294966896 }
 0x20f   :  { %6874 = dma.done.wait [#allocation15], 448  }
 0x210   :  { %6875 = vsyncadd [#allocation15], 4294966848 }
 0x211   :  { %6876 = dma.done.wait [#allocation18], 32  }
 0x212   :  { %6877 = vsyncadd [#allocation18], 4294967264 }
 0x213   :  { %6878 = dma.done.wait [#allocation21], 64  }
 0x214   :  { %6879 = vsyncadd [#allocation21], 4294967232 }
 0x215   :  { %6880 = dma.done.wait [#allocation24], 3120  }
 0x216   :  { %6881 = vsyncadd [#allocation24], 4294964176 }
 0x217   :  { %6882 = dma.done.wait [#allocation27], 13920  }
 0x218   :  { %6883 = vsyncadd [#allocation27], 4294953376 }
 0x219   :  { %6884 = dma.done.wait [#allocation30], 1584  }
 0x21a   :  { %6885 = vsyncadd [#allocation30], 4294965712 }
 0x21b   :  { %6886 = dma.done.wait [#allocation33], 3120  }
 0x21c   :  { %6887 = vsyncadd [#allocation33], 4294964176 }
 0x21d   :  { %6888 = dma.done.wait [#allocation36], 32  }
 0x21e   :  { %6889 = vsyncadd [#allocation36], 4294967264 }
 0x21f   :  { %6890 = dma.done.wait [#allocation39], 640  }
 0x220   :  { %6891 = vsyncadd [#allocation39], 4294966656  ;;  %v8668_v0 = vmov 0.0|0.0   ;;  %vm6931_vm0 = vmmov 0   ;;  %v8670_v1 = vmov 0.0   ;;  %v401_v2 = vlaneseq  ;;  %v418_v5 = vld [vmem:[#allocation2] sm:$0xff] }
 0x221   :  { %5839 = vmatprep.subr.bf16.mxu0 %v8668_v0  ;;  %5842 = vmatprep.subr.bf16.mxu1 %v8668_v0  ;;  %v8666_v3 = vmov 0   ;;  %v419_v6 = vld [vmem:[#allocation2 + $0x8] sm:$0xff]  ;;  %v495_v7 = vld [vmem:[#allocation5] sm:$0xff]  ;;  %v496_v9 = vld [vmem:[#allocation5 + $0x8] sm:$0xff]  ;;  %vm411_vm2 = vcmask 195584   ;;  %vm569_vm4 = vcmask 261120  }
 0x222   :  { %5467 = vmatprep.mubr.msk.f32.mxu0 %vm6931_vm0, %v8670_v1  ;;  %5476 = vmatprep.mubr.msk.f32.mxu1 %vm6931_vm0, %v8670_v1  ;;  %v7456_v4 = vshrl.u32 %v401_v2, 7  ;;  %v5840_v8 = vpack.c.bf16 %v419_v6, %v418_v5  ;;  %v5843_v10 = vpack.c.bf16 %v496_v9, %v495_v7  ;;  %v5169_v11 = vld [vmem:[#allocation7] ss:$0 sm:$0xff]  ;;  %v574_v15 = vld [vmem:[#allocation10 + $0x8] sm:$0xff]  ;;  %v497_v16 = vld [vmem:[#allocation5 + $0x10] sm:$0xff]  ;;  %v572_v28 = vand.u32 127, %v401_v2 }
 0x223   :  { %6114 = vset.pattern.permute.xlu1 %v8666_v3  ;;  %6113 = vset.pattern.permute.xlu0 %v8666_v3  ;;  %v594_v12 = vld [vmem:[#allocation11] sm:$0xff]  ;;  %v595_v18 = vld [vmem:[#allocation11 + $0x8] sm:$0xff]  ;;  %v575_v19 = vld [vmem:[#allocation10 + $0x10] sm:$0xff]  ;;  %vm623_vm6 = vcmask 64512   ;;  %vm1256_vm11 = vcmask 1043456   ;;  %vm1246_vm12 = vcmask 31744  }
 0x224   :  { %5841 = vmatpush3.bf16.msra.mxu0 %v5840_v8  ;;  %vm408_vm1 = vcmp.eq.s32.totalorder %v7456_v4, %v5169_v11  ;;  %598 = vperm.xlu1 %6114, %v594_v12   ;;  %v420_v13 = vld [vmem:[#allocation2 + $0x10] sm:$0xff]  ;;  %v596_v20 = vld [vmem:[#allocation11 + $0x10] sm:$0xff]  ;;  %v1235_v45 = vld [vmem:[#allocation14] sm:$0xff]  ;;  %vm808_vm13 = vcmask 23552   ;;  %s6941_s24 = smov 96   ;;  %s6943_s14 = smov 64  }
 0x225   :  { %5844 = vmatpush3.bf16.msra.mxu1 %v5843_v10  ;;  %5465 = vmatprep.subr.mxu0 %v8670_v1  ;;  %v5170_v14 = vsel %vm408_vm1, 1.0, %v8670_v1  ;;  %v573_v21 = vld [vmem:[#allocation10] sm:$0xff]  ;;  %v1238_v44 = vld [vmem:[#allocation16] sm:$0xf]  ;;  %v1344_v10 = vld [vmem:[#allocation32 + $0x8] sm:$0xff]  ;;  %s6945_s18 = smov [#allocation41]  }
 0x226   :  { %5474 = vmatprep.subr.mxu1 %v8670_v1  ;;  %v412_v17 = vsel %vm411_vm2, %v5170_v14, 0.0  ;;  %v1236_v46 = vld [vmem:[#allocation14 + $0x8] sm:$0xff]  ;;  %v1237_v47 = vld [vmem:[#allocation14 + $0x10] sm:$0xff]  ;;  %s5121_s29 = sshll.u32 %s6945_s18, 4  ;;  %s5122_s29 = int_to_ptr.vmem [resolvable:$true] %s5121_s29 }
 0x227   :  { %413 = vadd.xlane.f32.xlu0 %v412_v17  ;;  %v1347_v11 = vld [vmem:[#allocation32 + $0x20] sm:$0xff] }
 0x228   :  { %5466 = vmatpush3.msra.mxu0 %v420_v13  ;;  %580 = vperm.xlu1 %6114, %v574_v15   ;;  %v1343_v12 = vld [vmem:[#allocation32] sm:$0xff]  ;;  %v5845_v13 = vpack.c.bf16 %v1347_v11, %v1344_v10  ;;  %v1345_v15 = vld [vmem:[#allocation32 + $0x10] sm:$0xff] }
 0x229   :  { %5475 = vmatpush3.msra.mxu1 %v497_v16  ;;  %5468 = vmatmul.mubr.msk.f32.vlgmr.msra.gmra.mrb[0].mxu0 %vm411_vm2, %v5170_v14  ;;  %v1348_v16 = vld [vmem:[#allocation32 + $0x28] sm:$0xff] }
 0x22a   :  { %5477 = vmatmul.mubr.msk.f32.vlgmr.msra.gmra.mrb[0].mxu1 %vm411_vm2, %v5170_v14  ;;  %5479 = vmatprep.subr.mxu0 %v8670_v1  ;;  %v1346_v14 = vld [vmem:[#allocation32 + $0x18] sm:$0xff] }
 0x22b   :  { %5490 = vmatprep.subr.mxu1 %v8670_v1  ;;  %5481 = vmatprep.mubr.msk.f32.mxu0 %vm6931_vm0, %v8670_v1  ;;  %v5847_v17 = vpack.c.bf16 %v1346_v14, %v1343_v12 }
 0x22c   :  { %601 = vperm.xlu1 %6114, %v595_v18   ;;  %5492 = vmatprep.mubr.msk.f32.mxu1 %vm6931_vm0, %v8670_v1  ;;  %v5862_v18 = vpack.c.bf16 %v1348_v16, %v1345_v15 }
 0x230   :  { %583 = vperm.xlu1 %6114, %v575_v19   ;;  %v1350_v19 = vld [vmem:[#allocation32 + $0x38] sm:$0xff] }
 0x234   :  { %604 = vperm.xlu1 %6114, %v596_v20   ;;  %v1353_v20 = vld [vmem:[#allocation32 + $0x50] sm:$0xff] }
 0x23d   :  { %577 = vperm.xlu0 %6113, %v573_v21   ;;  %v1349_v21 = vld [vmem:[#allocation32 + $0x30] sm:$0xff] }
 0x2a3   :  { %v599_v23 = vpop.permute.xlu1 %598 }
 0x2a4   :  { %vm606_vm5 = vcmp.eq.s32.totalorder %v599_v23, %v572_v28  ;;  %v1352_v23 = vld [vmem:[#allocation32 + $0x48] sm:$0xff] }
 0x2a5   :  { %v7479_v38 = vsel %vm606_vm5, 1.0, %v8670_v1 }
 0x2a7   :  { %v581_v25 = vpop.permute.xlu1 %580 }
 0x2a8   :  { %vm586_vm7 = vcmp.eq.s32.totalorder %v581_v25, %v572_v28  ;;  %v1354_v25 = vld [vmem:[#allocation32 + $0x58] sm:$0xff] }
 0x2a9   :  { %v7491_v40 = vsel %vm586_vm7, 1.0, %v8670_v1 }
 0x2ab   :  { %v602_v26 = vpop.permute.xlu1 %601 }
 0x2ac   :  { %vm607_vm8 = vcmp.eq.s32.totalorder %v602_v26, %v572_v28  ;;  %v5851_v26 = vpack.c.bf16 %v1352_v23, %v1349_v21 }
 0x2ad   :  { %v7494_v41 = vsel %vm607_vm8, 1.0, %v8670_v1 }
 0x2af   :  { %v584_v30 = vpop.permute.xlu1 %583 }
 0x2b0   :  { %vm587_vm9 = vcmp.eq.s32.totalorder %v584_v30, %v572_v28  ;;  %v1355_v30 = vld [vmem:[#allocation32 + $0x60] sm:$0xff] }
 0x2b1   :  { %v7505_v42 = vsel %vm587_vm9, 1.0, %v8670_v1 }
 0x2b3   :  { %v605_v39 = vpop.permute.xlu1 %604 }
 0x2b4   :  { %v414_v22 = vpop.xlane.xlu0 %413  ;;  %vm608_vm10 = vcmp.eq.s32.totalorder %v605_v39, %v572_v28 }
 0x2b5   :  { %v415_v24 = vmax.f32 %v414_v22, 1.0  ;;  %v7508_v43 = vsel %vm608_vm10, 1.0, %v8670_v1  ;;  %v5849_v22 = vpack.c.bf16 %v1353_v20, %v1350_v19 }
 0x2b7   :  { %6122 = vrcp.f32 %v415_v24  ;;  %v1351_v24 = vld [vmem:[#allocation32 + $0x40] sm:$0xff] }
 0x2bc   :  { %v578_v27 = vpop.permute.xlu0 %577 }
 0x2bd   :  { %vm585_vm3 = vcmp.eq.s32.totalorder %v578_v27, %v572_v28  ;;  %v5865_v27 = vpack.c.bf16 %v1354_v25, %v1351_v24  ;;  %v1356_v28 = vld [vmem:[#allocation32 + $0x68] sm:$0xff] }
 0x2be   :  { %v7474_v37 = vsel %vm585_vm3, 1.0, %v8670_v1 }
 0x2c1   :  { %v6123_v29 = vpop.eup %6122 }
 0x2fc   :  { %v490_v31 = vpop.f32.mrb[0].mxu0 }
 0x2fd   :  { %v7471_v32 = vmul.f32 %v6123_v29, %v490_v31  ;;  %v564_v33 = vpop.f32.mrb[0].mxu1  ;;  %v5469_v34 = vpop.f32.mrb[1].mxu0 }
 0x2fe   :  { %v568_v35 = vmul.f32 %v6123_v29, %v564_v33  ;;  %v5478_v36 = vpop.f32.mrb[1].mxu1  ;;  %v1359_v29 = vld [vmem:[#allocation32 + $0x80] sm:$0xff]  ;;  %v1358_v33 = vld [vmem:[#allocation32 + $0x78] sm:$0xff]  ;;  %v1357_v34 = vld [vmem:[#allocation32 + $0x70] sm:$0xff] }
 0x2ff   :  { %570 = vst.msk [vmem:[#allocation41] sm:$0xff] %vm569_vm4, %v7471_v32  ;;  %v1625_v9 = vsel %vm569_vm4, %v7471_v32, 0.0  ;;  %v5853_v31 = vpack.c.bf16 %v1359_v29, %v1356_v28  ;;  %v5855_v36 = vpack.c.bf16 %v1358_v33, %v1355_v30 }
 0x300   :  { %5480 = vmatpush3.msra.mxu0 %v568_v35  ;;  %5491 = vmatpush3.msra.mxu1 %v568_v35  ;;  %v1360_v35 = vld [vmem:[#allocation32 + $0x88] sm:$0xff] }
 0x301   :  { %5482 = vmatmul.mubr.msk.f32.vlgmr.msra.gmra.mrb[2].mxu0 %vm623_vm6, %v7474_v37  ;;  %5493 = vmatmul.mubr.msk.f32.vlgmr.msra.gmra.mrb[2].mxu1 %vm623_vm6, %v7479_v38  ;;  %v5868_v39 = vpack.c.bf16 %v1360_v35, %v1357_v34 }
 0x302   :  { %5484 = vmatprep.mubr.msk.f32.mxu0 %vm6931_vm0, %v8670_v1  ;;  %5495 = vmatprep.mubr.msk.f32.mxu1 %vm6931_vm0, %v8670_v1 }
 0x303   :  { %5501 = vmatprep.subr.mxu0 %v8670_v1  ;;  %5846 = vmatprep.subr.bf16.mxu1 %v5845_v13 }
 0x304   :  { %5502 = vmatpush3.msk.msra.mxu0 %vm1256_vm11, %v1238_v44  ;;  %5848 = vmatpush1.bf16.msra.mxu1 %v5847_v17  ;;  %v1362_v44 = vld [vmem:[#allocation32 + $0x98] sm:$0xff] }
 0x305   :  { %5485 = vmatmul.mubr.msk.f32.gmra.mrb[4].mxu0 %vm623_vm6, %v7491_v40  ;;  %5496 = vmatmul.mubr.msk.f32.gmra.mrb[4].mxu1 %vm623_vm6, %v7494_v41 }
 0x306   :  { %5487 = vmatprep.mubr.msk.f32.mxu0 %vm6931_vm0, %v8670_v1  ;;  %5498 = vmatprep.mubr.msk.f32.mxu1 %vm6931_vm0, %v8670_v1 }
 0x307   :  { %5861 = vmatprep.subr.bf16.mxu0 %v8668_v0  ;;  %5850 = vmatprep.subr.bf16.mxu1 %v5849_v22 }
 0x308   :  { %5852 = vmatpush1.bf16.msra.mxu1 %v5851_v26 }
 0x309   :  { %5488 = vmatmul.mubr.msk.f32.gmra.mrb[6].mxu0 %vm623_vm6, %v7505_v42  ;;  %5499 = vmatmul.mubr.msk.f32.gmra.mrb[6].mxu1 %vm623_vm6, %v7508_v43 }
 0x30a   :  { %5503 = vmatprep.mubr.msk.f32.mxu0 %vm6931_vm0, %v8670_v1  ;;  %1458 = vmatprep.mubr.f32.mxu1 %v8670_v1 }
 0x30b   :  { %5854 = vmatprep.subr.bf16.mxu1 %v5853_v31 }
 0x30c   :  { %5856 = vmatpush1.bf16.msra.mxu1 %v5855_v36 }
 0x30d   :  { %5504 = vmatmul.mubr.msk.f32.vlgmr.msra.gmra.mrb[8].mxu0 %vm1246_vm12, %v1235_v45  ;;  %v1365_v45 = vld [vmem:[#allocation32 + $0xb0] sm:$0xff] }
 0x30e   :  { %5506 = vmatprep.mubr.msk.f32.mxu0 %vm6931_vm0, %v8670_v1  ;;  %5863 = vmatpush3.bf16.msra.mxu0 %v5862_v18 }
 0x30f   :  { %5864 = vmatprep.subr.bf16.mxu0 %v8668_v0 }
 0x311   :  { %5507 = vmatmul.mubr.msk.f32.gmra.mrb[10].mxu0 %vm1246_vm12, %v1236_v46 }
 0x312   :  { %5509 = vmatprep.mubr.msk.f32.mxu0 %vm6931_vm0, %v8670_v1  ;;  %5866 = vmatpush3.bf16.msra.mxu0 %v5865_v27 }
 0x313   :  { %5867 = vmatprep.subr.bf16.mxu0 %v8668_v0 }
 0x315   :  { %5510 = vmatmul.mubr.msk.f32.gmra.mrb[12].mxu0 %vm1246_vm12, %v1237_v47  ;;  %v5857_v47 = vpack.c.bf16 %v1365_v45, %v1362_v44 }
 0x316   :  { %5528 = vmatprep.mubr.msk.f32.mxu0 %vm6931_vm0, %v8670_v1  ;;  %5869 = vmatpush3.bf16.msra.mxu0 %v5868_v39 }
 0x317   :  { %5870 = vmatprep.subr.bf16.mxu0 %v8668_v0  ;;  %5858 = vmatprep.subr.bf16.mxu1 %v5857_v47 }
 0x3d4   :  { %v699_v48 = vpop.f32.mrb[2].mxu0  ;;  %v788_v49 = vpop.f32.mrb[2].mxu1 }
 0x3d5   :  { %v7524_v50 = vsub.f32 %v699_v48, %v788_v49  ;;  %v5483_v51 = vpop.f32.mrb[3].mxu0  ;;  %v5494_v52 = vpop.f32.mrb[3].mxu1  ;;  %v1361_v48 = vld [vmem:[#allocation32 + $0x90] sm:$0xff]  ;;  %v1364_v49 = vld [vmem:[#allocation32 + $0xa8] sm:$0xff] }
 0x3d6   :  { %v5859_v51 = vpack.c.bf16 %v1364_v49, %v1361_v48  ;;  %v1363_v52 = vld [vmem:[#allocation32 + $0xa0] sm:$0xff] }
 0x3d7   :  { %v805_v53 = vmul.f32 %v7524_v50, %v7524_v50 }
 0x3d8   :  { %v704_v54 = vpop.f32.mrb[4].mxu0  ;;  %v793_v55 = vpop.f32.mrb[4].mxu1  ;;  %5860 = vmatpush1.bf16.msra.mxu1 %v5859_v51 }
 0x3d9   :  { %v7528_v56 = vsub.f32 %v704_v54, %v793_v55  ;;  %v5486_v57 = vpop.f32.mrb[5].mxu0  ;;  %v5497_v58 = vpop.f32.mrb[5].mxu1  ;;  %v809_v59 = vsel %vm808_vm13, %v805_v53, 0.0  ;;  %v1366_v53 = vld [vmem:[#allocation32 + $0xb8] sm:$0xff] }
 0x3da   :  { %810 = vadd.xlane.f32.xlu1 %v809_v59  ;;  %v5871_v55 = vpack.c.bf16 %v1366_v53, %v1363_v52 }
 0x3db   :  { %v806_v60 = vmul.f32 %v7528_v56, %v7528_v56 }
 0x3dc   :  { %v709_v61 = vpop.f32.mrb[6].mxu0  ;;  %v798_v62 = vpop.f32.mrb[6].mxu1  ;;  %5872 = vmatpush3.bf16.msra.mxu0 %v5871_v55  ;;  %v6934_v55 = vmov 683565275  }
 0x3dd   :  { %v7533_v63 = vsub.f32 %v709_v61, %v798_v62  ;;  %v5489_v2 = vpop.f32.mrb[7].mxu0  ;;  %v5500_v5 = vpop.f32.mrb[7].mxu1  ;;  %v812_v6 = vsel %vm808_vm13, %v806_v60, 0.0 }
 0x3de   :  { %813 = vadd.xlane.f32.xlu0 %v812_v6 }
 0x3df   :  { %v807_v7 = vmul.f32 %v7533_v63, %v7533_v63 }
 0x3e0   :  { %v7544_v46 = vpop.f32.mrb[8].mxu0 }
 0x3e1   :  { %v815_v8 = vsel %vm808_vm13, %v807_v7, 0.0  ;;  %v5505_v54 = vpop.f32.mrb[9].mxu0 }
 0x3e2   :  { %816 = vadd.xlane.f32.xlu1 %v815_v8 }
 0x3e4   :  { %v7546_v57 = vpop.f32.mrb[10].mxu0 }
 0x3e5   :  { %v5508_v58 = vpop.f32.mrb[11].mxu0 }
 0x3e6   :  { %1626 = vadd.xlane.f32.xlu1 %v1625_v9 }
 0x3e8   :  { %v7564_v23 = vpop.f32.mrb[12].mxu0 }
 0x3e9   :  { %v5511_v25 = vpop.f32.mrb[13].mxu0 }
 0x467   :  { %v811_v59 = vpop.xlane.xlu1 %810 }
 0x468   :  { %v818_v60 = vadd.f32 1e-12, %v811_v59  ;;  %v6935_v59 = vmov 2475754826  }
 0x46a   :  { %6124 = vrsqrt.f32 %v818_v60  ;;  %vm823_vm14 = vcmp.eq.f32.partialorder %v818_v60, inf  ;;  %v826_v10 = vand.u32 2147483648, %v818_v60  ;;  %vm825_vm15 = vcmp.eq.f32.partialorder %v818_v60, 0.0 }
 0x46b   :  { %v814_v61 = vpop.xlane.xlu0 %813 }
 0x46c   :  { %v819_v62 = vadd.f32 1e-12, %v814_v61  ;;  %v6936_v61 = vmov 2131351028  }
 0x46e   :  { %6126 = vrsqrt.f32 %v819_v62  ;;  %vm830_vm1 = vcmp.eq.f32.partialorder %v819_v62, inf  ;;  %v833_v18 = vand.u32 2147483648, %v819_v62  ;;  %vm832_vm3 = vcmp.eq.f32.partialorder %v819_v62, 0.0 }
 0x46f   :  { %v817_v2 = vpop.xlane.xlu1 %816 }
 0x470   :  { %v7548_v5 = vadd.f32 1e-12, %v817_v2  ;;  %v6937_v2 = vmov 2102212464  }
 0x472   :  { %6128 = vrsqrt.f32 %v7548_v5  ;;  %vm837_vm7 = vcmp.eq.f32.partialorder %v7548_v5, inf  ;;  %vm839_vm8 = vcmp.eq.f32.partialorder %v7548_v5, 0.0  ;;  %v840_v48 = vand.u32 2147483648, %v7548_v5 }
 0x473   :  { %v1627_v6 = vpop.xlane.xlu1 %1626 }
 0x474   :  { %v6125_v7 = vpop.eup %6124  ;;  %v1629_v8 = vmul.f32 0.03125, %v1627_v6 }
 0x475   :  { %v822_v9 = vmul.f32 %v6125_v7, %v818_v60 }
 0x476   :  { %v7552_v11 = vsub.f32 %v7471_v32, %v1629_v8 }
 0x477   :  { %v824_v12 = vsel %vm823_vm14, %v818_v60, %v822_v9 }
 0x478   :  { %v6127_v13 = vpop.eup %6126  ;;  %v1631_v14 = vmul.f32 %v7552_v11, %v7552_v11  ;;  %v7556_v15 = vsel %vm825_vm15, %v826_v10, %v824_v12  ;;  %v6938_v10 = vmov 920167782  }
 0x479   :  { %v829_v16 = vmul.f32 %v6127_v13, %v819_v62  ;;  %v7559_v17 = vmul.f32 0.62831855, %v7556_v15 }
 0x47a   :  { %v1632_v19 = vsel %vm569_vm4, %v1631_v14, 0.0 }
 0x47b   :  { %v831_v20 = vsel %vm830_vm1, %v819_v62, %v829_v16  ;;  %1633 = vadd.xlane.f32.xlu1 %v1632_v19  ;;  %v866_v21 = vand.u32 2147483647, %v7559_v17  ;;  %v869_v22 = vand.u32 2139095040, %v7559_v17  ;;  %v6939_v16 = vmov 1326507024  }
 0x47c   :  { %v7566_v24 = vsel %vm832_vm3, %v833_v18, %v831_v20  ;;  %v6129_v28 = vpop.eup %6128 }
 0x47d   :  { %v870_v26 = vshrl.u32 %v869_v22, 23  ;;  %v7569_v27 = vmul.f32 0.62831855, %v7566_v24  ;;  %v873_v30 = vand.u32 8388607, %v866_v21  ;;  %v836_v34 = vmul.f32 %v6129_v28, %v7548_v5 }
 0x47f   :  { %v5190_v29 = vadd.s32 4294967169, %v870_v26  ;;  %v972_v31 = vand.u32 2139095040, %v7569_v27  ;;  %v874_v36 = vor.u32 8388608, %v873_v30  ;;  %v838_v47 = vsel %vm837_vm7, %v7548_v5, %v836_v34 }
 0x480   :  { %v969_v53 = vand.u32 2147483647, %v7569_v27 }
 0x481   :  { %v876_v33 = vadd.s32 1, %v5190_v29  ;;  %v973_v35 = vshrl.u32 %v972_v31, 23  ;;  %v7579_v52 = vshll.u32 %v874_v36, 8  ;;  %v7595_v36 = vsel %vm839_vm8, %v840_v48, %v838_v47 }
 0x482   :  { %v1195_v47 = vsub.f32 0.0, %v7556_v15  ;;  %v7610_v48 = vmul.f32 0.62831855, %v7595_v36 }
 0x483   :  { %vm877_vm5 = vcmp.gt.s32.totalorder %v876_v33, 0  ;;  %v5194_v44 = vadd.s32 4294967169, %v973_v35 }
 0x484   :  { %v878_v39 = vsel %vm877_vm5, %v876_v33, 0 }
 0x485   :  { %v880_v45 = vand.u32 31, %v878_v39  ;;  %v879_v49 = vshrl.u32 %v878_v39, 5  ;;  %v979_v54 = vadd.s32 1, %v5194_v44 }
 0x487   :  { %v881_v51 = vsub.s32 32, %v880_v45  ;;  %v883_v58 = vshll.u32 %v6934_v55, %v880_v45  ;;  %v886_v60 = vshll.u32 %v6935_v59, %v880_v45  ;;  %v889_v62 = vshll.u32 %v6936_v61, %v880_v45 }
 0x488   :  { %v892_v6 = vshll.u32 %v6937_v2, %v880_v45  ;;  %v895_v12 = vshll.u32 %v6938_v10, %v880_v45  ;;  %vm898_vm9 = vcmp.lt.s32.totalorder %v879_v49, 1  ;;  %vm900_vm10 = vcmp.lt.s32.totalorder %v879_v49, 3 }
 0x489   :  { %v884_v7 = vshrl.u32 %v6935_v59, %v881_v51  ;;  %v887_v8 = vshrl.u32 %v6936_v61, %v881_v51  ;;  %v890_v9 = vshrl.u32 %v6937_v2, %v881_v51  ;;  %v882_v13 = vshrl.u32 %v6934_v55, %v881_v51 }
 0x48a   :  { %v893_v14 = vshrl.u32 %v6938_v10, %v881_v51  ;;  %v896_v18 = vshrl.u32 %v6939_v16, %v881_v51  ;;  %vm901_vm11 = vcmp.lt.s32.totalorder %v879_v49, 4  ;;  %vm980_vm12 = vcmp.gt.s32.totalorder %v979_v54, 0 }
 0x48b   :  { %v885_v19 = vor.u32 %v884_v7, %v883_v58  ;;  %v888_v20 = vor.u32 %v887_v8, %v886_v60  ;;  %v891_v22 = vor.u32 %v890_v9, %v889_v62  ;;  %vm899_vm13 = vcmp.lt.s32.totalorder %v879_v49, 2 }
 0x48c   :  { %v894_v25 = vor.u32 %v893_v14, %v892_v6  ;;  %v897_v26 = vor.u32 %v896_v18, %v895_v12  ;;  %v981_v45 = vsel %vm980_vm12, %v979_v54, 0  ;;  %v976_v62 = vand.u32 8388607, %v969_v53 }
 0x48d   :  { %v902_v28 = vsel %vm898_vm9, %v882_v13, %v885_v19  ;;  %v903_v29 = vsel %vm901_vm11, %v891_v22, 2102212464  ;;  %v906_v30 = vsel %vm898_vm9, %v885_v19, %v888_v20  ;;  %v910_v31 = vsel %vm898_vm9, %v888_v20, %v891_v22 }
 0x48e   :  { %v904_v33 = vsel %vm900_vm10, %v888_v20, %v903_v29  ;;  %v907_v34 = vsel %vm901_vm11, %v894_v25, 920167782  ;;  %v911_v35 = vsel %vm901_vm11, %v897_v26, 1326507024  ;;  %v983_v5 = vand.u32 31, %v981_v45 }
 0x48f   :  { %v908_v39 = vsel %vm900_vm10, %v891_v22, %v907_v34  ;;  %v912_v44 = vsel %vm900_vm10, %v894_v25, %v911_v35  ;;  %v905_v51 = vsel %vm899_vm13, %v902_v28, %v904_v33  ;;  %v977_v54 = vor.u32 8388608, %v976_v62 }
 0x490   :  { %v909_v58 = vsel %vm899_vm13, %v906_v30, %v908_v39  ;;  %v913_v60 = vsel %vm899_vm13, %v910_v31, %v912_v44  ;;  %v921_v49 = vmul.u32 %v7579_v52, %v905_v51  ;;  %v982_v12 = vshrl.u32 %v981_v45, 5 }
 0x491   :  { %v7600_v6 = vmul.u32.u64.low %v7579_v52, %v913_v60  ;;  %v7601_v7 = vmul.u32.u64.high %v7579_v52, %v913_v60, %v7600_v6  ;;  %v7604_v8 = vmul.u32.u64.low %v7579_v52, %v909_v58  ;;  %v7605_v9 = vmul.u32.u64.high %v7579_v52, %v909_v58, %v7604_v8 }
 0x492   :  { %v984_v13 = vsub.s32 32, %v983_v5  ;;  %v986_v18 = vshll.u32 %v6934_v55, %v983_v5  ;;  %v989_v19 = vshll.u32 %v6935_v59, %v983_v5  ;;  %v992_v25 = vshll.u32 %v6936_v61, %v983_v5 }
 0x493   :  { %vm923_vm14 = vc.u32 %v7601_v7, %v7604_v8  ;;  %v924_v14 = vadd.s32 1, %v7605_v9  ;;  %v995_v28 = vshll.u32 %v6937_v2, %v983_v5  ;;  %v1075_v30 = vand.u32 2139095040, %v7610_v48 }
 0x494   :  { %v987_v20 = vshrl.u32 %v6935_v59, %v984_v13  ;;  %v990_v22 = vshrl.u32 %v6936_v61, %v984_v13  ;;  %v993_v52 = vshrl.u32 %v6937_v2, %v984_v13  ;;  %v996_v29 = vshrl.u32 %v6938_v10, %v984_v13 }
 0x495   :  { %v925_v26 = vsel %vm923_vm14, %v924_v14, %v7605_v9  ;;  %v985_v39 = vshrl.u32 %v6934_v55, %v984_v13  ;;  %v998_v45 = vshll.u32 %v6938_v10, %v983_v5  ;;  %v999_v51 = vshrl.u32 %v6939_v16, %v984_v13 }
 0x496   :  { %v926_v31 = vadd.s32 %v925_v26, %v921_v49  ;;  %v988_v33 = vor.u32 %v987_v20, %v986_v18  ;;  %v991_v34 = vor.u32 %v990_v22, %v989_v19  ;;  %v994_v35 = vor.u32 %v993_v52, %v992_v25 }
 0x497   :  { %v997_v44 = vor.u32 %v996_v29, %v995_v28  ;;  %vm1001_vm15 = vcmp.lt.s32.totalorder %v982_v12, 1  ;;  %vm1002_vm1 = vcmp.lt.s32.totalorder %v982_v12, 2  ;;  %vm1004_vm3 = vcmp.lt.s32.totalorder %v982_v12, 4 }
 0x498   :  { %v927_v58 = vadd.s32 536870912, %v926_v31  ;;  %v1000_v60 = vor.u32 %v999_v51, %v998_v45  ;;  %vm1003_vm5 = vcmp.lt.s32.totalorder %v982_v12, 3  ;;  %v1009_v62 = vsel %vm1001_vm15, %v988_v33, %v991_v34  ;;  %v1656_v51 = vld [vmem:[#allocation25 + $0x8] sm:$0xff] }
 0x499   :  { %v1010_v6 = vsel %vm1004_vm3, %v997_v44, 920167782  ;;  %v1006_v49 = vsel %vm1004_vm3, %v994_v35, 2102212464  ;;  %v1013_v18 = vsel %vm1001_vm15, %v991_v34, %v994_v35  ;;  %v1017_v20 = vshll.u32 %v977_v54, 8 }
 0x49a   :  { %v7630_v9 = vshrl.u32 %v927_v58, 30  ;;  %v1011_v14 = vsel %vm1003_vm5, %v994_v35, %v1010_v6  ;;  %v1014_v5 = vsel %vm1004_vm3, %v1000_v60, 1326507024  ;;  %v1076_v13 = vshrl.u32 %v1075_v30, 23  ;;  %v1658_v58 = vld [vmem:[#allocation25 + $0x18] sm:$0xff] }
 0x49b   :  { %v1012_v19 = vsel %vm1002_vm1, %v1009_v62, %v1011_v14  ;;  %v1005_v25 = vsel %vm1001_vm15, %v985_v39, %v988_v33  ;;  %v1015_v52 = vsel %vm1003_vm5, %v997_v44, %v1014_v5  ;;  %v1007_v26 = vsel %vm1003_vm5, %v991_v34, %v1006_v49  ;;  %v1193_v54 = vld [vmem:[#allocation20] sm:$0x1] }
 0x49c   :  { %v929_v22 = vshll.u32 %v7630_v9, 30  ;;  %v1016_v28 = vsel %vm1002_vm1, %v1013_v18, %v1015_v52  ;;  %v7637_v29 = vmul.u32.u64.low %v1017_v20, %v1012_v19  ;;  %v7638_v45 = vmul.u32.u64.high %v1017_v20, %v1012_v19, %v7637_v29 }
 0x49d   :  { %v1198_v6 = vmul.f32 1.442695, %v1195_v47  ;;  %v7641_v62 = vmul.u32.u64.low %v1017_v20, %v1016_v28  ;;  %v7642_v60 = vmul.u32.u64.high %v1017_v20, %v1016_v28, %v7641_v62  ;;  %v1196_v30 = vsub.f32 0.0, %v7566_v24 }
 0x49e   :  { %v930_v35 = vsub.s32 %v926_v31, %v929_v22  ;;  %v5198_v14 = vadd.s32 4294967169, %v1076_v13  ;;  %v1008_v34 = vsel %vm1002_vm1, %v1005_v25, %v1007_v26  ;;  %v8667_v39 = vand.u32 2147483647, %v7610_v48 }
 0x49f   :  { %v5873_v44 = vpack.c.bf16 %v1658_v58, %v1656_v51  ;;  %v1027_v49 = vadd.s32 1, %v7638_v45  ;;  %v1194_v5 = vsub.f32 0.0, %v1193_v54  ;;  %6130 = vpow2.f32 %v1198_v6 }
 0x4a0   :  { %v932_v33 = vsub.s32 0, %v930_v35  ;;  %v1082_v18 = vadd.s32 1, %v5198_v14  ;;  %v7649_v47 = vsub.s32 0, %v7456_v4  ;;  %v1024_v31 = vmul.u32 %v1017_v20, %v1008_v34 }
 0x4a1   :  { %5874 = vmatprep.subr.bf16.mxu1 %v5873_v44  ;;  %vm1026_vm7 = vc.u32 %v7642_v60, %v7637_v29  ;;  %v1200_v13 = vmul.f32 1.442695, %v1196_v30  ;;  %v1079_v25 = vand.u32 8388607, %v8667_v39  ;;  %v922_v62 = vadd.s32 %v7604_v8, %v7601_v7 }
 0x4a2   :  { %v5191_v19 = vmin.u32 %v932_v33, %v930_v35  ;;  %vm1083_vm8 = vcmp.gt.s32.totalorder %v1082_v18, 0  ;;  %v1028_v22 = vsel %vm1026_vm7, %v1027_v49, %v7638_v45  ;;  %v7657_v58 = vrot.slane %v1194_v5, %v7649_v47 }
 0x4a3   :  { %v1084_v52 = vsel %vm1083_vm8, %v1082_v18, 0  ;;  %v1029_v26 = vadd.s32 %v1028_v22, %v1024_v31  ;;  %6132 = vpow2.f32 %v1200_v13  ;;  %v1080_v54 = vor.u32 8388608, %v1079_v25  ;;  %v7672_v25 = vld [vmem:[#allocation19] ss:$0 sm:$0xff] }
 0x4a4   :  { %v934_v12 = vclz %v5191_v19  ;;  %v1086_v28 = vand.u32 31, %v1084_v52  ;;  %v7663_v14 = vshrl.u32 %v1084_v52, 5  ;;  %vm868_vm10 = vcmp.lt.s32.totalorder %v7559_v17, 0 }
 0x4a5   :  { %v1030_v6 = vadd.s32 536870912, %v1029_v26  ;;  %vm7685_vm11 = vcmp.le.f32.partialorder %v866_v21, 0.7853982  ;;  %vm971_vm5 = vcmp.lt.s32.totalorder %v7569_v27, 0  ;;  %vm7734_vm7 = vcmp.le.f32.partialorder %v969_v53, 0.7853982 }
 0x4a6   :  { %v5192_v51 = vadd.s32 4294967294, %v934_v12  ;;  %v1087_v20 = vsub.s32 32, %v1086_v28  ;;  %v1089_v33 = vshll.u32 %v6934_v55, %v1086_v28  ;;  %v1092_v7 = vshll.u32 %v6935_v59, %v1086_v28 }
 0x4a7   :  { %v7661_v45 = vshrl.u32 %v1030_v6, 30  ;;  %v1095_v8 = vshll.u32 %v6936_v61, %v1086_v28  ;;  %v1098_v6 = vshll.u32 %v6937_v2, %v1086_v28  ;;  %v1101_v3 = vshll.u32 %v6938_v10, %v1086_v28 }
 0x4a8   :  { %vm5193_vm9 = vcmp.lt.s32.totalorder %v5192_v51, 0  ;;  %v1090_v49 = vshrl.u32 %v6935_v59, %v1087_v20  ;;  %v1093_v18 = vshrl.u32 %v6936_v61, %v1087_v20  ;;  %v1096_v5 = vshrl.u32 %v6937_v2, %v1087_v20 }
 0x4a9   :  { %v937_v30 = vsel %vm5193_vm9, 0, %v5192_v51  ;;  %v1032_v19 = vshll.u32 %v7661_v45, 30  ;;  %v6131_v31 = vpop.eup %6130  ;;  %v1099_v52 = vshrl.u32 %v6938_v10, %v1087_v20  ;;  %v1102_v59 = vshrl.u32 %v6939_v16, %v1087_v20 }
 0x4aa   :  { %v938_v34 = vsub.s32 32, %v937_v30  ;;  %v942_v44 = vsub.s32 4294967266, %v937_v30  ;;  %v939_v13 = vshll.u32 %v930_v35, %v937_v30  ;;  %v1091_v0 = vor.u32 %v1090_v49, %v1089_v33 }
 0x4ab   :  { %v7675_v51 = vsub.s32 %v1029_v26, %v1032_v19  ;;  %v1094_v1 = vor.u32 %v1093_v18, %v1092_v7  ;;  %v1211_v35 = vsub.f32 %v6131_v31, %v7672_v25  ;;  %v1097_v30 = vor.u32 %v1096_v5, %v1095_v8 }
 0x4ac   :  { %v940_v12 = vshrl.u32 %v922_v62, %v938_v34  ;;  %v943_v22 = vadd.s32 127, %v942_v44  ;;  %v1100_v34 = vor.u32 %v1099_v52, %v1098_v6  ;;  %v1088_v16 = vshrl.u32 %v6934_v55, %v1087_v20 }
 0x4ad   :  { %v1035_v62 = vsub.s32 0, %v7675_v51  ;;  %v1103_v26 = vor.u32 %v1102_v59, %v1101_v3  ;;  %v1120_v28 = vshll.u32 %v1080_v54, 8  ;;  %vm1104_vm12 = vcmp.lt.s32.totalorder %v7663_v14, 1  ;;  %v6133_v49 = vpop.eup %6132 }
 0x4ae   :  { %v941_v39 = vor.u32 %v940_v12, %v939_v13  ;;  %v944_v61 = vshll.u32 %v943_v22, 23  ;;  %vm1105_vm13 = vcmp.lt.s32.totalorder %v7663_v14, 2  ;;  %vm1106_vm14 = vcmp.lt.s32.totalorder %v7663_v14, 3 }
 0x4af   :  { %v5195_v44 = vmin.u32 %v1035_v62, %v7675_v51  ;;  %vm1107_vm15 = vcmp.lt.s32.totalorder %v7663_v14, 4  ;;  %v1112_v21 = vsel %vm1104_vm12, %v1091_v0, %v1094_v1  ;;  %v1116_v55 = vsel %vm1104_vm12, %v1094_v1, %v1097_v30 }
 0x4b0   :  { %v945_v10 = vor.u32 4788187, %v944_v61  ;;  %v948_v33 = vcvt.s32.f32 %v941_v39  ;;  %v1109_v7 = vsel %vm1107_vm15, %v1097_v30, 2102212464  ;;  %v1113_v8 = vsel %vm1107_vm15, %v1100_v34, 920167782 }
 0x4b1   :  { %v1037_v19 = vclz %v5195_v44  ;;  %v1108_v20 = vsel %vm1104_vm12, %v1088_v16, %v1091_v0  ;;  %v1114_v39 = vsel %vm1106_vm14, %v1097_v30, %v1113_v8  ;;  %v1117_v54 = vsel %vm1107_vm15, %v1103_v26, 1326507024 }
 0x4b2   :  { %v946_v18 = vand.u32 2147483647, %v945_v10  ;;  %v1110_v31 = vsel %vm1106_vm14, %v1094_v1, %v1109_v7  ;;  %v1115_v13 = vsel %vm1105_vm13, %v1112_v21, %v1114_v39  ;;  %v1118_v12 = vsel %vm1106_vm14, %v1100_v34, %v1117_v54 }
 0x4b3   :  { %v5196_v5 = vadd.s32 4294967294, %v1037_v19  ;;  %v1119_v52 = vsel %vm1105_vm13, %v1116_v55, %v1118_v12  ;;  %v7699_v6 = vmul.u32.u64.low %v1120_v28, %v1115_v13  ;;  %v7700_v59 = vmul.u32.u64.high %v1120_v28, %v1115_v13, %v7699_v6 }
 0x4b4   :  { %v949_v3 = vmul.f32 %v948_v33, %v946_v18  ;;  %v1214_v61 = vmul.f32 %v1211_v35, %v1211_v35  ;;  %v7703_v62 = vmul.u32.u64.low %v1120_v28, %v1119_v52  ;;  %v7704_v0 = vmul.u32.u64.high %v1120_v28, %v1119_v52, %v7703_v62 }
 0x4b5   :  { %vm5197_vm1 = vcmp.lt.s32.totalorder %v5196_v5, 0  ;;  %v952_v30 = vsub.s32 4, %v7630_v9  ;;  %v1025_v34 = vadd.s32 %v7637_v29, %v7642_v60  ;;  %v1111_v35 = vsel %vm1105_vm13, %v1108_v20, %v1110_v31 }
 0x4b6   :  { %v950_v22 = vxor.u32 2147483648, %v949_v3  ;;  %v1040_v10 = vsel %vm5197_vm1, 0, %v5196_v5  ;;  %v1130_v44 = vadd.s32 1, %v7700_v59  ;;  %v1127_v60 = vmul.u32 %v1120_v28, %v1111_v35 }
 0x4b7   :  { %v1041_v26 = vsub.s32 32, %v1040_v10  ;;  %v1045_v33 = vsub.s32 4294967266, %v1040_v10  ;;  %v1042_v18 = vshll.u32 %v7675_v51, %v1040_v10  ;;  %v953_v29 = vsel %vm868_vm10, %v952_v30, %v7630_v9 }
 0x4b8   :  { %v951_v1 = vsel %vm868_vm10, %v950_v22, %v949_v3  ;;  %vm1129_vm3 = vc.u32 %v7704_v0, %v7699_v6  ;;  %v1223_v7 = vmul.f32 %v7657_v58, %v1214_v61  ;;  %v955_v51 = vsel %vm7685_vm11, 0, %v953_v29 }
 0x4b9   :  { %v954_v16 = vsel %vm7685_vm11, %v7559_v17, %v951_v1  ;;  %v1043_v21 = vshrl.u32 %v1025_v34, %v1041_v26  ;;  %v1046_v19 = vadd.s32 127, %v1045_v33  ;;  %v1131_v55 = vsel %vm1129_vm3, %v1130_v44, %v7700_v59 }
 0x4ba   :  { %6134 = vcosq.f32 %v954_v16  ;;  %v1132_v3 = vadd.s32 %v1131_v55, %v1127_v60  ;;  %v1226_v54 = vmul.f32 1.442695, %v1223_v7  ;;  %v959_v9 = vand.u32 3, %v955_v51  ;;  %v7754_v60 = vld [vmem:[#allocation17] ss:$0 sm:$0xff] }
 0x4bb   :  { %6136 = vsinq.f32 %v954_v16  ;;  %v1044_v14 = vor.u32 %v1043_v21, %v1042_v18  ;;  %v1047_v8 = vshll.u32 %v1046_v19, 23  ;;  %v1212_v28 = vsub.f32 %v6133_v49, %v7672_v25 }
 0x4bc   :  { %v1133_v39 = vadd.s32 536870912, %v1132_v3  ;;  %6138 = vpow2.f32 %v1226_v54  ;;  %vm964_vm8 = vcmp.eq.s32.totalorder %v959_v9, 2  ;;  %vm961_vm9 = vcmp.eq.s32.totalorder %v959_v9, 0 }
 0x4bd   :  { %v1048_v20 = vor.u32 4788187, %v1047_v8  ;;  %v1051_v31 = vcvt.s32.f32 %v1044_v14  ;;  %v1215_v49 = vmul.f32 %v1212_v28, %v1212_v28  ;;  %v1055_v16 = vsub.s32 4, %v7661_v45  ;;  %v1660_v28 = vld [vmem:[#allocation25 + $0x28] sm:$0xff] }
 0x4be   :  { %v7728_v13 = vshrl.u32 %v1133_v39, 30  ;;  %vm960_vm10 = vcmp.lt.s32.totalorder %v959_v9, 2  ;;  %vm958_vm11 = vweird.f32 %v7559_v17  ;;  %v1197_v44 = vsub.f32 0.0, %v7595_v36  ;;  %v1657_v9 = vld [vmem:[#allocation25 + $0x10] sm:$0xff] }
 0x4bf   :  { %v1049_v5 = vand.u32 2147483647, %v1048_v20  ;;  %vm1181_vm12 = vcmp.lt.f32.partialorder %v7556_v15, 5.0  ;;  %v1056_v29 = vsel %vm971_vm5, %v1055_v16, %v7661_v45  ;;  %v1224_v7 = vmul.f32 %v7657_v58, %v1215_v49  ;;  %v1655_v45 = vld [vmem:[#allocation25] sm:$0xff] }
 0x4c0   :  { %v1135_v52 = vshll.u32 %v7728_v13, 30  ;;  %v1202_v8 = vmul.f32 1.442695, %v1197_v44  ;;  %v8705_v55 = vmov 0.0   ;;  %v1058_v51 = vsel %vm7734_vm7, 0, %v1056_v29  ;;  %v1661_v44 = vld [vmem:[#allocation25 + $0x30] sm:$0xff] }
 0x4c1   :  { %v1052_v12 = vmul.f32 %v1051_v31, %v1049_v5  ;;  %v1327_v5 = vadd.f32 %v7754_v60, %v7544_v46  ;;  %v1228_v31 = vmul.f32 1.442695, %v1224_v7  ;;  %vm1384_vm14 = vcmask 523264  }
 0x4c2   :  { %v7738_v30 = vsub.s32 %v1132_v3, %v1135_v52  ;;  %v5202_v3 = vsel %vm1181_vm12, 1.0, %v8705_v55  ;;  %v1062_v52 = vand.u32 3, %v1058_v51  ;;  %v5875_v46 = vpack.c.bf16 %v1657_v9, %v1655_v45 }
 0x4c3   :  { %v1053_v62 = vxor.u32 2147483648, %v1052_v12 }
 0x4c4   :  { %v6135_v22 = vpop.eup %6134  ;;  %v1138_v33 = vsub.s32 0, %v7738_v30  ;;  %vm1067_vm15 = vcmp.eq.s32.totalorder %v1062_v52, 2  ;;  %vm1064_vm1 = vcmp.eq.s32.totalorder %v1062_v52, 0  ;;  %vm1063_vm3 = vcmp.lt.s32.totalorder %v1062_v52, 2 }
 0x4c5   :  { %v6137_v59 = vpop.eup %6136  ;;  %v965_v61 = vxor.u32 2147483648, %v6135_v22  ;;  %v1054_v10 = vsel %vm971_vm5, %v1053_v62, %v1052_v12  ;;  %v1662_v12 = vld [vmem:[#allocation25 + $0x38] sm:$0xff]  ;;  %vm1061_vm5 = vweird.f32 %v7569_v27  ;;  %v8707_v52 = vand.u32 2147483647, %v7610_v48 }
 0x4c6   :  { %v962_v1 = vxor.u32 2147483648, %v6137_v59  ;;  %v1057_v53 = vsel %vm7734_vm7, %v7569_v27, %v1054_v10  ;;  %v5199_v21 = vmin.u32 %v1138_v33, %v7738_v30  ;;  %v6139_v39 = vpop.eup %6138  ;;  %vm1182_vm7 = vcmp.lt.f32.partialorder %v7566_v24, 5.0 }
 0x4c7   :  { %v966_v34 = vsel %vm964_vm8, %v965_v61, %v6137_v59  ;;  %6140 = vcosq.f32 %v1057_v53  ;;  %v1128_v61 = vadd.s32 %v7699_v6, %v7704_v0  ;;  %v5203_v45 = vsel %vm1182_vm7, 1.0, %v8705_v55 }
 0x4c8   :  { %v963_v26 = vsel %vm961_vm9, %v6135_v22, %v962_v1  ;;  %6142 = vsinq.f32 %v1057_v53  ;;  %v1140_v17 = vclz %v5199_v21  ;;  %v1332_v27 = vadd.f32 %v7754_v60, %v7546_v57 }
 0x4c9   :  { %v967_v35 = vsel %vm960_vm10, %v963_v26, %v966_v34  ;;  %6144 = vpow2.f32 %v1202_v8  ;;  %v5877_v34 = vpack.c.bf16 %v1662_v12, %v1660_v28  ;;  %vm1074_vm8 = vcmp.lt.s32.totalorder %v7610_v48, 0 }
 0x4ca   :  { %v968_v18 = vsel %vm958_vm11, nan, %v967_v35  ;;  %v5200_v20 = vadd.s32 4294967294, %v1140_v17  ;;  %v1659_v35 = vld [vmem:[#allocation25 + $0x20] sm:$0xff]  ;;  %6146 = vpow2.f32 %v1228_v31  ;;  %vm1073_vm9 = vcmp.le.f32.partialorder %v8707_v52, 0.7853982 }
 0x4cb   :  { %v1175_v19 = vadd.f32 1.0, %v968_v18  ;;  %vm844_vm7 = vcmp.gt.f32.partialorder %v7595_v36, 0.01 }
 0x4cc   :  { %vm5201_vm13 = vcmp.lt.s32.totalorder %v5200_v20, 0 }
 0x4cd   :  { %v1178_v14 = vmul.f32 0.5, %v1175_v19  ;;  %v1143_v59 = vsel %vm5201_vm13, 0, %v5200_v20  ;;  %v5879_v19 = vpack.c.bf16 %v1661_v44, %v1659_v35  ;;  %vm1164_vm13 = vweird.f32 %v7610_v48 }
 0x4ce   :  { %v1144_v2 = vsub.s32 32, %v1143_v59  ;;  %v1148_v62 = vsub.s32 4294967266, %v1143_v59  ;;  %v1145_v26 = vshll.u32 %v7738_v30, %v1143_v59 }
 0x4cf   :  { %v7760_v54 = vmul.f32 %v5202_v3, %v1178_v14 }
 0x4d0   :  { %v1146_v53 = vshrl.u32 %v1128_v61, %v1144_v2  ;;  %v1149_v33 = vadd.s32 127, %v1148_v62  ;;  %v1158_v61 = vsub.s32 4, %v7728_v13 }
 0x4d1   :  { %v1232_v22 = vmul.f32 %v6139_v39, %v7760_v54  ;;  %v6141_v1 = vpop.eup %6140 }
 0x4d2   :  { %v6143_v10 = vpop.eup %6142  ;;  %v1068_v16 = vxor.u32 2147483648, %v6141_v1  ;;  %v1147_v0 = vor.u32 %v1146_v53, %v1145_v26  ;;  %v1150_v21 = vshll.u32 %v1149_v33, 23  ;;  %v1159_v57 = vsel %vm1074_vm8, %v1158_v61, %v7728_v13  ;;  %v1758_v61 = vld [vmem:[#allocation28 + $0x48] sm:$0xff] }
 0x4d3   :  { %v1340_v49 = vadd.f32 %v1327_v5, %v1232_v22  ;;  %v1065_v18 = vxor.u32 2147483648, %v6143_v10  ;;  %v6145_v51 = vpop.eup %6144  ;;  %v8706_v5 = vmov 0.0|0.0  }
 0x4d4   :  { %v1069_v6 = vsel %vm1067_vm15, %v1068_v16, %v6143_v10  ;;  %v1151_v7 = vor.u32 4788187, %v1150_v21  ;;  %v1154_v3 = vcvt.s32.f32 %v1147_v0  ;;  %v1213_v28 = vsub.f32 %v6145_v51, %v7672_v25  ;;  %v6147_v12 = vpop.eup %6146 }
 0x4d5   :  { %5211 = vmatmul.mubr.msk.f32.vlgmr.msra.gmra.mrb[8].mxu1 %vm1384_vm14, %v1340_v49  ;;  %5529 = vmatmul.mubr.msk.f32.vlgmr.msra.gmra.mrb[14].mxu0 %vm1384_vm14, %v1340_v49  ;;  %v1066_v30 = vsel %vm1064_vm1, %v6141_v1, %v1065_v18  ;;  %v1161_v49 = vsel %vm1073_vm9, 0, %v1159_v57  ;;  %vm1183_vm15 = vcmp.lt.f32.partialorder %v7595_v36, 5.0  ;;  %v1337_v21 = vadd.f32 %v7754_v60, %v7564_v23  ;;  %v5227_v60 = vld [vmem:[#allocation23] ss:$0 sm:$0xff]  ;;  %v1761_v57 = vld [vmem:[#allocation28 + $0x60] sm:$0xff] }
 0x4d6   :  { %1464 = vmatprep.mubr.f32.mxu1 %v8705_v55  ;;  %5531 = vmatprep.mubr.msk.f32.mxu0 %vm6931_vm0, %v8705_v55  ;;  %v1070_v29 = vsel %vm1063_vm3, %v1066_v30, %v1069_v6  ;;  %v1152_v8 = vand.u32 2147483647, %v1151_v7  ;;  %v1216_v1 = vmul.f32 %v1213_v28, %v1213_v28  ;;  %v5204_v6 = vsel %vm1183_vm15, 1.0, %v8705_v55  ;;  %v1756_v28 = vld [vmem:[#allocation28 + $0x38] sm:$0xff] }
 0x4d7   :  { %5876 = vmatpush1.bf16.msra.mxu1 %v5875_v46  ;;  %v1071_v17 = vsel %vm1061_vm5, nan, %v1070_v29  ;;  %v1165_v46 = vand.u32 3, %v1161_v49  ;;  %v6940_v49 = vmov 2   ;;  %vm1785_vm1 = vcmask 785408  }
 0x4d8   :  { %5878 = vmatprep.subr.bf16.mxu1 %v5877_v34  ;;  %v1176_v14 = vadd.f32 1.0, %v1071_v17  ;;  %v1155_v39 = vmul.f32 %v1154_v3, %v1152_v8  ;;  %v1225_v25 = vmul.f32 %v7657_v58, %v1216_v1  ;;  %v5226_v8 = vld [vmem:[#allocation22] ss:$0 sm:$0xff]  ;;  %6116 = vset.pattern.permute.xlu0 %v6940_v49  ;;  %vm842_vm3 = vcmp.gt.f32.partialorder %v7556_v15, 0.01 }
 0x4d9   :  { %vm1170_vm10 = vcmp.eq.s32.totalorder %v1165_v46, 2  ;;  %vm1167_vm11 = vcmp.eq.s32.totalorder %v1165_v46, 0  ;;  %vm1166_vm12 = vcmp.lt.s32.totalorder %v1165_v46, 2  ;;  %v1768_v46 = vld [vmem:[#allocation28 + $0x98] sm:$0xff]  ;;  %vm843_vm5 = vcmp.gt.f32.partialorder %v7566_v24, 0.01 }
 0x4da   :  { %v1179_v20 = vmul.f32 0.5, %v1176_v14  ;;  %v1156_v9 = vxor.u32 2147483648, %v1155_v39  ;;  %v1230_v34 = vmul.f32 1.442695, %v1225_v25  ;;  %v1764_v25 = vld [vmem:[#allocation28 + $0x78] sm:$0xff] }
 0x4db   :  { %5880 = vmatpush1.bf16.msra.mxu1 %v5879_v19 }
 0x4dc   :  { %5905 = vmatprep.subr.bf16.mxu1 %v8706_v5  ;;  %v7777_v31 = vmul.f32 %v5203_v45, %v1179_v20  ;;  %v1157_v59 = vsel %vm1074_vm8, %v1156_v9, %v1155_v39  ;;  %v1750_v20 = vld [vmem:[#allocation28 + $0x8] sm:$0xff]  ;;  %v1753_v39 = vld [vmem:[#allocation28 + $0x20] sm:$0xff]  ;;  %v1752_v9 = vld [vmem:[#allocation28 + $0x18] sm:$0xff] }
 0x4dd   :  { %v1160_v2 = vsel %vm1073_vm9, %v7610_v48, %v1157_v59  ;;  %v1749_v45 = vld [vmem:[#allocation28] sm:$0xff]  ;;  %v1755_v59 = vld [vmem:[#allocation28 + $0x30] sm:$0xff]  ;;  %vm5100_vm9 = vcmask 254976  }
 0x4de   :  { %v1233_v22 = vmul.f32 %v6147_v12, %v7777_v31  ;;  %6148 = vcosq.f32 %v1160_v2  ;;  %v1759_v12 = vld [vmem:[#allocation28 + $0x50] sm:$0xff] }
 0x4df   :  { %6150 = vsinq.f32 %v1160_v2  ;;  %v5885_v52 = vpack.c.bf16 %v1759_v12, %v1756_v28  ;;  %v1765_v2 = vld [vmem:[#allocation28 + $0x80] sm:$0xff]  ;;  %v1775_v28 = vld [vmem:[#allocation28 + $0xd0] sm:$0xff]  ;;  %v1778_v12 = vld [vmem:[#allocation28 + $0xe8] sm:$0xff] }
 0x4e0   :  { %v1341_v62 = vadd.f32 %v1332_v27, %v1233_v22  ;;  %6152 = vpow2.f32 %v1230_v34  ;;  %v5881_v27 = vpack.c.bf16 %v1753_v39, %v1750_v20  ;;  %v5883_v22 = vpack.c.bf16 %v1752_v9, %v1749_v45  ;;  %v1771_v34 = vld [vmem:[#allocation28 + $0xb0] sm:$0xff]  ;;  %v1766_v20 = vld [vmem:[#allocation28 + $0x88] sm:$0xff]  ;;  %v1769_v45 = vld [vmem:[#allocation28 + $0xa0] sm:$0xff] }
 0x4e2   :  { %5212 = vmatmul.mubr.msk.f32.gmra.mrb[10].mxu1 %vm1384_vm14, %v1341_v62  ;;  %5532 = vmatmul.mubr.msk.f32.gmra.mrb[16].mxu0 %vm1384_vm14, %v1341_v62  ;;  %v5887_v62 = vpack.c.bf16 %v1758_v61, %v1755_v59  ;;  %v1784_v59 = vld [vmem:[#allocation28 + $0x118] sm:$0xff] }
 0x4e3   :  { %1470 = vmatprep.mubr.f32.mxu1 %v8705_v55  ;;  %5534 = vmatprep.mubr.msk.f32.mxu0 %vm6931_vm0, %v8705_v55 }
 0x4e4   :  { %5882 = vmatprep.subr.bf16.mxu0 %v5881_v27  ;;  %v1772_v27 = vld [vmem:[#allocation28 + $0xb8] sm:$0xff] }
 0x4e5   :  { %5884 = vmatpush1.bf16.msra.mxu0 %v5883_v22  ;;  %v5915_v9 = vpack.c.bf16 %v1772_v27, %v1769_v45  ;;  %v5918_v22 = vpack.c.bf16 %v1778_v12, %v1775_v28  ;;  %v1622_v28 = vld [vmem:[#allocation38 + $0x10] sm:$0xff]  ;;  %v1623_v12 = vld [vmem:[#allocation38 + $0x18] sm:$0xff] }
 0x4e6   :  { %5886 = vmatprep.subr.bf16.mxu0 %v5885_v52  ;;  %v1781_v52 = vld [vmem:[#allocation28 + $0x100] sm:$0xff] }
 0x4e7   :  { %v5921_v61 = vpack.c.bf16 %v1784_v59, %v1781_v52 }
 0x4e8   :  { %v6149_v10 = vpop.eup %6148 }
 0x4e9   :  { %v6151_v16 = vpop.eup %6150  ;;  %v1171_v26 = vxor.u32 2147483648, %v6149_v10  ;;  %5888 = vmatpush1.bf16.msra.mxu0 %v5887_v62 }
 0x4ea   :  { %v1168_v53 = vxor.u32 2147483648, %v6151_v16  ;;  %v6153_v30 = vpop.eup %6152 }
 0x4eb   :  { %v1172_v13 = vsel %vm1170_vm10, %v1171_v26, %v6151_v16  ;;  %v5893_v16 = vpack.c.bf16 %v1771_v34, %v1768_v46  ;;  %v1767_v26 = vld [vmem:[#allocation28 + $0x90] sm:$0xff] }
 0x4ec   :  { %v1169_v33 = vsel %vm1167_vm11, %v6149_v10, %v1168_v53  ;;  %v5891_v10 = vpack.c.bf16 %v1764_v25, %v1761_v57  ;;  %v1770_v53 = vld [vmem:[#allocation28 + $0xa8] sm:$0xff] }
 0x4ed   :  { %v1173_v35 = vsel %vm1166_vm12, %v1169_v33, %v1172_v13  ;;  %v1774_v13 = vld [vmem:[#allocation28 + $0xc8] sm:$0xff]  ;;  %v1777_v33 = vld [vmem:[#allocation28 + $0xe0] sm:$0xff] }
 0x4ee   :  { %v1174_v44 = vsel %vm1164_vm13, nan, %v1173_v35  ;;  %v5895_v35 = vpack.c.bf16 %v1770_v53, %v1767_v26 }
 0x4ef   :  { %v1177_v18 = vadd.f32 1.0, %v1174_v44  ;;  %v5897_v44 = vpack.c.bf16 %v1777_v33, %v1774_v13  ;;  %v851_v13 = vmax.f32 %v7556_v15, 1e-09  ;;  %v852_v33 = vmax.f32 %v7566_v24, 1e-09 }
 0x4f1   :  { %v1180_v58 = vmul.f32 0.5, %v1177_v18  ;;  %v1773_v18 = vld [vmem:[#allocation28 + $0xc0] sm:$0xff] }
 0x4f3   :  { %v7798_v0 = vmul.f32 %v5204_v6, %v1180_v58  ;;  %v1776_v58 = vld [vmem:[#allocation28 + $0xd8] sm:$0xff] }
 0x4f4   :  { %v1780_v6 = vld [vmem:[#allocation28 + $0xf8] sm:$0xff] }
 0x4f5   :  { %v1234_v19 = vmul.f32 %v6153_v30, %v7798_v0  ;;  %v5899_v30 = vpack.c.bf16 %v1776_v58, %v1773_v18  ;;  %v7847_v18 = vsub.s32 1, %v7456_v4 }
 0x4f7   :  { %v1342_v29 = vadd.f32 %v1337_v21, %v1234_v19  ;;  %v1783_v21 = vld [vmem:[#allocation28 + $0x110] sm:$0xff] }
 0x4f8   :  { %v5901_v19 = vpack.c.bf16 %v1783_v21, %v1780_v6 }
 0x4f9   :  { %5213 = vmatmul.mubr.msk.f32.gmra.mrb[12].mxu1 %vm1384_vm14, %v1342_v29  ;;  %5535 = vmatmul.mubr.msk.f32.gmra.mrb[18].mxu0 %vm1384_vm14, %v1342_v29  ;;  %v1779_v29 = vld [vmem:[#allocation28 + $0xf0] sm:$0xff] }
 0x4fa   :  { %1742 = vmatprep.mubr.f32.mxu1 %v8705_v55  ;;  %1853 = vmatprep.mubr.f32.mxu0 %v8705_v55 }
 0x508   :  { %v1634_v48 = vpop.xlane.xlu1 %1633 }
 0x509   :  { %v1635_v7 = vmul.f32 0.03125, %v1634_v48  ;;  %v1782_v48 = vld [vmem:[#allocation28 + $0x108] sm:$0xff] }
 0x50b   :  { %v1636_v17 = vadd.f32 1e-05, %v1635_v7  ;;  %v5903_v7 = vpack.c.bf16 %v1782_v48, %v1779_v29 }
 0x50d   :  { %6154 = vrsqrt.f32 %v1636_v17  ;;  %v1751_v17 = vld [vmem:[#allocation28 + $0x10] sm:$0xff] }
 0x50e   :  { %6156 = vrcp.f32 %v851_v13 }
 0x50f   :  { %6158 = vrcp.f32 %v852_v33 }
 0x517   :  { %v6155_v14 = vpop.eup %6154 }
 0x518   :  { %v1638_v23 = vmul.f32 %v6155_v14, %v7552_v11  ;;  %v1762_v11 = vld [vmem:[#allocation28 + $0x68] sm:$0xff]  ;;  %v6157_v29 = vpop.eup %6156 }
 0x519   :  { %v5889_v1 = vpack.c.bf16 %v1765_v2, %v1762_v11  ;;  %v1754_v14 = vld [vmem:[#allocation28 + $0x28] sm:$0xff] }
 0x51a   :  { %v1646_v3 = vmul.f32 %v5226_v8, %v1638_v23  ;;  %v1757_v8 = vld [vmem:[#allocation28 + $0x40] sm:$0xff]  ;;  %v5906_v23 = vpack.c.bf16 %v1754_v14, %v1751_v17  ;;  %v6159_v17 = vpop.eup %6158 }
 0x51b   :  { %5890 = vmatprep.subr.bf16.mxu0 %v5889_v1 }
 0x51c   :  { %v1654_v51 = vadd.f32 %v5227_v60, %v1646_v3  ;;  %5892 = vmatpush1.bf16.msra.mxu0 %v5891_v10  ;;  %v1760_v60 = vld [vmem:[#allocation28 + $0x58] sm:$0xff] }
 0x51d   :  { %5894 = vmatprep.subr.bf16.mxu0 %v5893_v16  ;;  %v5909_v3 = vpack.c.bf16 %v1760_v60, %v1757_v8  ;;  %v861_v8 = vmul.f32 %v6159_v17, %v7528_v56  ;;  %v8710_v56 = vmov 0  }
 0x51e   :  { %5228 = vmatmul.mubr.msk.f32.vlgmr.msra.gmra.mrb[14].mxu1 %vm569_vm4, %v1654_v51  ;;  %v1763_v51 = vld [vmem:[#allocation28 + $0x70] sm:$0xff] }
 0x51f   :  { %5561 = vmatprep.mubr.msk.f32.mxu1 %vm6931_vm0, %v8705_v55  ;;  %5907 = vmatpush3.bf16.msra.mxu1 %v5906_v23  ;;  %v5912_v39 = vpack.c.bf16 %v1766_v20, %v1763_v51  ;;  %v6942_v23 = vmov 1   ;;  %v1621_v51 = vld [vmem:[#allocation38 + $0x8] sm:$0xff] }
 0x520   :  { %5896 = vmatpush1.bf16.msra.mxu0 %v5895_v35  ;;  %5908 = vmatprep.subr.bf16.mxu1 %v8706_v5  ;;  %v1663_v35 = vld [vmem:[#allocation26] sm:$0x3] }
 0x521   :  { %5898 = vmatprep.subr.bf16.mxu0 %v5897_v44  ;;  %v853_v44 = vmax.f32 %v7595_v36, 1e-09  ;;  %v1668_v58 = vrot.slane %v1663_v35, %v7649_v47  ;;  %v1672_v6 = vrot.slane %v1663_v35, %v7847_v18 }
 0x523   :  { %5910 = vmatpush3.bf16.msra.mxu1 %v5909_v3  ;;  %6160 = vrcp.f32 %v853_v44  ;;  %v1620_v3 = vld [vmem:[#allocation38] sm:$0xff] }
 0x524   :  { %5900 = vmatpush1.bf16.msra.mxu0 %v5899_v30  ;;  %5911 = vmatprep.subr.bf16.mxu1 %v8706_v5  ;;  %v7891_v45 = vpack.c.bf16 %v1621_v51, %v1620_v3 }
 0x525   :  { %5902 = vmatprep.subr.bf16.mxu0 %v5901_v19 }
 0x527   :  { %5913 = vmatpush3.bf16.msra.mxu1 %v5912_v39 }
 0x528   :  { %5904 = vmatpush1.bf16.msra.mxu0 %v5903_v7  ;;  %5914 = vmatprep.subr.bf16.mxu1 %v8706_v5  ;;  %v860_v7 = vmul.f32 %v6157_v29, %v7524_v50 }
 0x529   :  { %5564 = vmatprep.subr.mxu0 %v8705_v55 }
 0x52b   :  { %1854 = vmatmul.mubr.f32.vlgmr.msra.gmra.mrb[20].mxu0 %v8705_v55  ;;  %5916 = vmatpush3.bf16.msra.mxu1 %v5915_v9 }
 0x52c   :  { %5566 = vmatprep.mubr.msk.f32.mxu0 %vm6931_vm0, %v8705_v55  ;;  %5917 = vmatprep.subr.bf16.mxu1 %v8706_v5 }
 0x52d   :  { %v6161_v14 = vpop.eup %6160 }
 0x52e   :  { %v862_v50 = vmul.f32 %v6161_v14, %v7533_v63 }
 0x52f   :  { %5919 = vmatpush3.bf16.msra.mxu1 %v5918_v22  ;;  %v7911_v22 = vpack.c.bf16 %v1623_v12, %v1622_v28 }
 0x530   :  { %5920 = vmatprep.subr.bf16.mxu1 %v8706_v5 }
 0x533   :  { %5922 = vmatpush3.bf16.msra.mxu1 %v5921_v61 }
 0x534   :  { %5575 = vmatprep.subr.mxu1 %v8705_v55 }
 0x536   :  { %5562 = vmatmul.mubr.f32.vlgmr.msra.gmra.mrb[16].mxu1 %v8705_v55 }
 0x537   :  { %5577 = vmatprep.mubr.msk.f32.mxu1 %vm6931_vm0, %v8705_v55 }
 0x5a8   :  { %v7821_v11 = vpop.f32.mrb[8].mxu1  ;;  %v7823_v2 = vpop.f32.mrb[14].mxu0 }
 0x5a9   :  { %v7825_v62 = vpop.f32.mrb[9].mxu1  ;;  %v5530_v1 = vpop.f32.mrb[15].mxu0 }
 0x5b5   :  { %v7831_v57 = vpop.f32.mrb[10].mxu1  ;;  %v7833_v25 = vpop.f32.mrb[16].mxu0 }
 0x5b6   :  { %8708 = vst [vmem:[#allocation60_spill] sm:$0xff] %v7833_v25  ;;  %v7835_v46 = vpop.f32.mrb[11].mxu1  ;;  %v5533_v34 = vpop.f32.mrb[17].mxu0  ;;  %v2945_v25 = vld [vmem:[#allocation28 + $0x198] sm:$0xff] }
 0x5cc   :  { %v7837_v10 = vpop.f32.mrb[12].mxu1  ;;  %v7839_v16 = vpop.f32.mrb[18].mxu0 }
 0x5cd   :  { %8709 = vst [vmem:[#allocation61_spill] sm:$0xff] %v7839_v16  ;;  %v7841_v26 = vpop.f32.mrb[13].mxu1  ;;  %v5536_v53 = vpop.f32.mrb[19].mxu0 }
 0x5f1   :  { %v1744_v21 = vpop.f32.mrb[14].mxu1 }
 0x5f2   :  { %v1745_v30 = vadd.f32 %v1744_v21, %v1668_v58  ;;  %v1746_v19 = vpop.f32.mrb[15].mxu1  ;;  %v7921_v21 = vld [vmem:[#allocation34] sm:$0x7] }
 0x5f3   :  { %v1747_v48 = vadd.f32 %v1746_v19, %v1672_v6 }
 0x5f4   :  { %2012 = vrot.lane.b32.xlu1 %v1745_v30, %s6941_s24  ;;  %5565 = vmatpush3.msra.mxu0 %v1745_v30  ;;  %v1372_v30 = vrot.slane %v7921_v21, %v7649_v47 }
 0x5f5   :  { %2014 = vrot.lane.b32.xlu0 %v1747_v48, %s6941_s24  ;;  %5567 = vmatmul.mubr.msk.f32.vlgmr.msra.gmra.mrb[22].mxu0 %vm623_vm6, %v7479_v38 }
 0x5f6   :  { %5569 = vmatprep.mubr.msk.f32.mxu0 %vm6931_vm0, %v8705_v55  ;;  %5586 = vmatprep.subr.mxu0 %v8705_v55  ;;  %v1461_v19 = vadd.f32 %v7821_v11, %v1372_v30  ;;  %v1467_v48 = vadd.f32 %v7831_v57, %v1372_v30  ;;  %v1473_v17 = vadd.f32 %v7837_v10, %v1372_v30 }
 0x5f7   :  { %5587 = vmatpush3.msra.mxu0 %v8705_v55 }
 0x5f8   :  { %2421 = vperm.xlu1 %6114, %v860_v7   ;;  %5614 = vmatprep.subr.mxu0 %v8705_v55  ;;  %v5217_v29 = vmul.f32 -1.442695, %v1461_v19  ;;  %v5223_v14 = vmul.f32 -1.442695, %v1473_v17 }
 0x5f9   :  { %2498 = vperm.xlu0 %6116, %v860_v7   ;;  %5570 = vmatmul.mubr.msk.f32.gmra.mrb[24].mxu0 %vm623_vm6, %v7494_v41 }
 0x5fa   :  { %5572 = vmatprep.mubr.msk.f32.mxu0 %vm6931_vm0, %v8705_v55  ;;  %6162 = vpow2.f32 %v5217_v29 }
 0x5fc   :  { %2426 = vperm.xlu1 %6114, %v861_v8  }
 0x5fd   :  { %6119 = vset.pattern.permute.xlu0 %v6942_v23  ;;  %5573 = vmatmul.mubr.msk.f32.gmra.mrb[26].mxu0 %vm623_vm6, %v7508_v43 }
 0x5fe   :  { %2473 = vperm.xlu0 %6119, %v862_v50   ;;  %5588 = vmatprep.mubr.msk.f32.mxu0 %vm6931_vm0, %v8705_v55  ;;  %v7887_v63 = vpop.f32.mrb[20].mxu0 }
 0x5ff   :  { %v7889_v60 = vpop.f32.mrb[21].mxu0 }
 0x600   :  { %6115 = vset.pattern.permute.xlu1 %v6942_v23 }
 0x601   :  { %2465 = vperm.xlu1 %6115, %v860_v7   ;;  %5589 = vmatmul.mubr.msk.f32.vlgmr.msra.gmra.mrb[28].mxu0 %vm623_vm6, %v7474_v37  ;;  %v5220_v7 = vmul.f32 -1.442695, %v1467_v48 }
 0x602   :  { %5591 = vmatprep.mubr.msk.f32.mxu0 %vm6931_vm0, %v8705_v55  ;;  %6121 = vset.pattern.permute.xlu0 %v6940_v49 }
 0x603   :  { %6164 = vpow2.f32 %v5220_v7 }
 0x604   :  { %6166 = vpow2.f32 %v5223_v14 }
 0x605   :  { %2469 = vperm.xlu1 %6115, %v861_v8   ;;  %5592 = vmatmul.mubr.msk.f32.gmra.mrb[30].mxu0 %vm623_vm6, %v7491_v40 }
 0x606   :  { %5594 = vmatprep.mubr.msk.f32.mxu0 %vm6931_vm0, %v8705_v55 }
 0x609   :  { %6117 = vset.pattern.permute.xlu1 %v6940_v49  ;;  %5595 = vmatmul.mubr.msk.f32.gmra.mrb[32].mxu0 %vm623_vm6, %v7505_v42 }
 0x60a   :  { %2502 = vperm.xlu1 %6117, %v861_v8   ;;  %5616 = vmatprep.mubr.msk.f32.mxu0 %vm6931_vm0, %v8705_v55  ;;  %v6163_v8 = vpop.eup %6162 }
 0x60d   :  { %v6165_v23 = vpop.eup %6164 }
 0x60e   :  { %6118 = vset.pattern.permute.xlu1 %v8710_v56  ;;  %v1587_v56 = vadd.f32 1.0, %v6165_v23  ;;  %v6167_v3 = vpop.eup %6166 }
 0x60f   :  { %2431 = vperm.xlu1 %6118, %v862_v50   ;;  %v1590_v51 = vadd.f32 1.0, %v6167_v3 }
 0x613   :  { %6120 = vset.pattern.permute.xlu1 %v6940_v49  ;;  %v7909_v49 = vpop.f32.mrb[16].mxu1 }
 0x614   :  { %2506 = vperm.xlu1 %6120, %v862_v50   ;;  %v5563_v9 = vpop.f32.mrb[17].mxu1  ;;  %v1584_v50 = vadd.f32 1.0, %v6163_v8 }
 0x616   :  { %6168 = vrcp.f32 %v1584_v50 }
 0x617   :  { %6170 = vrcp.f32 %v1587_v56 }
 0x618   :  { %6172 = vrcp.f32 %v1590_v51 }
 0x620   :  { %v6169_v11 = vpop.eup %6168 }
 0x621   :  { %v1611_v57 = vmul.f32 %v6169_v11, %v1461_v19 }
 0x666   :  { %v2013_v20 = vpop.permute.xlu1 %2012 }
 0x667   :  { %v2015_v39 = vpop.permute.xlu0 %2014 }
 0x668   :  { %v2016_v27 = vsel %vm1785_vm1, %v2013_v20, %v2015_v39  ;;  %v6171_v39 = vpop.eup %6170 }
 0x669   :  { %5576 = vmatpush3.msra.mxu1 %v2016_v27 }
 0x66a   :  { %5578 = vmatmul.mubr.msk.f32.vlgmr.msra.gmra.mrb[18].mxu1 %vm623_vm6, %v7474_v37  ;;  %5923 = vmatprep.subr.bf16.mxu1 %v8706_v5 }
 0x66b   :  { %5580 = vmatprep.mubr.msk.f32.mxu1 %vm6931_vm0, %v8705_v55  ;;  %5925 = vmatpush3.bf16.msra.mxu1 %v7891_v45 }
 0x66c   :  { %5926 = vmatprep.subr.bf16.mxu1 %v8706_v5 }
 0x66e   :  { %5581 = vmatmul.mubr.msk.f32.gmra.mrb[20].mxu1 %vm623_vm6, %v7491_v40 }
 0x66f   :  { %5583 = vmatprep.mubr.msk.f32.mxu1 %vm6931_vm0, %v8705_v55  ;;  %5928 = vmatpush3.bf16.msra.mxu1 %v7911_v22 }
 0x670   :  { %5929 = vmatprep.subr.bf16.mxu1 %v8706_v5 }
 0x672   :  { %5584 = vmatmul.mubr.msk.f32.gmra.mrb[22].mxu1 %vm623_vm6, %v7505_v42 }
 0x673   :  { %5605 = vmatprep.mubr.msk.f32.mxu1 %vm6931_vm0, %v8705_v55 }
 0x677   :  { %v7928_v20 = vpop.permute.xlu1 %2421 }
 0x678   :  { %v7968_v56 = vpop.permute.xlu0 %2498 }
 0x67b   :  { %v7932_v12 = vpop.permute.xlu1 %2426 }
 0x680   :  { %v7945_v29 = vpop.permute.xlu1 %2465 }
 0x684   :  { %v7962_v23 = vpop.permute.xlu1 %2469 }
 0x689   :  { %v7976_v11 = vpop.permute.xlu1 %2502 }
 0x6c8   :  { %v1996_v52 = vpop.f32.mrb[22].mxu0 }
 0x6c9   :  { %v5568_v59 = vpop.f32.mrb[23].mxu0 }
 0x6ca   :  { %v1614_v59 = vmul.f32 %v6171_v39, %v1467_v48  ;;  %v7985_v39 = vld [vmem:[#allocation40] sm:$0xff] }
 0x6cb   :  { %5615 = vmatpush3.msra.mxu0 %v7985_v39 }
 0x6cc   :  { %v2001_v61 = vpop.f32.mrb[24].mxu0 }
 0x6cd   :  { %v5571_v1 = vpop.f32.mrb[25].mxu0 }
 0x6d0   :  { %v2006_v34 = vpop.f32.mrb[26].mxu0 }
 0x6d1   :  { %v5574_v53 = vpop.f32.mrb[27].mxu0 }
 0x6d2   :  { %v6173_v53 = vpop.eup %6172 }
 0x6d4   :  { %v7915_v13 = vpop.f32.mrb[28].mxu0 }
 0x6d5   :  { %v5590_v33 = vpop.f32.mrb[29].mxu0 }
 0x6d8   :  { %v7917_v35 = vpop.f32.mrb[30].mxu0 }
 0x6d9   :  { %v5593_v44 = vpop.f32.mrb[31].mxu0 }
 0x6dc   :  { %v7919_v58 = vpop.f32.mrb[32].mxu0 }
 0x6dd   :  { %v5596_v6 = vpop.f32.mrb[33].mxu0 }
 0x73d   :  { %v2084_v27 = vpop.f32.mrb[18].mxu1 }
 0x73e   :  { %v2178_v9 = vmul.f32 %v2084_v27, %v1996_v52  ;;  %v7930_v10 = vmul.f32 %v2084_v27, %v1611_v57  ;;  %v5579_v28 = vpop.f32.mrb[19].mxu1  ;;  %v1617_v52 = vmul.f32 %v6173_v53, %v1473_v17 }
 0x740   :  { %v2181_v1 = vmul.f32 %v2178_v9, %v1611_v57  ;;  %2407 = vrot.lane.b32.xlu1 %v7930_v10, %s6943_s14  ;;  %v2434_v8 = vmul.f32 %v7928_v20, %v7930_v10  ;;  %v2476_v50 = vmul.f32 %v7945_v29, %v7930_v10  ;;  %v2509_v3 = vmul.f32 %v7968_v56, %v7930_v10 }
 0x741   :  { %v2089_v33 = vpop.f32.mrb[20].mxu1 }
 0x742   :  { %v2179_v44 = vmul.f32 %v2089_v33, %v2001_v61  ;;  %v7936_v6 = vmul.f32 %v2089_v33, %v1614_v59  ;;  %v5582_v30 = vpop.f32.mrb[21].mxu1  ;;  %5606 = vmatmul.mubr.msk.f32.vlgmr.msra.gmra.mrb[24].mxu1 %vm569_vm4, %v2181_v1 }
 0x743   :  { %5608 = vmatprep.mubr.msk.f32.mxu1 %vm6931_vm0, %v8705_v55 }
 0x744   :  { %v2182_v19 = vmul.f32 %v2179_v44, %v1614_v59  ;;  %2452 = vrot.lane.b32.xlu1 %v7930_v10, %s6941_s24  ;;  %2409 = vrot.lane.b32.xlu0 %v7936_v6, %s6943_s14  ;;  %v2477_v51 = vmul.f32 %v7962_v23, %v7936_v6  ;;  %v2510_v57 = vmul.f32 %v7976_v11, %v7936_v6 }
 0x745   :  { %v2094_v48 = vpop.f32.mrb[22].mxu1 }
 0x746   :  { %v2180_v61 = vmul.f32 %v2094_v48, %v2006_v34  ;;  %v7947_v7 = vmul.f32 %v2094_v48, %v1617_v52  ;;  %v5585_v14 = vpop.f32.mrb[23].mxu1  ;;  %5609 = vmatmul.mubr.msk.f32.gmra.mrb[26].mxu1 %vm569_vm4, %v2182_v19  ;;  %v2435_v34 = vmul.f32 %v7932_v12, %v7936_v6 }
 0x747   :  { %5611 = vmatprep.mubr.msk.f32.mxu1 %vm6931_vm0, %v8705_v55 }
 0x748   :  { %v2183_v17 = vmul.f32 %v2180_v61, %v1617_v52  ;;  %2454 = vrot.lane.b32.xlu0 %v7936_v6, %s6941_s24  ;;  %2440 = vrot.lane.b32.xlu1 %v2434_v8, %s6908_s13 }
 0x74a   :  { %5612 = vmatmul.mubr.msk.f32.gmra.mrb[28].mxu1 %vm569_vm4, %v2183_v17 }
 0x74b   :  { %5631 = vmatprep.mubr.msk.f32.mxu1 %vm6931_vm0, %v8705_v55 }
 0x74c   :  { %2442 = vrot.lane.b32.xlu0 %v2435_v34, %s6908_s13  ;;  %2482 = vrot.lane.b32.xlu1 %v2476_v50, %s6943_s14 }
 0x750   :  { %2515 = vrot.lane.b32.xlu1 %v2509_v3, %s6941_s24  ;;  %2484 = vrot.lane.b32.xlu0 %v2477_v51, %s6943_s14 }
 0x754   :  { %2517 = vrot.lane.b32.xlu0 %v2510_v57, %s6941_s24  ;;  %2411 = vrot.lane.b32.xlu1 %v7947_v7, %s6943_s14 }
 0x758   :  { %2456 = vrot.lane.b32.xlu0 %v7947_v7, %s6941_s24 }
 0x815   :  { %v2259_v27 = vpop.f32.mrb[24].mxu1 }
 0x816   :  { %v5241_v9 = vmul.f32 -1.442695, %v2259_v27  ;;  %v5607_v28 = vpop.f32.mrb[25].mxu1 }
 0x818   :  { %6174 = vpow2.f32 %v5241_v9 }
 0x819   :  { %v2264_v59 = vpop.f32.mrb[26].mxu1 }
 0x81a   :  { %v5242_v1 = vmul.f32 -1.442695, %v2264_v59  ;;  %v5610_v53 = vpop.f32.mrb[27].mxu1 }
 0x81b   :  { %v8003_v53 = vpop.permute.xlu0 %2473 }
 0x81c   :  { %6176 = vpow2.f32 %v5242_v1 }
 0x81d   :  { %v2269_v33 = vpop.f32.mrb[28].mxu1 }
 0x81e   :  { %v5243_v44 = vmul.f32 -1.442695, %v2269_v33  ;;  %v5613_v30 = vpop.f32.mrb[29].mxu1 }
 0x81f   :  { %v2410_v30 = vpop.permute.xlu0 %2409 }
 0x820   :  { %6178 = vpow2.f32 %v5243_v44 }
 0x822   :  { %v6175_v52 = vpop.eup %6174 }
 0x823   :  { %v2282_v19 = vadd.f32 1.0, %v6175_v52 }
 0x825   :  { %6180 = vrcp.f32 %v2282_v19 }
 0x826   :  { %v6177_v48 = vpop.eup %6176 }
 0x827   :  { %v2283_v61 = vadd.f32 1.0, %v6177_v48  ;;  %v2455_v48 = vpop.permute.xlu0 %2454 }
 0x829   :  { %6182 = vrcp.f32 %v2283_v61 }
 0x82a   :  { %v6179_v14 = vpop.eup %6178 }
 0x82b   :  { %v2284_v8 = vadd.f32 1.0, %v6179_v14 }
 0x82d   :  { %6184 = vrcp.f32 %v2284_v8 }
 0x82f   :  { %v6181_v17 = vpop.eup %6180 }
 0x830   :  { %v2291_v34 = vmul.f32 %v6181_v17, %v2259_v27 }
 0x832   :  { %v2294_v50 = vmul.f32 %v2291_v34, %v7760_v54  ;;  %v2443_v34 = vpop.permute.xlu0 %2442 }
 0x833   :  { %v6183_v3 = vpop.eup %6182 }
 0x834   :  { %v2292_v51 = vmul.f32 %v6183_v3, %v2264_v59  ;;  %5617 = vmatmul.mubr.msk.f32.vlgmr.msra.gmra.mrb[34].mxu0 %vm623_vm6, %v2294_v50  ;;  %v7999_v59 = vpop.permute.xlu1 %2431 }
 0x835   :  { %5619 = vmatprep.mubr.msk.f32.mxu0 %vm6931_vm0, %v8705_v55  ;;  %v2436_v17 = vmul.f32 %v7999_v59, %v7947_v7 }
 0x836   :  { %v2295_v57 = vmul.f32 %v2292_v51, %v7777_v31 }
 0x837   :  { %v6185_v9 = vpop.eup %6184 }
 0x838   :  { %v2293_v28 = vmul.f32 %v6185_v9, %v2269_v33  ;;  %5620 = vmatmul.mubr.msk.f32.gmra.mrb[36].mxu0 %vm623_vm6, %v2295_v57  ;;  %v8001_v1 = vpop.permute.xlu1 %2506  ;;  %v2478_v57 = vmul.f32 %v8003_v53, %v7947_v7 }
 0x839   :  { %5622 = vmatprep.mubr.msk.f32.mxu0 %vm6931_vm0, %v8705_v55  ;;  %v2511_v51 = vmul.f32 %v8001_v1, %v7947_v7 }
 0x83a   :  { %v2296_v27 = vmul.f32 %v2293_v28, %v7798_v0  ;;  %v2417_v28 = vmul.f32 %v2410_v30, %v7917_v35 }
 0x83c   :  { %5623 = vmatmul.mubr.msk.f32.gmra.mrb[38].mxu0 %vm623_vm6, %v2296_v27  ;;  %v2408_v44 = vpop.permute.xlu1 %2407 }
 0x83d   :  { %2922 = vmatprep.mubr.f32.mxu0 %v8705_v55  ;;  %v2416_v9 = vmul.f32 %v2408_v44, %v7915_v13 }
 0x840   :  { %v2453_v52 = vpop.permute.xlu1 %2452 }
 0x844   :  { %v2441_v8 = vpop.permute.xlu1 %2440 }
 0x848   :  { %v2483_v27 = vpop.permute.xlu1 %2482 }
 0x907   :  { %v2372_v33 = vpop.f32.mrb[34].mxu0 }
 0x908   :  { %2392 = vrot.lane.b32.xlu1 %v2372_v33, %s6908_s13  ;;  %v5618_v19 = vpop.f32.mrb[35].mxu0  ;;  %v2485_v33 = vpop.permute.xlu0 %2484 }
 0x909   :  { %v2450_v19 = vadd.f32 %v2443_v34, %v2417_v28  ;;  %v2495_v34 = vmul.f32 %v7936_v6, %v7917_v35 }
 0x90b   :  { %v2377_v61 = vpop.f32.mrb[36].mxu0 }
 0x90c   :  { %2394 = vrot.lane.b32.xlu0 %v2377_v61, %s6908_s13  ;;  %v5621_v14 = vpop.f32.mrb[37].mxu0  ;;  %v2449_v61 = vadd.f32 %v2441_v8, %v2416_v9  ;;  %v2518_v30 = vpop.permute.xlu0 %2517 }
 0x90d   :  { %v2461_v14 = vmul.f32 %v2453_v52, %v7915_v13  ;;  %v2494_v52 = vmul.f32 %v7930_v10, %v7915_v13  ;;  %v2525_v8 = vadd.f32 %v2518_v30, %v2495_v34 }
 0x90f   :  { %v2382_v50 = vpop.f32.mrb[38].mxu0  ;;  %v2491_v44 = vadd.f32 %v2483_v27, %v2461_v14 }
 0x910   :  { %2444 = vrot.lane.b32.xlu0 %v2436_v17, %s6908_s13  ;;  %2396 = vrot.lane.b32.xlu1 %v2382_v50, %s6908_s13  ;;  %v5624_v3 = vpop.f32.mrb[39].mxu0  ;;  %v2462_v17 = vmul.f32 %v2455_v48, %v7917_v35 }
 0x911   :  { %v2516_v3 = vpop.permute.xlu1 %2515 }
 0x912   :  { %v2492_v50 = vadd.f32 %v2485_v33, %v2462_v17  ;;  %v2524_v48 = vadd.f32 %v2516_v3, %v2494_v52 }
 0x914   :  { %2519 = vrot.lane.b32.xlu0 %v2511_v51, %s6941_s24  ;;  %2486 = vrot.lane.b32.xlu1 %v2478_v57, %s6943_s14  ;;  %v2457_v57 = vpop.permute.xlu0 %2456 }
 0x915   :  { %v2412_v51 = vpop.permute.xlu1 %2411  ;;  %v2463_v17 = vmul.f32 %v2457_v57, %v7919_v58 }
 0x916   :  { %v2418_v35 = vmul.f32 %v2412_v51, %v7919_v58 }
 0x918   :  { %2544 = vrot.lane.b32.xlu0 %v2450_v19, %s6908_s13  ;;  %2542 = vrot.lane.b32.xlu1 %v2449_v61, %s6908_s13 }
 0x91c   :  { %2556 = vrot.lane.b32.xlu0 %v2492_v50, %s6908_s13  ;;  %2554 = vrot.lane.b32.xlu1 %v2491_v44, %s6908_s13 }
 0x920   :  { %2568 = vrot.lane.b32.xlu0 %v2525_v8, %s6908_s13  ;;  %2566 = vrot.lane.b32.xlu1 %v2524_v48, %s6908_s13 }
 0x97a   :  { %v2393_v9 = vpop.permute.xlu1 %2392 }
 0x97b   :  { %v2401_v28 = vmul.f32 %v2393_v9, %v7930_v10  ;;  %v2496_v10 = vmul.f32 %v7947_v7, %v7919_v58 }
 0x97d   :  { %2530 = vrot.lane.b32.xlu1 %v2401_v28, %s6941_s24 }
 0x97e   :  { %v2395_v27 = vpop.permute.xlu0 %2394 }
 0x97f   :  { %v2402_v33 = vmul.f32 %v2395_v27, %v7936_v6 }
 0x981   :  { %2532 = vrot.lane.b32.xlu0 %v2402_v33, %s6941_s24 }
 0x982   :  { %v2445_v13 = vpop.permute.xlu0 %2444  ;;  %v2397_v19 = vpop.permute.xlu1 %2396 }
 0x983   :  { %v2403_v61 = vmul.f32 %v2397_v19, %v7947_v7  ;;  %v2451_v14 = vadd.f32 %v2445_v13, %v2418_v35  ;;  %v8056_v35 = vsel %vm842_vm3, 1.0, %v8705_v55  ;;  %v8059_v13 = vsel %vm843_vm5, 1.0, %v8705_v55 }
 0x985   :  { %2546 = vrot.lane.b32.xlu0 %v2451_v14, %s6908_s13  ;;  %2534 = vrot.lane.b32.xlu1 %v2403_v61, %s6941_s24 }
 0x986   :  { %v2520_v50 = vpop.permute.xlu0 %2519  ;;  %v2487_v6 = vpop.permute.xlu1 %2486 }
 0x987   :  { %v2526_v44 = vadd.f32 %v2520_v50, %v2496_v10  ;;  %v2493_v3 = vadd.f32 %v2487_v6, %v2463_v17  ;;  %v5179_v17 = vld [vmem:[#allocation13] ss:$0 sm:$0xff] }
 0x988   :  { %vm620_vm8 = vcmp.eq.s32.totalorder %v7456_v4, %v5179_v17 }
 0x989   :  { %2570 = vrot.lane.b32.xlu0 %v2526_v44, %s6908_s13  ;;  %2558 = vrot.lane.b32.xlu1 %v2493_v3, %s6908_s13 }
 0x98a   :  { %v2543_v30 = vpop.permute.xlu1 %2542  ;;  %v2545_v34 = vpop.permute.xlu0 %2544 }
 0x98d   :  { %2745 = vrot.lane.b32.xlu0 %v7887_v63, %s6941_s24  ;;  %2751 = vrot.lane.b32.xlu1 %v7889_v60, %s6941_s24 }
 0x98e   :  { %v2555_v52 = vpop.permute.xlu1 %2554  ;;  %v2557_v8 = vpop.permute.xlu0 %2556 }
 0x992   :  { %v2567_v48 = vpop.permute.xlu1 %2566  ;;  %v2569_v58 = vpop.permute.xlu0 %2568 }
 0x9ef   :  { %v2531_v7 = vpop.permute.xlu1 %2530 }
 0x9f0   :  { %v2575_v51 = vsel %vm569_vm4, %v2531_v7, %v2543_v30  ;;  %v2660_v30 = vld [vmem:[#allocation29] sm:$0xff] }
 0x9f1   :  { %v2578_v57 = vsel %vm1384_vm14, %v2575_v51, %v2555_v52  ;;  %v8070_v52 = vsel %vm844_vm7, 1.0, %v8705_v55 }
 0x9f2   :  { %v2581_v28 = vsel %vm1785_vm1, %v2578_v57, %v2567_v48  ;;  %v8075_v48 = vsel %vm620_vm8, 1.0, %v8705_v55 }
 0x9f3   :  { %v2533_v9 = vpop.permute.xlu0 %2532  ;;  %v2584_v61 = vmul.f32 %v8056_v35, %v2581_v28  ;;  %v2663_v28 = vld [vmem:[#allocation29 + $0x18] sm:$0xff] }
 0x9f4   :  { %v2576_v27 = vsel %vm569_vm4, %v2533_v9, %v2545_v34  ;;  %v2661_v34 = vld [vmem:[#allocation29 + $0x8] sm:$0xff]  ;;  %v2662_v9 = vld [vmem:[#allocation29 + $0x10] sm:$0xff] }
 0x9f5   :  { %v2579_v33 = vsel %vm1384_vm14, %v2576_v27, %v2557_v8  ;;  %v5933_v7 = vpack.c.bf16 %v2661_v34, %v2660_v30  ;;  %v5936_v27 = vpack.c.bf16 %v2663_v28, %v2662_v9 }
 0x9f6   :  { %v2582_v19 = vsel %vm1785_vm1, %v2579_v33, %v2569_v58 }
 0x9f7   :  { %v2585_v15 = vmul.f32 %v8059_v13, %v2582_v19  ;;  %v2547_v24 = vpop.permute.xlu0 %2546  ;;  %v2535_v14 = vpop.permute.xlu1 %2534 }
 0x9f8   :  { %v2577_v50 = vsel %vm569_vm4, %v2535_v14, %v2547_v24 }
 0x9f9   :  { %v5930_v10 = vpack.c.bf16 %v2585_v15, %v2584_v61  ;;  %v5248_v61 = vld [vmem:[#allocation31] ss:$0 sm:$0xff] }
 0x9fb   :  { %v2571_v6 = vpop.permute.xlu0 %2570  ;;  %5931 = vmatpush3.bf16.msra.mxu1 %v5930_v10  ;;  %v2559_v44 = vpop.permute.xlu1 %2558 }
 0x9fc   :  { %v2580_v3 = vsel %vm1384_vm14, %v2577_v50, %v2559_v44  ;;  %5629 = vmatprep.subr.mxu1 %v8705_v55 }
 0x9fd   :  { %v2583_v8 = vsel %vm1785_vm1, %v2580_v3, %v2571_v6 }
 0x9fe   :  { %v2586_v36 = vmul.f32 %v8070_v52, %v2583_v8 }
 0x9ff   :  { %v2752_v58 = vpop.permute.xlu1 %2751  ;;  %v2746_v17 = vpop.permute.xlu0 %2745 }
 0xa00   :  { %v2760_v51 = vmul.f32 %v2752_v58, %v7889_v60  ;;  %5630 = vmatpush3.msra.mxu1 %v2586_v36  ;;  %v2754_v57 = vmul.f32 %v2752_v58, %v7887_v63  ;;  %v2748_v50 = vmul.f32 %v2746_v17, %v7887_v63  ;;  %v2839_v17 = vld [vmem:[#allocation25 + $0x68] sm:$0xff] }
 0xa01   :  { %5632 = vmatmul.mubr.msk.f32.vlgmr.msra.gmra.mrb[30].mxu1 %vm411_vm2, %v8075_v48  ;;  %5932 = vmatprep.subr.bf16.mxu1 %v8706_v5 }
 0xa02   :  { %2762 = vrot.lane.b32.xlu0 %v2760_v51, %s6943_s14  ;;  %2756 = vrot.lane.b32.xlu1 %v2754_v57, %s6908_s13 }
 0xa03   :  { %5934 = vmatpush3.bf16.msra.mxu1 %v5933_v7  ;;  %5642 = vmatprep.mubr.msk.f32.mxu1 %vm6931_vm0, %v8705_v55 }
 0xa04   :  { %5935 = vmatprep.subr.bf16.mxu1 %v8706_v5 }
 0xa07   :  { %5937 = vmatpush3.bf16.msra.mxu1 %v5936_v27  ;;  %v2835_v27 = vld [vmem:[#allocation25 + $0x48] sm:$0xff] }
 0xa74   :  { %v2757_v10 = vpop.permute.xlu1 %2756  ;;  %v2763_v44 = vpop.permute.xlu0 %2762 }
 0xa75   :  { %v2759_v6 = vadd.f32 %v2757_v10, %v2748_v50  ;;  %v2841_v10 = vld [vmem:[#allocation25 + $0x78] sm:$0xff] }
 0xa77   :  { %v2765_v3 = vadd.f32 %v2763_v44, %v2759_v6  ;;  %v5942_v6 = vpack.c.bf16 %v2841_v10, %v2839_v17  ;;  %v2838_v44 = vld [vmem:[#allocation25 + $0x60] sm:$0xff] }
 0xa78   :  { %v2946_v17 = vld [vmem:[#allocation28 + $0x1a0] sm:$0xff] }
 0xa79   :  { %v2942_v10 = vld [vmem:[#allocation28 + $0x180] sm:$0xff] }
 0xad4   :  { %v2656_v33 = vpop.f32.mrb[30].mxu1 }
 0xad5   :  { %v5633_v19 = vpop.f32.mrb[31].mxu1  ;;  %5643 = vmatmul.mubr.msk.f32.vlgmr.msra.gmra.mrb[32].mxu1 %vm569_vm4, %v2656_v33 }
 0xad6   :  { %3033 = vmatprep.mubr.f32.mxu1 %v8705_v55  ;;  %v2837_v19 = vld [vmem:[#allocation25 + $0x58] sm:$0xff] }
 0xba8   :  { %v2740_v15 = vpop.f32.mrb[32].mxu1 }
 0xba9   :  { %v8089_v24 = vadd.f32 %v5248_v61, %v2740_v15  ;;  %v5644_v14 = vpop.f32.mrb[33].mxu1  ;;  %v2834_v61 = vld [vmem:[#allocation25 + $0x40] sm:$0xff]  ;;  %v5938_v15 = vpack.c.bf16 %v2837_v19, %v2835_v27  ;;  %v2936_v27 = vld [vmem:[#allocation28 + $0x150] sm:$0xff]  ;;  %v2939_v19 = vld [vmem:[#allocation28 + $0x168] sm:$0xff] }
 0xbaa   :  { %v2836_v14 = vld [vmem:[#allocation25 + $0x50] sm:$0xff] }
 0xbab   :  { %2767 = vrot.lane.b32.xlu0 %v8089_v24, %s6943_s14  ;;  %2795 = vrot.lane.b32.xlu1 %v8089_v24, %s6941_s24  ;;  %v5940_v50 = vpack.c.bf16 %v2836_v14, %v2834_v61  ;;  %v5952_v61 = vpack.c.bf16 %v2939_v19, %v2936_v27  ;;  %v2943_v14 = vld [vmem:[#allocation28 + $0x188] sm:$0xff]  ;;  %v2964_v27 = vld [vmem:[#allocation28 + $0x230] sm:$0xff] }
 0xbac   :  { %5939 = vmatprep.subr.bf16.mxu0 %v5938_v15  ;;  %v5954_v15 = vpack.c.bf16 %v2946_v17, %v2943_v14  ;;  %v2960_v19 = vld [vmem:[#allocation28 + $0x210] sm:$0xff] }
 0xbad   :  { %5941 = vmatpush1.bf16.msra.mxu0 %v5940_v50  ;;  %v5956_v50 = vpack.c.bf16 %v2945_v25, %v2942_v10 }
 0xbae   :  { %5943 = vmatprep.subr.bf16.mxu0 %v5942_v6  ;;  %v2952_v6 = vld [vmem:[#allocation28 + $0x1d0] sm:$0xff] }
 0xc1d   :  { %v2796_v30 = vpop.permute.xlu1 %2795  ;;  %v8097_v36 = vpop.permute.xlu0 %2767 }
 0xc1e   :  { %v2798_v34 = vmul.f32 %v2796_v30, %v2765_v3  ;;  %v2840_v3 = vld [vmem:[#allocation25 + $0x70] sm:$0xff]  ;;  %v2770_v10 = vmul.f32 %v8097_v36, %v7887_v63 }
 0xc1f   :  { %v2931_v30 = vld [vmem:[#allocation28 + $0x128] sm:$0xff] }
 0xc20   :  { %v2799_v8 = vadd.f32 %v2798_v34, %v7471_v32  ;;  %v2934_v34 = vld [vmem:[#allocation28 + $0x140] sm:$0xff] }
 0xc22   :  { %v8100_v58 = vadd.f32 %v2799_v8, %v8097_v36  ;;  %v2930_v8 = vld [vmem:[#allocation28 + $0x120] sm:$0xff] }
 0xc24   :  { %v2802_v7 = vsel %vm569_vm4, %v8100_v58, 0.0 }
 0xc25   :  { %2803 = vadd.xlane.f32.xlu1 %v2802_v7  ;;  %v2933_v7 = vld [vmem:[#allocation28 + $0x138] sm:$0xff] }
 0xc36   :  { %2775 = vrot.lane.b32.xlu1 %v8089_v24, %s6908_s13 }
 0xc3a   :  { %2779 = vrot.lane.b32.xlu1 %v2656_v33, %s6941_s24 }
 0xcb2   :  { %v2804_v51 = vpop.xlane.xlu1 %2803 }
 0xcb3   :  { %v2805_v57 = vmul.f32 0.03125, %v2804_v51  ;;  %v5944_v51 = vpack.c.bf16 %v2840_v3, %v2838_v44  ;;  %v2949_v44 = vld [vmem:[#allocation28 + $0x1b8] sm:$0xff] }
 0xcb4   :  { %v5958_v3 = vpack.c.bf16 %v2952_v6, %v2949_v44  ;;  %v2783_v44 = vmul.f32 %v8089_v24, %v7909_v49  ;;  %v2941_v49 = vld [vmem:[#allocation28 + $0x178] sm:$0xff] }
 0xcb5   :  { %v8108_v9 = vsub.f32 %v8100_v58, %v2805_v57  ;;  %v5946_v57 = vpack.c.bf16 %v2934_v34, %v2931_v30  ;;  %5945 = vmatpush1.bf16.msra.mxu0 %v5944_v51  ;;  %v2948_v30 = vld [vmem:[#allocation28 + $0x1b0] sm:$0xff]  ;;  %v2951_v34 = vld [vmem:[#allocation28 + $0x1c8] sm:$0xff] }
 0xcb6   :  { %5970 = vmatprep.subr.bf16.mxu0 %v8706_v5 }
 0xcb7   :  { %v2807_v32 = vmul.f32 %v8108_v9, %v8108_v9  ;;  %5947 = vmatprep.subr.bf16.mxu1 %v5946_v57  ;;  %v2958_v57 = vld [vmem:[#allocation28 + $0x200] sm:$0xff] }
 0xcb9   :  { %v2808_v28 = vsel %vm569_vm4, %v2807_v32, 0.0  ;;  %v2937_v32 = vld [vmem:[#allocation28 + $0x158] sm:$0xff] }
 0xcba   :  { %2809 = vadd.xlane.f32.xlu0 %v2808_v28  ;;  %v2940_v28 = vld [vmem:[#allocation28 + $0x170] sm:$0xff] }
 0xcbb   :  { %v5950_v16 = vpack.c.bf16 %v2940_v28, %v2937_v32  ;;  %v2961_v28 = vld [vmem:[#allocation28 + $0x218] sm:$0xff] }
 0xcbc   :  { %v5966_v25 = vpack.c.bf16 %v2964_v27, %v2961_v28  ;;  %v2944_v28 = vld [vmem:[#allocation28 + $0x190] sm:$0xff]  ;;  %v2947_v27 = vld [vmem:[#allocation28 + $0x1a8] sm:$0xff] }
 0xcd0   :  { %2771 = vrot.lane.b32.xlu0 %v2656_v33, %s6908_s13  ;;  %v5948_v33 = vpack.c.bf16 %v2933_v7, %v2930_v8  ;;  %v5960_v8 = vpack.c.bf16 %v2951_v34, %v2948_v30  ;;  %v2955_v7 = vld [vmem:[#allocation28 + $0x1e8] sm:$0xff] }
 0xcd1   :  { %v5962_v51 = vpack.c.bf16 %v2958_v57, %v2955_v7  ;;  %v2932_v57 = vld [vmem:[#allocation28 + $0x130] sm:$0xff] }
 0xcd2   :  { %5949 = vmatpush1.bf16.msra.mxu1 %v5948_v33  ;;  %v2957_v33 = vld [vmem:[#allocation28 + $0x1f8] sm:$0xff] }
 0xcd3   :  { %5951 = vmatprep.subr.bf16.mxu1 %v5950_v16  ;;  %v2954_v16 = vld [vmem:[#allocation28 + $0x1e0] sm:$0xff] }
 0xcd4   :  { %v5964_v32 = vpack.c.bf16 %v2957_v33, %v2954_v16  ;;  %v5251_v16 = vld [vmem:[#allocation23 + $0x1] ss:$0 sm:$0xff] }
 0xcd6   :  { %5953 = vmatpush1.bf16.msra.mxu1 %v5952_v61  ;;  %v2963_v61 = vld [vmem:[#allocation28 + $0x228] sm:$0xff] }
 0xcd7   :  { %5955 = vmatprep.subr.bf16.mxu1 %v5954_v15  ;;  %v5968_v14 = vpack.c.bf16 %v2963_v61, %v2960_v19  ;;  %v2953_v19 = vld [vmem:[#allocation28 + $0x1d8] sm:$0xff] }
 0xcda   :  { %5957 = vmatpush1.bf16.msra.mxu1 %v5956_v50 }
 0xcdb   :  { %5959 = vmatprep.subr.bf16.mxu1 %v5958_v3 }
 0xcde   :  { %5961 = vmatpush1.bf16.msra.mxu1 %v5960_v8  ;;  %v5250_v8 = vld [vmem:[#allocation22 + $0x1] ss:$0 sm:$0xff] }
 0xcdf   :  { %5963 = vmatprep.subr.bf16.mxu1 %v5962_v51  ;;  %v2935_v51 = vld [vmem:[#allocation28 + $0x148] sm:$0xff] }
 0xce0   :  { %v5971_v36 = vpack.c.bf16 %v2935_v51, %v2932_v57 }
 0xce2   :  { %5965 = vmatpush1.bf16.msra.mxu1 %v5964_v32  ;;  %v2938_v32 = vld [vmem:[#allocation28 + $0x160] sm:$0xff] }
 0xce3   :  { %5967 = vmatprep.subr.bf16.mxu1 %v5966_v25  ;;  %v5974_v24 = vpack.c.bf16 %v2941_v49, %v2938_v32  ;;  %v2950_v25 = vld [vmem:[#allocation28 + $0x1c0] sm:$0xff] }
 0xce4   :  { %v5980_v61 = vpack.c.bf16 %v2953_v19, %v2950_v25 }
 0xce6   :  { %5969 = vmatpush1.bf16.msra.mxu1 %v5968_v14  ;;  %v2956_v14 = vld [vmem:[#allocation28 + $0x1f0] sm:$0xff] }
 0xce7   :  { %5672 = vmatprep.subr.mxu1 %v8705_v55 }
 0xd47   :  { %v2810_v17 = vpop.xlane.xlu0 %2809 }
 0xd48   :  { %v2811_v15 = vmul.f32 0.03125, %v2810_v17  ;;  %v2959_v17 = vld [vmem:[#allocation28 + $0x208] sm:$0xff] }
 0xd4a   :  { %v2812_v50 = vadd.f32 1e-05, %v2811_v15  ;;  %v5983_v15 = vpack.c.bf16 %v2959_v17, %v2956_v14 }
 0xd4b   :  { %v2772_v6 = vpop.permute.xlu0 %2771 }
 0xd4c   :  { %6186 = vrsqrt.f32 %v2812_v50  ;;  %v2774_v3 = vadd.f32 %v2772_v6, %v2770_v10  ;;  %v2784_v30 = vadd.f32 %v2783_v44, %v2772_v6  ;;  %v2962_v10 = vld [vmem:[#allocation28 + $0x220] sm:$0xff]  ;;  %v2965_v50 = vld [vmem:[#allocation28 + $0x238] sm:$0xff]  ;;  %v2776_v6 = vpop.permute.xlu1 %2775 }
 0xd4d   :  { %v5986_v44 = vpack.c.bf16 %v2965_v50, %v2962_v10 }
 0xd4e   :  { %2786 = vrot.lane.b32.xlu0 %v2774_v3, %s6943_s14  ;;  %2790 = vrot.lane.b32.xlu1 %v2784_v30, %s6943_s14  ;;  %v2778_v30 = vmul.f32 %v2776_v6, %v7889_v60  ;;  %v2843_v60 = vld [vmem:[#allocation26 + $0x2] sm:$0x3] }
 0xd50   :  { %v2780_v3 = vpop.permute.xlu1 %2779 }
 0xd56   :  { %v6187_v34 = vpop.eup %6186 }
 0xd57   :  { %v2814_v7 = vmul.f32 %v6187_v34, %v8108_v9  ;;  %v5977_v9 = vpack.c.bf16 %v2947_v27, %v2944_v28  ;;  %v2782_v34 = vadd.f32 %v2780_v3, %v2778_v30 }
 0xd59   :  { %v2823_v63 = vmul.f32 %v5250_v8, %v2814_v7 }
 0xd5b   :  { %v2832_v33 = vadd.f32 %v5251_v16, %v2823_v63  ;;  %v2848_v16 = vrot.slane %v2843_v60, %v7649_v47  ;;  %v2852_v63 = vrot.slane %v2843_v60, %v7847_v18 }
 0xd5d   :  { %5252 = vmatmul.mubr.msk.f32.vlgmr.msra.gmra.mrb[40].mxu0 %vm569_vm4, %v2832_v33 }
 0xd5e   :  { %5972 = vmatpush3.bf16.msra.mxu0 %v5971_v36  ;;  %5669 = vmatprep.mubr.msk.f32.mxu0 %vm6931_vm0, %v8705_v55 }
 0xd5f   :  { %5973 = vmatprep.subr.bf16.mxu0 %v8706_v5 }
 0xd62   :  { %5975 = vmatpush3.bf16.msra.mxu0 %v5974_v24 }
 0xd63   :  { %5976 = vmatprep.subr.bf16.mxu0 %v8706_v5 }
 0xd66   :  { %5978 = vmatpush3.bf16.msra.mxu0 %v5977_v9 }
 0xd67   :  { %5979 = vmatprep.subr.bf16.mxu0 %v8706_v5 }
 0xd6a   :  { %5981 = vmatpush3.bf16.msra.mxu0 %v5980_v61 }
 0xd6b   :  { %5982 = vmatprep.subr.bf16.mxu0 %v8706_v5 }
 0xd6e   :  { %5984 = vmatpush3.bf16.msra.mxu0 %v5983_v15 }
 0xd6f   :  { %5985 = vmatprep.subr.bf16.mxu0 %v8706_v5 }
 0xd72   :  { %5987 = vmatpush3.bf16.msra.mxu0 %v5986_v44 }
 0xd73   :  { %5683 = vmatprep.subr.mxu0 %v8705_v55 }
 0xdc0   :  { %v2787_v8 = vpop.permute.xlu0 %2786  ;;  %v2791_v7 = vpop.permute.xlu1 %2790 }
 0xdc1   :  { %v2793_v57 = vsel %vm569_vm4, %v2787_v8, %v2782_v34 }
 0xdc2   :  { %v8135_v51 = vsel %vm1384_vm14, %v2793_v57, %v2791_v7  ;;  %v1376_v7 = vrot.slane %v7921_v21, %v7847_v18 }
 0xdc3   :  { %5253 = vmatmul.mubr.msk.f32.vlgmr.msra.gmra.mrb[34].mxu1 %vm1785_vm1, %v8135_v51  ;;  %5670 = vmatmul.mubr.msk.f32.vlgmr.msra.gmra.mrb[42].mxu0 %vm1785_vm1, %v8135_v51 }
 0xdc4   :  { %5674 = vmatprep.mubr.msk.f32.mxu1 %vm6931_vm0, %v8705_v55  ;;  %5685 = vmatprep.mubr.msk.f32.mxu0 %vm6931_vm0, %v8705_v55  ;;  %v1463_v57 = vadd.f32 %v7825_v62, %v1376_v7 }
 0xdc6   :  { %v5218_v60 = vmul.f32 -1.442695, %v1463_v57 }
 0xdc8   :  { %6188 = vpow2.f32 %v5218_v60 }
 0xe30   :  { %v2924_v36 = vpop.f32.mrb[40].mxu0 }
 0xe31   :  { %v2925_v33 = vadd.f32 %v2924_v36, %v2848_v16  ;;  %v2926_v32 = vpop.f32.mrb[41].mxu0  ;;  %v1469_v16 = vadd.f32 %v7835_v46, %v1376_v7  ;;  %v1475_v36 = vadd.f32 %v7841_v26, %v1376_v7 }
 0xe32   :  { %v2927_v49 = vadd.f32 %v2926_v32, %v2852_v63  ;;  %v6189_v32 = vpop.eup %6188 }
 0xe33   :  { %3192 = vrot.lane.b32.xlu0 %v2925_v33, %s6941_s24  ;;  %5673 = vmatpush3.msra.mxu1 %v2925_v33  ;;  %v5221_v63 = vmul.f32 -1.442695, %v1469_v16  ;;  %v5224_v33 = vmul.f32 -1.442695, %v1475_v36 }
 0xe34   :  { %3194 = vrot.lane.b32.xlu1 %v2927_v49, %s6941_s24  ;;  %5675 = vmatmul.mubr.msk.f32.vlgmr.msra.gmra.mrb[36].mxu1 %vm623_vm6, %v7479_v38  ;;  %v1585_v49 = vadd.f32 1.0, %v6189_v32 }
 0xe35   :  { %5694 = vmatprep.subr.mxu1 %v8705_v55  ;;  %5677 = vmatprep.mubr.msk.f32.mxu1 %vm6931_vm0, %v8705_v55  ;;  %6190 = vpow2.f32 %v5221_v63 }
 0xe36   :  { %5695 = vmatpush3.msra.mxu1 %v8135_v51  ;;  %6192 = vpow2.f32 %v5224_v33 }
 0xe37   :  { %5722 = vmatprep.subr.mxu1 %v8705_v55  ;;  %6194 = vrcp.f32 %v1585_v49 }
 0xe38   :  { %5678 = vmatmul.mubr.msk.f32.gmra.mrb[38].mxu1 %vm623_vm6, %v7494_v41 }
 0xe39   :  { %5680 = vmatprep.mubr.msk.f32.mxu1 %vm6931_vm0, %v8705_v55 }
 0xe3c   :  { %5681 = vmatmul.mubr.msk.f32.gmra.mrb[40].mxu1 %vm623_vm6, %v7508_v43 }
 0xe3d   :  { %5696 = vmatprep.mubr.msk.f32.mxu1 %vm6931_vm0, %v8705_v55 }
 0xe40   :  { %5697 = vmatmul.mubr.msk.f32.vlgmr.msra.gmra.mrb[42].mxu1 %vm623_vm6, %v7474_v37 }
 0xe41   :  { %5699 = vmatprep.mubr.msk.f32.mxu1 %vm6931_vm0, %v8705_v55  ;;  %5723 = vmatpush3.msra.mxu1 %v7985_v39 }
 0xe44   :  { %5700 = vmatmul.mubr.msk.f32.gmra.mrb[44].mxu1 %vm623_vm6, %v7491_v40 }
 0xe45   :  { %5702 = vmatprep.mubr.msk.f32.mxu1 %vm6931_vm0, %v8705_v55 }
 0xe48   :  { %5703 = vmatmul.mubr.msk.f32.gmra.mrb[46].mxu1 %vm623_vm6, %v7505_v42 }
 0xe49   :  { %5724 = vmatprep.mubr.msk.f32.mxu1 %vm6931_vm0, %v8705_v55 }
 0xe96   :  { %v8177_v24 = vpop.f32.mrb[34].mxu1  ;;  %v8179_v28 = vpop.f32.mrb[42].mxu0 }
 0xe97   :  { %v8181_v27 = vpop.f32.mrb[35].mxu1  ;;  %v5671_v9 = vpop.f32.mrb[43].mxu0 }
 0xe98   :  { %v6191_v9 = vpop.eup %6190 }
 0xea5   :  { %v3193_v39 = vpop.permute.xlu0 %3192 }
 0xea6   :  { %v3195_v25 = vpop.permute.xlu1 %3194 }
 0xea7   :  { %v3196_v19 = vsel %vm1785_vm1, %v3193_v39, %v3195_v25  ;;  %v1588_v39 = vadd.f32 1.0, %v6191_v9  ;;  %v6193_v25 = vpop.eup %6192 }
 0xea8   :  { %5684 = vmatpush3.msra.mxu0 %v3196_v19  ;;  %v1591_v21 = vadd.f32 1.0, %v6193_v25  ;;  %v6195_v62 = vpop.eup %6194 }
 0xea9   :  { %5686 = vmatmul.mubr.msk.f32.vlgmr.msra.gmra.mrb[44].mxu0 %vm623_vm6, %v7474_v37  ;;  %5988 = vmatprep.subr.bf16.mxu0 %v8706_v5  ;;  %6196 = vrcp.f32 %v1588_v39  ;;  %v1612_v19 = vmul.f32 %v6195_v62, %v1463_v57 }
 0xeaa   :  { %5688 = vmatprep.mubr.msk.f32.mxu0 %vm6931_vm0, %v8705_v55  ;;  %5990 = vmatpush3.bf16.msra.mxu0 %v7891_v45  ;;  %6198 = vrcp.f32 %v1591_v21 }
 0xeab   :  { %5991 = vmatprep.subr.bf16.mxu0 %v8706_v5 }
 0xead   :  { %5689 = vmatmul.mubr.msk.f32.gmra.mrb[46].mxu0 %vm623_vm6, %v7491_v40 }
 0xeae   :  { %5691 = vmatprep.mubr.msk.f32.mxu0 %vm6931_vm0, %v8705_v55  ;;  %5993 = vmatpush3.bf16.msra.mxu0 %v7911_v22 }
 0xeaf   :  { %5994 = vmatprep.subr.bf16.mxu0 %v8706_v5 }
 0xeb1   :  { %5692 = vmatmul.mubr.msk.f32.gmra.mrb[48].mxu0 %vm623_vm6, %v7505_v42 }
 0xeb2   :  { %5713 = vmatprep.mubr.msk.f32.mxu0 %vm6931_vm0, %v8705_v55 }
 0xf07   :  { %v3176_v61 = vpop.f32.mrb[36].mxu1 }
 0xf08   :  { %v5676_v14 = vpop.f32.mrb[37].mxu1 }
 0xf09   :  { %v6197_v14 = vpop.eup %6196 }
 0xf0b   :  { %v3181_v17 = vpop.f32.mrb[38].mxu1 }
 0xf0c   :  { %v5679_v15 = vpop.f32.mrb[39].mxu1 }
 0xf0f   :  { %v3186_v10 = vpop.f32.mrb[40].mxu1 }
 0xf10   :  { %v5682_v50 = vpop.f32.mrb[41].mxu1 }
 0xf13   :  { %v8201_v44 = vpop.f32.mrb[42].mxu1 }
 0xf14   :  { %v5698_v6 = vpop.f32.mrb[43].mxu1 }
 0xf15   :  { %v1615_v6 = vmul.f32 %v6197_v14, %v1469_v16 }
 0xf17   :  { %v8203_v3 = vpop.f32.mrb[44].mxu1 }
 0xf18   :  { %v5701_v30 = vpop.f32.mrb[45].mxu1 }
 0xf1b   :  { %v8205_v34 = vpop.f32.mrb[46].mxu1 }
 0xf1c   :  { %v5704_v8 = vpop.f32.mrb[47].mxu1 }
 0xf1d   :  { %v6199_v8 = vpop.eup %6198 }
 0xf7c   :  { %v3264_v46 = vpop.f32.mrb[44].mxu0 }
 0xf7d   :  { %v3358_v15 = vmul.f32 %v3264_v46, %v3176_v61  ;;  %v8212_v50 = vmul.f32 %v3264_v46, %v1612_v19  ;;  %v5687_v26 = vpop.f32.mrb[45].mxu0  ;;  %v1618_v61 = vmul.f32 %v6199_v8, %v1475_v36 }
 0xf7f   :  { %v3361_v30 = vmul.f32 %v3358_v15, %v1612_v19  ;;  %3587 = vrot.lane.b32.xlu0 %v8212_v50, %s6943_s14  ;;  %v3599_v9 = vmul.f32 %v8212_v50, %v7928_v20  ;;  %v3650_v25 = vmul.f32 %v8212_v50, %v7968_v56 }
 0xf80   :  { %v3269_v7 = vpop.f32.mrb[46].mxu0 }
 0xf81   :  { %v3359_v60 = vmul.f32 %v3269_v7, %v3181_v17  ;;  %v8216_v63 = vmul.f32 %v3269_v7, %v1615_v6  ;;  %v5690_v33 = vpop.f32.mrb[47].mxu0  ;;  %5714 = vmatmul.mubr.msk.f32.vlgmr.msra.gmra.mrb[50].mxu0 %vm569_vm4, %v3361_v30 }
 0xf82   :  { %5716 = vmatprep.mubr.msk.f32.mxu0 %vm6931_vm0, %v8705_v55 }
 0xf83   :  { %v3362_v57 = vmul.f32 %v3359_v60, %v1615_v6  ;;  %3617 = vrot.lane.b32.xlu0 %v8212_v50, %s6941_s24  ;;  %3589 = vrot.lane.b32.xlu1 %v8216_v63, %s6943_s14  ;;  %v3600_v39 = vmul.f32 %v8216_v63, %v7932_v12  ;;  %v3630_v21 = vmul.f32 %v8216_v63, %v7962_v23 }
 0xf84   :  { %v3274_v16 = vpop.f32.mrb[48].mxu0  ;;  %v3651_v62 = vmul.f32 %v8216_v63, %v7976_v11 }
 0xf85   :  { %v3360_v32 = vmul.f32 %v3274_v16, %v3186_v10  ;;  %v8225_v49 = vmul.f32 %v3274_v16, %v1618_v61  ;;  %v5693_v17 = vpop.f32.mrb[49].mxu0  ;;  %5717 = vmatmul.mubr.msk.f32.gmra.mrb[52].mxu0 %vm569_vm4, %v3362_v57  ;;  %v3629_v10 = vmul.f32 %v8212_v50, %v7945_v29 }
 0xf86   :  { %5719 = vmatprep.mubr.msk.f32.mxu0 %vm6931_vm0, %v8705_v55 }
 0xf87   :  { %v3363_v36 = vmul.f32 %v3360_v32, %v1618_v61  ;;  %3605 = vrot.lane.b32.xlu0 %v3599_v9, %s6908_s13  ;;  %3619 = vrot.lane.b32.xlu1 %v8216_v63, %s6941_s24 }
 0xf89   :  { %5720 = vmatmul.mubr.msk.f32.gmra.mrb[54].mxu0 %vm569_vm4, %v3363_v36 }
 0xf8a   :  { %5739 = vmatprep.mubr.msk.f32.mxu0 %vm6931_vm0, %v8705_v55 }
 0xf8b   :  { %3635 = vrot.lane.b32.xlu0 %v3629_v10, %s6943_s14  ;;  %3607 = vrot.lane.b32.xlu1 %v3600_v39, %s6908_s13 }
 0xf8f   :  { %3656 = vrot.lane.b32.xlu0 %v3650_v25, %s6941_s24  ;;  %3637 = vrot.lane.b32.xlu1 %v3630_v21, %s6943_s14 }
 0xf93   :  { %3658 = vrot.lane.b32.xlu1 %v3651_v62, %s6941_s24  ;;  %3591 = vrot.lane.b32.xlu0 %v8225_v49, %s6943_s14 }
 0xf97   :  { %3621 = vrot.lane.b32.xlu1 %v8225_v49, %s6941_s24 }
0x1054   :  { %v3439_v19 = vpop.f32.mrb[50].mxu0 }
0x1055   :  { %v5267_v14 = vmul.f32 -1.442695, %v3439_v19  ;;  %v5715_v46 = vpop.f32.mrb[51].mxu0 }
0x1056   :  { %v3590_v46 = vpop.permute.xlu1 %3589 }
0x1057   :  { %6200 = vpow2.f32 %v5267_v14  ;;  %v3588_v14 = vpop.permute.xlu0 %3587 }
0x1058   :  { %v3444_v15 = vpop.f32.mrb[52].mxu0 }
0x1059   :  { %v5268_v26 = vmul.f32 -1.442695, %v3444_v15  ;;  %v5718_v6 = vpop.f32.mrb[53].mxu0 }
0x105b   :  { %6202 = vpow2.f32 %v5268_v26  ;;  %v3618_v26 = vpop.permute.xlu0 %3617 }
0x105c   :  { %v3449_v30 = vpop.f32.mrb[54].mxu0 }
0x105d   :  { %v5269_v8 = vmul.f32 -1.442695, %v3449_v30  ;;  %v5721_v7 = vpop.f32.mrb[55].mxu0 }
0x105f   :  { %6204 = vpow2.f32 %v5269_v8  ;;  %v3620_v8 = vpop.permute.xlu1 %3619 }
0x1061   :  { %v6201_v60 = vpop.eup %6200 }
0x1062   :  { %v3462_v33 = vadd.f32 1.0, %v6201_v60  ;;  %v3606_v60 = vpop.permute.xlu0 %3605 }
0x1064   :  { %6206 = vrcp.f32 %v3462_v33  ;;  %v3601_v33 = vmul.f32 %v8225_v49, %v7999_v59 }
0x1065   :  { %v6203_v61 = vpop.eup %6202 }
0x1066   :  { %v3463_v57 = vadd.f32 1.0, %v6203_v61  ;;  %v3608_v61 = vpop.permute.xlu1 %3607 }
0x1068   :  { %6208 = vrcp.f32 %v3463_v57 }
0x1069   :  { %v6205_v16 = vpop.eup %6204 }
0x106a   :  { %v3464_v32 = vadd.f32 1.0, %v6205_v16 }
0x106c   :  { %6210 = vrcp.f32 %v3464_v32  ;;  %v3652_v32 = vmul.f32 %v8225_v49, %v8001_v1 }
0x106e   :  { %v6207_v17 = vpop.eup %6206 }
0x106f   :  { %v3471_v9 = vmul.f32 %v6207_v17, %v3439_v19  ;;  %v3631_v17 = vmul.f32 %v8225_v49, %v8003_v53 }
0x1071   :  { %v3474_v36 = vmul.f32 %v3471_v9, %v7760_v54  ;;  %v3596_v9 = vmul.f32 %v3588_v14, %v8201_v44 }
0x1072   :  { %v6209_v10 = vpop.eup %6208 }
0x1073   :  { %v3472_v39 = vmul.f32 %v6209_v10, %v3444_v15  ;;  %5725 = vmatmul.mubr.msk.f32.vlgmr.msra.gmra.mrb[48].mxu1 %vm623_vm6, %v3474_v36  ;;  %v3597_v36 = vmul.f32 %v3590_v46, %v8203_v3  ;;  %v3636_v10 = vpop.permute.xlu0 %3635 }
0x1074   :  { %5727 = vmatprep.mubr.msk.f32.mxu1 %vm6931_vm0, %v8705_v55 }
0x1075   :  { %v3475_v25 = vmul.f32 %v3472_v39, %v7777_v31  ;;  %v3638_v39 = vpop.permute.xlu1 %3637 }
0x1076   :  { %v6211_v21 = vpop.eup %6210 }
0x1077   :  { %v3473_v62 = vmul.f32 %v6211_v21, %v3449_v30  ;;  %5728 = vmatmul.mubr.msk.f32.gmra.mrb[50].mxu1 %vm623_vm6, %v3475_v25  ;;  %v3614_v25 = vadd.f32 %v3606_v60, %v3596_v9  ;;  %v3615_v21 = vadd.f32 %v3608_v61, %v3597_v36 }
0x1078   :  { %5730 = vmatprep.mubr.msk.f32.mxu1 %vm6931_vm0, %v8705_v55 }
0x1079   :  { %v3476_v19 = vmul.f32 %v3473_v62, %v7798_v0  ;;  %v3626_v62 = vmul.f32 %v3618_v26, %v8201_v44  ;;  %v3659_v46 = vpop.permute.xlu1 %3658 }
0x107b   :  { %5731 = vmatmul.mubr.msk.f32.gmra.mrb[52].mxu1 %vm623_vm6, %v3476_v19  ;;  %v3627_v19 = vmul.f32 %v3620_v8, %v8203_v3 }
0x107c   :  { %4062 = vmatprep.mubr.f32.mxu1 %v8705_v55 }
0x107d   :  { %v3645_v14 = vadd.f32 %v3638_v39, %v3627_v19 }
0x1146   :  { %v3552_v15 = vpop.f32.mrb[48].mxu1 }
0x1147   :  { %3572 = vrot.lane.b32.xlu0 %v3552_v15, %s6908_s13  ;;  %v5726_v6 = vpop.f32.mrb[49].mxu1  ;;  %v3644_v15 = vadd.f32 %v3636_v10, %v3626_v62 }
0x1148   :  { %v3657_v6 = vpop.permute.xlu0 %3656 }
0x114a   :  { %v3557_v30 = vpop.f32.mrb[50].mxu1 }
0x114b   :  { %3574 = vrot.lane.b32.xlu1 %v3557_v30, %s6908_s13  ;;  %v5729_v7 = vpop.f32.mrb[51].mxu1  ;;  %v3647_v30 = vmul.f32 %v8212_v50, %v8201_v44 }
0x114c   :  { %v3648_v7 = vmul.f32 %v8216_v63, %v8203_v3  ;;  %v3592_v60 = vpop.permute.xlu0 %3591 }
0x114d   :  { %v3665_v26 = vadd.f32 %v3657_v6, %v3647_v30 }
0x114e   :  { %v3562_v57 = vpop.f32.mrb[52].mxu1  ;;  %v3666_v8 = vadd.f32 %v3659_v46, %v3648_v7 }
0x114f   :  { %3609 = vrot.lane.b32.xlu1 %v3601_v33, %s6908_s13  ;;  %3576 = vrot.lane.b32.xlu0 %v3562_v57, %s6908_s13  ;;  %v5732_v16 = vpop.f32.mrb[53].mxu1  ;;  %v3622_v33 = vpop.permute.xlu1 %3621 }
0x1150   :  { %v3598_v16 = vmul.f32 %v3592_v60, %v8205_v34  ;;  %v3628_v10 = vmul.f32 %v3622_v33, %v8205_v34 }
0x1153   :  { %3660 = vrot.lane.b32.xlu1 %v3652_v32, %s6941_s24  ;;  %3639 = vrot.lane.b32.xlu0 %v3631_v17, %s6943_s14 }
0x1157   :  { %3685 = vrot.lane.b32.xlu1 %v3615_v21, %s6908_s13  ;;  %3683 = vrot.lane.b32.xlu0 %v3614_v25, %s6908_s13 }
0x115b   :  { %3697 = vrot.lane.b32.xlu1 %v3645_v14, %s6908_s13  ;;  %3695 = vrot.lane.b32.xlu0 %v3644_v15, %s6908_s13 }
0x115f   :  { %3709 = vrot.lane.b32.xlu1 %v3666_v8, %s6908_s13  ;;  %3707 = vrot.lane.b32.xlu0 %v3665_v26, %s6908_s13 }
0x11b9   :  { %v3573_v61 = vpop.permute.xlu0 %3572 }
0x11ba   :  { %v3581_v57 = vmul.f32 %v3573_v61, %v8212_v50  ;;  %v3649_v50 = vmul.f32 %v8225_v49, %v8205_v34 }
0x11bc   :  { %3671 = vrot.lane.b32.xlu0 %v3581_v57, %s6941_s24 }
0x11bd   :  { %v3575_v44 = vpop.permute.xlu1 %3574 }
0x11be   :  { %v3582_v3 = vmul.f32 %v3575_v44, %v8216_v63 }
0x11c0   :  { %3673 = vrot.lane.b32.xlu1 %v3582_v3, %s6941_s24 }
0x11c1   :  { %v3610_v32 = vpop.permute.xlu1 %3609  ;;  %v3577_v17 = vpop.permute.xlu0 %3576 }
0x11c2   :  { %v3616_v9 = vadd.f32 %v3610_v32, %v3598_v16  ;;  %v3583_v36 = vmul.f32 %v3577_v17, %v8225_v49 }
0x11c4   :  { %3687 = vrot.lane.b32.xlu1 %v3616_v9, %s6908_s13  ;;  %3675 = vrot.lane.b32.xlu0 %v3583_v36, %s6941_s24 }
0x11c5   :  { %v3661_v39 = vpop.permute.xlu1 %3660  ;;  %v3640_v63 = vpop.permute.xlu0 %3639 }
0x11c6   :  { %v3667_v25 = vadd.f32 %v3661_v39, %v3649_v50  ;;  %v3646_v21 = vadd.f32 %v3640_v63, %v3628_v10  ;;  %v3799_v10 = vld [vmem:[#allocation29 + $0x20] sm:$0xff]  ;;  %v3800_v50 = vld [vmem:[#allocation29 + $0x28] sm:$0xff] }
0x11c8   :  { %3711 = vrot.lane.b32.xlu1 %v3667_v25, %s6908_s13  ;;  %3699 = vrot.lane.b32.xlu0 %v3646_v21, %s6908_s13  ;;  %v5998_v21 = vpack.c.bf16 %v3800_v50, %v3799_v10 }
0x11c9   :  { %v3684_v62 = vpop.permute.xlu0 %3683  ;;  %v3686_v19 = vpop.permute.xlu1 %3685 }
0x11cc   :  { %3885 = vrot.lane.b32.xlu1 %v8177_v24, %s6941_s24  ;;  %3891 = vrot.lane.b32.xlu0 %v8181_v27, %s6941_s24 }
0x11cd   :  { %v3696_v15 = vpop.permute.xlu0 %3695  ;;  %v3698_v14 = vpop.permute.xlu1 %3697 }
0x11d1   :  { %v3708_v6 = vpop.permute.xlu0 %3707  ;;  %v3710_v34 = vpop.permute.xlu1 %3709 }
0x122e   :  { %v3672_v49 = vpop.permute.xlu0 %3671 }
0x122f   :  { %v3716_v46 = vsel %vm569_vm4, %v3672_v49, %v3684_v62 }
0x1230   :  { %v3719_v30 = vsel %vm1384_vm14, %v3716_v46, %v3696_v15  ;;  %v3801_v15 = vld [vmem:[#allocation29 + $0x30] sm:$0xff]  ;;  %v5274_v46 = vld [vmem:[#allocation31 + $0x1] ss:$0 sm:$0xff] }
0x1231   :  { %v3722_v26 = vsel %vm1785_vm1, %v3719_v30, %v3708_v6 }
0x1232   :  { %v3674_v7 = vpop.permute.xlu1 %3673  ;;  %v3725_v61 = vmul.f32 %v8056_v35, %v3722_v26 }
0x1233   :  { %v3717_v8 = vsel %vm569_vm4, %v3674_v7, %v3686_v19 }
0x1234   :  { %v3720_v60 = vsel %vm1384_vm14, %v3717_v8, %v3698_v14  ;;  %v3802_v14 = vld [vmem:[#allocation29 + $0x38] sm:$0xff] }
0x1235   :  { %v3723_v33 = vsel %vm1785_vm1, %v3720_v60, %v3710_v34  ;;  %v6001_v6 = vpack.c.bf16 %v3802_v14, %v3801_v15  ;;  %v3976_v15 = vld [vmem:[#allocation25 + $0x90] sm:$0xff]  ;;  %v3979_v14 = vld [vmem:[#allocation25 + $0xa8] sm:$0xff] }
0x1236   :  { %v3726_v57 = vmul.f32 %v8059_v13, %v3723_v33  ;;  %v3688_v44 = vpop.permute.xlu1 %3687  ;;  %v3676_v3 = vpop.permute.xlu0 %3675 }
0x1237   :  { %v3718_v32 = vsel %vm569_vm4, %v3676_v3, %v3688_v44 }
0x1238   :  { %v5995_v16 = vpack.c.bf16 %v3726_v57, %v3725_v61 }
0x123a   :  { %v3712_v17 = vpop.permute.xlu1 %3711  ;;  %5996 = vmatpush3.bf16.msra.mxu0 %v5995_v16  ;;  %v3700_v9 = vpop.permute.xlu0 %3699 }
0x123b   :  { %v3721_v36 = vsel %vm1384_vm14, %v3718_v32, %v3700_v9  ;;  %5737 = vmatprep.subr.mxu0 %v8705_v55 }
0x123c   :  { %v3724_v39 = vsel %vm1785_vm1, %v3721_v36, %v3712_v17 }
0x123d   :  { %v3727_v63 = vmul.f32 %v8070_v52, %v3724_v39 }
0x123e   :  { %v3892_v25 = vpop.permute.xlu0 %3891  ;;  %v3886_v8 = vpop.permute.xlu1 %3885 }
0x123f   :  { %v3900_v62 = vmul.f32 %v3892_v25, %v8181_v27  ;;  %5738 = vmatpush3.msra.mxu0 %v3727_v63  ;;  %v3894_v19 = vmul.f32 %v3892_v25, %v8177_v24  ;;  %v3888_v33 = vmul.f32 %v3886_v8, %v8177_v24 }
0x1240   :  { %5740 = vmatmul.mubr.msk.f32.vlgmr.msra.gmra.mrb[56].mxu0 %vm411_vm2, %v8075_v48  ;;  %5997 = vmatprep.subr.bf16.mxu0 %v8706_v5 }
0x1241   :  { %3902 = vrot.lane.b32.xlu1 %v3900_v62, %s6943_s14  ;;  %3896 = vrot.lane.b32.xlu0 %v3894_v19, %s6908_s13  ;;  %v3977_v62 = vld [vmem:[#allocation25 + $0x98] sm:$0xff] }
0x1242   :  { %5999 = vmatpush3.bf16.msra.mxu0 %v5998_v21  ;;  %5750 = vmatprep.mubr.msk.f32.mxu0 %vm6931_vm0, %v8705_v55  ;;  %v3975_v21 = vld [vmem:[#allocation25 + $0x88] sm:$0xff] }
0x1243   :  { %6000 = vmatprep.subr.bf16.mxu0 %v8706_v5  ;;  %v6003_v19 = vpack.c.bf16 %v3977_v62, %v3975_v21 }
0x1245   :  { %6004 = vmatprep.subr.bf16.mxu1 %v6003_v19  ;;  %v4072_v19 = vld [vmem:[#allocation28 + $0x258] sm:$0xff] }
0x1246   :  { %6002 = vmatpush3.bf16.msra.mxu0 %v6001_v6  ;;  %v3981_v6 = vld [vmem:[#allocation25 + $0xb8] sm:$0xff] }
0x12b3   :  { %v3897_v60 = vpop.permute.xlu0 %3896  ;;  %v3903_v57 = vpop.permute.xlu1 %3902 }
0x12b4   :  { %v3899_v61 = vadd.f32 %v3897_v60, %v3888_v33 }
0x12b6   :  { %v3905_v44 = vadd.f32 %v3903_v57, %v3899_v61 }
0x1313   :  { %v8334_v34 = vpop.f32.mrb[56].mxu0 }
0x1314   :  { %v5741_v49 = vpop.f32.mrb[57].mxu0  ;;  %5751 = vmatmul.mubr.msk.f32.vlgmr.msra.gmra.mrb[58].mxu0 %vm569_vm4, %v8334_v34 }
0x1315   :  { %4161 = vmatprep.mubr.f32.mxu0 %v8705_v55 }
0x13e7   :  { %v3880_v30 = vpop.f32.mrb[58].mxu0 }
0x13e8   :  { %v8339_v7 = vadd.f32 %v5274_v46, %v3880_v30  ;;  %v5752_v26 = vpop.f32.mrb[59].mxu0  ;;  %v6007_v46 = vpack.c.bf16 %v3981_v6, %v3979_v14  ;;  %v3978_v30 = vld [vmem:[#allocation25 + $0xa0] sm:$0xff]  ;;  %v4077_v14 = vld [vmem:[#allocation28 + $0x290] sm:$0xff] }
0x13e9   :  { %v3980_v26 = vld [vmem:[#allocation25 + $0xb0] sm:$0xff] }
0x13ea   :  { %3907 = vrot.lane.b32.xlu1 %v8339_v7, %s6943_s14  ;;  %3935 = vrot.lane.b32.xlu0 %v8339_v7, %s6941_s24  ;;  %v6009_v8 = vpack.c.bf16 %v3980_v26, %v3978_v30  ;;  %v4074_v6 = vld [vmem:[#allocation28 + $0x270] sm:$0xff]  ;;  %v4081_v30 = vld [vmem:[#allocation28 + $0x2c0] sm:$0xff] }
0x13eb   :  { %v4078_v26 = vld [vmem:[#allocation28 + $0x2a0] sm:$0xff] }
0x145c   :  { %v3936_v3 = vpop.permute.xlu0 %3935  ;;  %v8347_v17 = vpop.permute.xlu1 %3907 }
0x145d   :  { %v3938_v16 = vmul.f32 %v3936_v3, %v3905_v44  ;;  %v5276_v44 = vld [vmem:[#allocation22 + $0x2] ss:$0 sm:$0xff] }
0x145f   :  { %v3939_v32 = vadd.f32 %v3938_v16, %v8100_v58  ;;  %v3974_v58 = vld [vmem:[#allocation25 + $0x80] sm:$0xff]  ;;  %v5277_v16 = vld [vmem:[#allocation23 + $0x2] ss:$0 sm:$0xff] }
0x1460   :  { %v6005_v49 = vpack.c.bf16 %v3976_v15, %v3974_v58 }
0x1461   :  { %v8350_v9 = vadd.f32 %v3939_v32, %v8347_v17 }
0x1462   :  { %6006 = vmatpush1.bf16.msra.mxu1 %v6005_v49 }
0x1463   :  { %v3942_v36 = vsel %vm569_vm4, %v8350_v9, 0.0  ;;  %6008 = vmatprep.subr.bf16.mxu1 %v6007_v46  ;;  %v4076_v46 = vld [vmem:[#allocation28 + $0x288] sm:$0xff] }
0x1464   :  { %3943 = vadd.xlane.f32.xlu0 %v3942_v36 }
0x1466   :  { %6010 = vmatpush1.bf16.msra.mxu1 %v6009_v8 }
0x1467   :  { %5753 = vmatprep.subr.mxu1 %v8705_v55 }
0x14f1   :  { %v3944_v10 = vpop.xlane.xlu0 %3943 }
0x14f2   :  { %v3945_v50 = vmul.f32 0.03125, %v3944_v10  ;;  %v3983_v10 = vld [vmem:[#allocation26 + $0x4] sm:$0x3] }
0x14f4   :  { %v3946_v39 = vsub.f32 %v8350_v9, %v3945_v50  ;;  %v3988_v50 = vrot.slane %v3983_v10, %v7649_v47  ;;  %v4073_v47 = vld [vmem:[#allocation28 + $0x260] sm:$0xff] }
0x14f6   :  { %v3947_v63 = vmul.f32 %v3946_v39, %v3946_v39 }
0x14f8   :  { %v3948_v25 = vsel %vm569_vm4, %v3947_v63, 0.0  ;;  %v3992_v63 = vrot.slane %v3983_v10, %v7847_v18  ;;  %v4070_v18 = vld [vmem:[#allocation28 + $0x240] sm:$0xff] }
0x14f9   :  { %3949 = vadd.xlane.f32.xlu1 %v3948_v25  ;;  %v6013_v15 = vpack.c.bf16 %v4072_v19, %v4070_v18  ;;  %v4092_v18 = vld [vmem:[#allocation28 + $0x348] sm:$0xff] }
0x1586   :  { %v3950_v60 = vpop.xlane.xlu1 %3949 }
0x1587   :  { %v3951_v33 = vmul.f32 0.03125, %v3950_v60  ;;  %v4080_v60 = vld [vmem:[#allocation28 + $0x2b8] sm:$0xff] }
0x1589   :  { %v3952_v61 = vadd.f32 1e-05, %v3951_v33  ;;  %v4083_v33 = vld [vmem:[#allocation28 + $0x2d8] sm:$0xff] }
0x158b   :  { %6212 = vrsqrt.f32 %v3952_v61  ;;  %v4085_v61 = vld [vmem:[#allocation28 + $0x2f0] sm:$0xff] }
0x1595   :  { %v6213_v57 = vpop.eup %6212 }
0x1596   :  { %v3954_v3 = vmul.f32 %v6213_v57, %v3946_v39  ;;  %v6021_v57 = vpack.c.bf16 %v4080_v60, %v4078_v26 }
0x1598   :  { %v3963_v32 = vmul.f32 %v5276_v44, %v3954_v3  ;;  %v6023_v44 = vpack.c.bf16 %v4085_v61, %v4083_v33  ;;  %v4082_v3 = vld [vmem:[#allocation28 + $0x2d0] sm:$0xff] }
0x159a   :  { %v3972_v36 = vadd.f32 %v5277_v16, %v3963_v32  ;;  %v4084_v16 = vld [vmem:[#allocation28 + $0x2e8] sm:$0xff] }
0x159b   :  { %v4087_v32 = vld [vmem:[#allocation28 + $0x308] sm:$0xff]  ;;  %v6025_v10 = vpack.c.bf16 %v4084_v16, %v4082_v3 }
0x159c   :  { %5278 = vmatmul.mubr.msk.f32.vlgmr.msra.gmra.mrb[54].mxu1 %vm569_vm4, %v3972_v36  ;;  %v4089_v36 = vld [vmem:[#allocation28 + $0x320] sm:$0xff] }
0x159d   :  { %5755 = vmatprep.mubr.msk.f32.mxu1 %vm6931_vm0, %v8705_v55 }
0x166f   :  { %v4064_v25 = vpop.f32.mrb[54].mxu1 }
0x1670   :  { %v4065_v21 = vadd.f32 %v4064_v25, %v3988_v50  ;;  %v4066_v62 = vpop.f32.mrb[55].mxu1  ;;  %v6027_v50 = vpack.c.bf16 %v4089_v36, %v4087_v32  ;;  %v4088_v25 = vld [vmem:[#allocation28 + $0x318] sm:$0xff]  ;;  %v8711_v36 = vld [vmem:[#allocation60_spill] sm:$0xff] }
0x1671   :  { %v4067_v58 = vadd.f32 %v4066_v62, %v3992_v63  ;;  %v4086_v63 = vld [vmem:[#allocation28 + $0x300] sm:$0xff]  ;;  %v4093_v62 = vld [vmem:[#allocation28 + $0x350] sm:$0xff] }
0x1672   :  { %4250 = vrot.lane.b32.xlu0 %v4065_v21, %s6941_s24  ;;  %5754 = vmatpush3.msra.mxu1 %v4065_v21  ;;  %v4091_v21 = vld [vmem:[#allocation28 + $0x338] sm:$0xff] }
0x1673   :  { %4252 = vrot.lane.b32.xlu1 %v4067_v58, %s6941_s24  ;;  %5756 = vmatmul.mubr.msk.f32.vlgmr.msra.gmra.mrb[56].mxu1 %vm623_vm6, %v7479_v38  ;;  %v4071_v38 = vld [vmem:[#allocation28 + $0x248] sm:$0xff]  ;;  %v6029_v58 = vpack.c.bf16 %v4088_v25, %v4086_v63 }
0x1674   :  { %5758 = vmatprep.mubr.msk.f32.mxu1 %vm6931_vm0, %v8705_v55  ;;  %5764 = vmatprep.subr.mxu1 %v8705_v55  ;;  %v6011_v39 = vpack.c.bf16 %v4073_v47, %v4071_v38  ;;  %v6031_v38 = vpack.c.bf16 %v4093_v62, %v4091_v21  ;;  %v4090_v47 = vld [vmem:[#allocation28 + $0x330] sm:$0xff] }
0x1676   :  { %3911 = vrot.lane.b32.xlu0 %v8334_v34, %s6908_s13  ;;  %6012 = vmatprep.subr.bf16.mxu0 %v6011_v39  ;;  %v6033_v39 = vpack.c.bf16 %v4092_v18, %v4090_v47 }
0x1677   :  { %3915 = vrot.lane.b32.xlu1 %v8339_v7, %s6908_s13  ;;  %5759 = vmatmul.mubr.msk.f32.gmra.mrb[58].mxu1 %vm623_vm6, %v7494_v41  ;;  %v4075_v41 = vld [vmem:[#allocation28 + $0x278] sm:$0xff] }
0x1678   :  { %5761 = vmatprep.mubr.msk.f32.mxu1 %vm6931_vm0, %v8705_v55  ;;  %6014 = vmatpush1.bf16.msra.mxu0 %v6013_v15  ;;  %v6015_v49 = vpack.c.bf16 %v4077_v14, %v4075_v41  ;;  %v3910_v14 = vmul.f32 %v8347_v17, %v8177_v24 }
0x167a   :  { %3919 = vrot.lane.b32.xlu0 %v8334_v34, %s6941_s24  ;;  %v6017_v34 = vpack.c.bf16 %v4076_v46, %v4074_v6  ;;  %6016 = vmatprep.subr.bf16.mxu0 %v6015_v49  ;;  %v3923_v6 = vmul.f32 %v8339_v7, %v8179_v28 }
0x167b   :  { %5762 = vmatmul.mubr.msk.f32.gmra.mrb[60].mxu1 %vm623_vm6, %v7508_v43  ;;  %v4079_v43 = vld [vmem:[#allocation28 + $0x2a8] sm:$0xff] }
0x167c   :  { %5766 = vmatprep.mubr.msk.f32.mxu1 %vm6931_vm0, %v8705_v55  ;;  %6018 = vmatpush1.bf16.msra.mxu0 %v6017_v34  ;;  %v6019_v8 = vpack.c.bf16 %v4081_v30, %v4079_v43 }
0x167e   :  { %6020 = vmatprep.subr.bf16.mxu0 %v6019_v8 }
0x1680   :  { %6022 = vmatpush1.bf16.msra.mxu0 %v6021_v57 }
0x1681   :  { %6024 = vmatprep.subr.bf16.mxu0 %v6023_v44 }
0x1684   :  { %6026 = vmatpush1.bf16.msra.mxu0 %v6025_v10 }
0x1685   :  { %6028 = vmatprep.subr.bf16.mxu0 %v6027_v50  ;;  %v8712_v50 = vld [vmem:[#allocation61_spill] sm:$0xff] }
0x1688   :  { %6030 = vmatpush1.bf16.msra.mxu0 %v6029_v58 }
0x1689   :  { %6032 = vmatprep.subr.bf16.mxu0 %v6031_v38 }
0x168c   :  { %6034 = vmatpush1.bf16.msra.mxu0 %v6033_v39 }
0x168d   :  { %5775 = vmatprep.subr.mxu0 %v8705_v55 }
0x16e4   :  { %v4251_v19 = vpop.permute.xlu0 %4250 }
0x16e5   :  { %v4253_v15 = vpop.permute.xlu1 %4252 }
0x16e6   :  { %v4254_v41 = vsel %vm1785_vm1, %v4251_v19, %v4253_v15 }
0x16e7   :  { %5765 = vmatpush3.msra.mxu1 %v4254_v41 }
0x16e8   :  { %v3912_v49 = vpop.permute.xlu0 %3911  ;;  %5767 = vmatmul.mubr.msk.f32.vlgmr.msra.gmra.mrb[62].mxu1 %vm623_vm6, %v7474_v37  ;;  %6035 = vmatprep.subr.bf16.mxu1 %v8706_v5 }
0x16e9   :  { %v3914_v46 = vadd.f32 %v3912_v49, %v3910_v14  ;;  %v3924_v34 = vadd.f32 %v3923_v6, %v3912_v49  ;;  %5769 = vmatprep.mubr.msk.f32.mxu1 %vm6931_vm0, %v8705_v55  ;;  %6037 = vmatpush3.bf16.msra.mxu1 %v7891_v45  ;;  %v3916_v30 = vpop.permute.xlu1 %3915 }
0x16ea   :  { %6038 = vmatprep.subr.bf16.mxu1 %v8706_v5  ;;  %v3918_v26 = vmul.f32 %v3916_v30, %v8181_v27  ;;  %v6248_v27 = vld [vmem:[#allocation40] sm:$0xff] }
0x16eb   :  { %3926 = vrot.lane.b32.xlu1 %v3914_v46, %s6943_s14  ;;  %3930 = vrot.lane.b32.xlu0 %v3924_v34, %s6943_s14 }
0x16ec   :  { %5770 = vmatmul.mubr.msk.f32.gmra.mrb[64].mxu1 %vm623_vm6, %v7491_v40  ;;  %v3920_v8 = vpop.permute.xlu0 %3919 }
0x16ed   :  { %5772 = vmatprep.mubr.msk.f32.mxu1 %vm6931_vm0, %v8705_v55  ;;  %6040 = vmatpush3.bf16.msra.mxu1 %v7911_v22  ;;  %v3922_v22 = vadd.f32 %v3920_v8, %v3918_v26 }
0x16ee   :  { %6041 = vmatprep.subr.bf16.mxu1 %v8706_v5 }
0x16f0   :  { %5773 = vmatmul.mubr.msk.f32.gmra.mrb[66].mxu1 %vm623_vm6, %v7505_v42 }
0x16f1   :  { %5794 = vmatprep.mubr.msk.f32.mxu1 %vm6931_vm0, %v8705_v55 }
0x1746   :  { %v4234_v45 = vpop.f32.mrb[56].mxu1 }
0x1747   :  { %v5757_v24 = vpop.f32.mrb[57].mxu1 }
0x174a   :  { %v4239_v28 = vpop.f32.mrb[58].mxu1 }
0x174b   :  { %v5760_v7 = vpop.f32.mrb[59].mxu1 }
0x174e   :  { %v8408_v17 = vpop.f32.mrb[60].mxu1 }
0x174f   :  { %v5763_v43 = vpop.f32.mrb[61].mxu1 }
0x175d   :  { %v3927_v60 = vpop.permute.xlu1 %3926  ;;  %v3931_v33 = vpop.permute.xlu0 %3930 }
0x175e   :  { %v3933_v61 = vsel %vm569_vm4, %v3927_v60, %v3922_v22 }
0x175f   :  { %v3934_v57 = vsel %vm1384_vm14, %v3933_v61, %v3931_v33 }
0x1760   :  { %v3941_v44 = vadd.f32 %v3934_v57, %v8135_v51  ;;  %v6249_v51 = vld [vmem:[#allocation34] sm:$0x7] }
0x1762   :  { %5279 = vmatmul.mubr.msk.f32.vlgmr.msra.gmra.mrb[60].mxu0 %vm1785_vm1, %v3941_v44 }
0x1763   :  { %5776 = vmatpush3.msra.mxu0 %v3941_v44  ;;  %5777 = vmatprep.mubr.msk.f32.mxu0 %vm6931_vm0, %v8705_v55 }
0x1764   :  { %5803 = vmatprep.subr.mxu0 %v8705_v55 }
0x1766   :  { %5778 = vmatmul.mubr.msk.f32.vlgmr.msra.gmra.mrb[62].mxu0 %vm623_vm6, %v7474_v37  ;;  %v1379_v37 = vsub.s32 2, %v7456_v4 }
0x1767   :  { %5780 = vmatprep.mubr.msk.f32.mxu0 %vm6931_vm0, %v8705_v55  ;;  %5804 = vmatpush3.msra.mxu0 %v6248_v27 }
0x1768   :  { %5834 = vmatprep.subr.mxu0 %v8705_v55  ;;  %v1380_v3 = vrot.slane %v6249_v51, %v1379_v37 }
0x176a   :  { %5781 = vmatmul.mubr.msk.f32.gmra.mrb[64].mxu0 %vm623_vm6, %v7491_v40  ;;  %v1544_v16 = vadd.f32 %v7823_v2, %v1380_v3  ;;  %v1549_v10 = vadd.f32 %v8711_v36, %v1380_v3  ;;  %v1554_v63 = vadd.f32 %v8712_v50, %v1380_v3 }
0x176b   :  { %5783 = vmatprep.mubr.msk.f32.mxu0 %vm6931_vm0, %v8705_v55 }
0x176c   :  { %v5219_v32 = vmul.f32 -1.442695, %v1544_v16  ;;  %v5222_v40 = vmul.f32 -1.442695, %v1549_v10  ;;  %v5225_v25 = vmul.f32 -1.442695, %v1554_v63 }
0x176e   :  { %5784 = vmatmul.mubr.msk.f32.gmra.mrb[66].mxu0 %vm623_vm6, %v7505_v42  ;;  %6214 = vpow2.f32 %v5219_v32 }
0x176f   :  { %5805 = vmatprep.mubr.msk.f32.mxu0 %vm6931_vm0, %v8705_v55  ;;  %6216 = vpow2.f32 %v5222_v40 }
0x1770   :  { %6218 = vpow2.f32 %v5225_v25 }
0x1778   :  { %v6215_v42 = vpop.eup %6214 }
0x1779   :  { %v1586_v21 = vadd.f32 1.0, %v6215_v42  ;;  %v6217_v62 = vpop.eup %6216 }
0x177a   :  { %v1589_v58 = vadd.f32 1.0, %v6217_v62  ;;  %v6219_v38 = vpop.eup %6218 }
0x177b   :  { %6220 = vrcp.f32 %v1586_v21  ;;  %v1592_v47 = vadd.f32 1.0, %v6219_v38 }
0x177c   :  { %6222 = vrcp.f32 %v1589_v58 }
0x177d   :  { %6224 = vrcp.f32 %v1592_v47 }
0x1785   :  { %v6221_v2 = vpop.eup %6220 }
0x1786   :  { %v1613_v18 = vmul.f32 %v6221_v2, %v1544_v16  ;;  %v6223_v39 = vpop.eup %6222 }
0x1787   :  { %v1616_v6 = vmul.f32 %v6223_v39, %v1549_v10  ;;  %v6225_v46 = vpop.eup %6224 }
0x17bb   :  { %v4322_v19 = vpop.f32.mrb[62].mxu1 }
0x17bc   :  { %v4416_v15 = vmul.f32 %v4322_v19, %v4234_v45  ;;  %v8435_v41 = vmul.f32 %v4322_v19, %v1613_v18  ;;  %v5768_v14 = vpop.f32.mrb[63].mxu1  ;;  %v1619_v45 = vmul.f32 %v6225_v46, %v1554_v63 }
0x17be   :  { %v4419_v49 = vmul.f32 %v4416_v15, %v1613_v18  ;;  %4645 = vrot.lane.b32.xlu1 %v8435_v41, %s6943_s14  ;;  %v4657_v60 = vmul.f32 %v8435_v41, %v7928_v20  ;;  %v4708_v20 = vmul.f32 %v8435_v41, %v7968_v56 }
0x17bf   :  { %v4327_v34 = vpop.f32.mrb[64].mxu1 }
0x17c0   :  { %v4417_v24 = vmul.f32 %v4327_v34, %v4239_v28  ;;  %v8439_v7 = vmul.f32 %v4327_v34, %v1616_v6  ;;  %v5771_v43 = vpop.f32.mrb[65].mxu1  ;;  %5795 = vmatmul.mubr.msk.f32.vlgmr.msra.gmra.mrb[68].mxu1 %vm569_vm4, %v4419_v49 }
0x17c1   :  { %5797 = vmatprep.mubr.msk.f32.mxu1 %vm6931_vm0, %v8705_v55 }
0x17c2   :  { %v4420_v30 = vmul.f32 %v4417_v24, %v1616_v6  ;;  %4675 = vrot.lane.b32.xlu1 %v8435_v41, %s6941_s24  ;;  %4647 = vrot.lane.b32.xlu0 %v8439_v7, %s6943_s14  ;;  %v4658_v61 = vmul.f32 %v8439_v7, %v7932_v12  ;;  %v4688_v57 = vmul.f32 %v8439_v7, %v7962_v23 }
0x17c3   :  { %v4332_v26 = vpop.f32.mrb[66].mxu1  ;;  %v4709_v12 = vmul.f32 %v8439_v7, %v7976_v11 }
0x17c4   :  { %v4418_v8 = vmul.f32 %v4332_v26, %v8408_v17  ;;  %v8449_v28 = vmul.f32 %v4332_v26, %v1619_v45  ;;  %v5774_v22 = vpop.f32.mrb[67].mxu1  ;;  %5798 = vmatmul.mubr.msk.f32.gmra.mrb[70].mxu1 %vm569_vm4, %v4420_v30  ;;  %v4687_v17 = vmul.f32 %v8435_v41, %v7945_v29 }
0x17c5   :  { %5800 = vmatprep.mubr.msk.f32.mxu1 %vm6931_vm0, %v8705_v55 }
0x17c6   :  { %v4421_v33 = vmul.f32 %v4418_v8, %v1619_v45  ;;  %4663 = vrot.lane.b32.xlu1 %v4657_v60, %s6908_s13  ;;  %4677 = vrot.lane.b32.xlu0 %v8439_v7, %s6941_s24 }
0x17c8   :  { %5801 = vmatmul.mubr.msk.f32.gmra.mrb[72].mxu1 %vm569_vm4, %v4421_v33 }
0x17c9   :  { %5820 = vmatprep.mubr.msk.f32.mxu1 %vm6931_vm0, %v8705_v55 }
0x17ca   :  { %4693 = vrot.lane.b32.xlu1 %v4687_v17, %s6943_s14  ;;  %4665 = vrot.lane.b32.xlu0 %v4658_v61, %s6908_s13 }
0x17ce   :  { %4714 = vrot.lane.b32.xlu1 %v4708_v20, %s6941_s24  ;;  %4695 = vrot.lane.b32.xlu0 %v4688_v57, %s6943_s14  ;;  %v4710_v20 = vmul.f32 %v8449_v28, %v8001_v1  ;;  %v4689_v57 = vmul.f32 %v8449_v28, %v8003_v53 }
0x17d2   :  { %4716 = vrot.lane.b32.xlu0 %v4709_v12, %s6941_s24  ;;  %4649 = vrot.lane.b32.xlu1 %v8449_v28, %s6943_s14 }
0x17d6   :  { %4679 = vrot.lane.b32.xlu0 %v8449_v28, %s6941_s24 }
0x1834   :  { %v4648_v34 = vpop.permute.xlu0 %4647 }
0x1835   :  { %v8481_v29 = vpop.f32.mrb[60].mxu0 }
0x1836   :  { %v8483_v56 = vpop.f32.mrb[61].mxu0 }
0x1838   :  { %v4678_v45 = vpop.permute.xlu0 %4677 }
0x1839   :  { %v8485_v23 = vpop.f32.mrb[62].mxu0 }
0x183a   :  { %v5779_v44 = vpop.f32.mrb[63].mxu0 }
0x183c   :  { %v4666_v22 = vpop.permute.xlu0 %4665 }
0x183d   :  { %v8487_v27 = vpop.f32.mrb[64].mxu0 }
0x183e   :  { %v5782_v37 = vpop.f32.mrb[65].mxu0  ;;  %v4655_v61 = vmul.f32 %v4648_v34, %v8487_v27 }
0x183f   :  { %v4685_v37 = vmul.f32 %v4678_v45, %v8487_v27 }
0x1840   :  { %v4696_v12 = vpop.permute.xlu0 %4695 }
0x1841   :  { %v8489_v51 = vpop.f32.mrb[66].mxu0 }
0x1842   :  { %v5785_v11 = vpop.f32.mrb[67].mxu0 }
0x1843   :  { %v4673_v11 = vadd.f32 %v4666_v22, %v4655_v61 }
0x1844   :  { %v4717_v53 = vpop.permute.xlu0 %4716 }
0x1893   :  { %v4497_v3 = vpop.f32.mrb[68].mxu1 }
0x1894   :  { %v5292_v16 = vmul.f32 -1.442695, %v4497_v3  ;;  %v5796_v32 = vpop.f32.mrb[69].mxu1 }
0x1896   :  { %6226 = vpow2.f32 %v5292_v16  ;;  %v4703_v16 = vadd.f32 %v4696_v12, %v4685_v37  ;;  %v4858_v12 = vld [vmem:[#allocation29 + $0x48] sm:$0xff] }
0x1897   :  { %v4502_v36 = vpop.f32.mrb[70].mxu1 }
0x1898   :  { %v5293_v10 = vmul.f32 -1.442695, %v4502_v36  ;;  %v5799_v40 = vpop.f32.mrb[71].mxu1 }
0x189a   :  { %6228 = vpow2.f32 %v5293_v10  ;;  %v4706_v10 = vmul.f32 %v8439_v7, %v8487_v27 }
0x189b   :  { %v4507_v50 = vpop.f32.mrb[72].mxu1 }
0x189c   :  { %v5294_v63 = vmul.f32 -1.442695, %v4507_v50  ;;  %v5802_v25 = vpop.f32.mrb[73].mxu1 }
0x189d   :  { %v4680_v25 = vpop.permute.xlu0 %4679 }
0x189e   :  { %6230 = vpow2.f32 %v5294_v63 }
0x18a0   :  { %v6227_v42 = vpop.eup %6226 }
0x18a1   :  { %v4520_v21 = vadd.f32 1.0, %v6227_v42 }
0x18a3   :  { %6232 = vrcp.f32 %v4520_v21 }
0x18a4   :  { %v6229_v62 = vpop.eup %6228 }
0x18a5   :  { %v4521_v58 = vadd.f32 1.0, %v6229_v62 }
0x18a7   :  { %6234 = vrcp.f32 %v4521_v58 }
0x18a8   :  { %v6231_v38 = vpop.eup %6230 }
0x18a9   :  { %v4522_v47 = vadd.f32 1.0, %v6231_v38 }
0x18ab   :  { %6236 = vrcp.f32 %v4522_v47 }
0x18ad   :  { %v6233_v2 = vpop.eup %6232 }
0x18ae   :  { %v4529_v18 = vmul.f32 %v6233_v2, %v4497_v3 }
0x18b0   :  { %v4532_v39 = vmul.f32 %v4529_v18, %v7760_v54  ;;  %v4646_v54 = vpop.permute.xlu1 %4645  ;;  %v4686_v18 = vmul.f32 %v4680_v25, %v8489_v51 }
0x18b1   :  { %v6235_v19 = vpop.eup %6234  ;;  %v4654_v17 = vmul.f32 %v4646_v54, %v8485_v23 }
0x18b2   :  { %v4530_v15 = vmul.f32 %v6235_v19, %v4502_v36  ;;  %5806 = vmatmul.mubr.msk.f32.vlgmr.msra.gmra.mrb[68].mxu0 %vm623_vm6, %v4532_v39  ;;  %v4705_v36 = vmul.f32 %v8435_v41, %v8485_v23 }
0x18b3   :  { %5808 = vmatprep.mubr.msk.f32.mxu0 %vm6931_vm0, %v8705_v55 }
0x18b4   :  { %v4533_v14 = vmul.f32 %v4530_v15, %v7777_v31  ;;  %v4676_v43 = vpop.permute.xlu1 %4675 }
0x18b5   :  { %v6237_v6 = vpop.eup %6236  ;;  %v4684_v44 = vmul.f32 %v4676_v43, %v8485_v23 }
0x18b6   :  { %v4531_v49 = vmul.f32 %v6237_v6, %v4507_v50  ;;  %5809 = vmatmul.mubr.msk.f32.gmra.mrb[70].mxu0 %vm623_vm6, %v4533_v14  ;;  %v4724_v50 = vadd.f32 %v4717_v53, %v4706_v10  ;;  %v5299_v53 = vld [vmem:[#allocation31 + $0x2] ss:$0 sm:$0xff] }
0x18b7   :  { %5811 = vmatprep.mubr.msk.f32.mxu0 %vm6931_vm0, %v8705_v55 }
0x18b8   :  { %v4534_v46 = vmul.f32 %v4531_v49, %v7798_v0  ;;  %v4664_v8 = vpop.permute.xlu1 %4663  ;;  %v4659_v0 = vmul.f32 %v8449_v28, %v7999_v59 }
0x18b9   :  { %v4672_v3 = vadd.f32 %v4664_v8, %v4654_v17 }
0x18ba   :  { %5812 = vmatmul.mubr.msk.f32.gmra.mrb[72].mxu0 %vm623_vm6, %v4534_v46 }
0x18bb   :  { %5836 = vmatprep.mubr.msk.f32.mxu0 %vm6931_vm0, %v8705_v55 }
0x18bc   :  { %v4694_v59 = vpop.permute.xlu1 %4693 }
0x18bd   :  { %v4702_v1 = vadd.f32 %v4694_v59, %v4684_v44  ;;  %v4857_v59 = vld [vmem:[#allocation29 + $0x40] sm:$0xff] }
0x18c0   :  { %v4715_v32 = vpop.permute.xlu1 %4714 }
0x18c1   :  { %v4723_v40 = vadd.f32 %v4715_v32, %v4705_v36 }
0x18c4   :  { %v4650_v63 = vpop.permute.xlu1 %4649 }
0x18c5   :  { %v4656_v62 = vmul.f32 %v4650_v63, %v8489_v51 }
0x1985   :  { %v4610_v24 = vpop.f32.mrb[68].mxu0 }
0x1986   :  { %4630 = vrot.lane.b32.xlu1 %v4610_v24, %s6908_s13  ;;  %v5807_v31 = vpop.f32.mrb[69].mxu0 }
0x1989   :  { %v4615_v30 = vpop.f32.mrb[70].mxu0 }
0x198a   :  { %4632 = vrot.lane.b32.xlu0 %v4615_v30, %s6908_s13  ;;  %v5810_v26 = vpop.f32.mrb[71].mxu0 }
0x198d   :  { %v4620_v60 = vpop.f32.mrb[72].mxu0 }
0x198e   :  { %4667 = vrot.lane.b32.xlu0 %v4659_v0, %s6908_s13  ;;  %4634 = vrot.lane.b32.xlu1 %v4620_v60, %s6908_s13  ;;  %v5813_v33 = vpop.f32.mrb[73].mxu0 }
0x1992   :  { %4718 = vrot.lane.b32.xlu0 %v4710_v20, %s6941_s24  ;;  %4697 = vrot.lane.b32.xlu1 %v4689_v57, %s6943_s14 }
0x1996   :  { %4743 = vrot.lane.b32.xlu0 %v4673_v11, %s6908_s13  ;;  %4741 = vrot.lane.b32.xlu1 %v4672_v3, %s6908_s13 }
0x199a   :  { %4755 = vrot.lane.b32.xlu0 %v4703_v16, %s6908_s13  ;;  %4753 = vrot.lane.b32.xlu1 %v4702_v1, %s6908_s13  ;;  %v4859_v1 = vld [vmem:[#allocation29 + $0x50] sm:$0xff]  ;;  %v4860_v16 = vld [vmem:[#allocation29 + $0x58] sm:$0xff] }
0x199e   :  { %4767 = vrot.lane.b32.xlu0 %v4724_v50, %s6908_s13  ;;  %4765 = vrot.lane.b32.xlu1 %v4723_v40, %s6908_s13 }
0x19f8   :  { %v4631_v42 = vpop.permute.xlu1 %4630 }
0x19f9   :  { %v4639_v21 = vmul.f32 %v4631_v42, %v8435_v41  ;;  %v4707_v41 = vmul.f32 %v8449_v28, %v8489_v51 }
0x19fb   :  { %4729 = vrot.lane.b32.xlu1 %v4639_v21, %s6941_s24 }
0x19fc   :  { %v4633_v23 = vpop.permute.xlu0 %4632 }
0x19fd   :  { %v4640_v27 = vmul.f32 %v4633_v23, %v8439_v7 }
0x19ff   :  { %4731 = vrot.lane.b32.xlu0 %v4640_v27, %s6941_s24 }
0x1a00   :  { %v4668_v58 = vpop.permute.xlu0 %4667  ;;  %v4635_v38 = vpop.permute.xlu1 %4634 }
0x1a01   :  { %v4674_v47 = vadd.f32 %v4668_v58, %v4656_v62  ;;  %v4641_v2 = vmul.f32 %v4635_v38, %v8449_v28 }
0x1a03   :  { %4745 = vrot.lane.b32.xlu0 %v4674_v47, %s6908_s13  ;;  %4733 = vrot.lane.b32.xlu1 %v4641_v2, %s6941_s24 }
0x1a04   :  { %v4719_v39 = vpop.permute.xlu0 %4718  ;;  %v4698_v7 = vpop.permute.xlu1 %4697 }
0x1a05   :  { %v4725_v19 = vadd.f32 %v4719_v39, %v4707_v41  ;;  %v4704_v15 = vadd.f32 %v4698_v7, %v4686_v18 }
0x1a07   :  { %4769 = vrot.lane.b32.xlu0 %v4725_v19, %s6908_s13  ;;  %4757 = vrot.lane.b32.xlu1 %v4704_v15, %s6908_s13 }
0x1a08   :  { %v4742_v14 = vpop.permute.xlu1 %4741  ;;  %v4744_v6 = vpop.permute.xlu0 %4743 }
0x1a0b   :  { %4943 = vrot.lane.b32.xlu0 %v8481_v29, %s6941_s24  ;;  %4949 = vrot.lane.b32.xlu1 %v8483_v56, %s6941_s24 }
0x1a0c   :  { %v4754_v49 = vpop.permute.xlu1 %4753  ;;  %v4756_v46 = vpop.permute.xlu0 %4755 }
0x1a10   :  { %v4766_v54 = vpop.permute.xlu1 %4765  ;;  %v4768_v28 = vpop.permute.xlu0 %4767 }
0x1a6d   :  { %v4730_v51 = vpop.permute.xlu1 %4729 }
0x1a6e   :  { %v4774_v34 = vsel %vm569_vm4, %v4730_v51, %v4742_v14  ;;  %v5301_v14 = vld [vmem:[#allocation35] ss:$0 sm:$0xff] }
0x1a6f   :  { %v4777_v24 = vsel %vm1384_vm14, %v4774_v34, %v4754_v49 }
0x1a70   :  { %v4780_v31 = vsel %vm1785_vm1, %v4777_v24, %v4766_v54 }
0x1a71   :  { %v4732_v43 = vpop.permute.xlu0 %4731  ;;  %v4783_v8 = vmul.f32 %v8056_v35, %v4780_v31 }
0x1a72   :  { %v4775_v45 = vsel %vm569_vm4, %v4732_v43, %v4744_v6 }
0x1a73   :  { %v4778_v30 = vsel %vm1384_vm14, %v4775_v45, %v4756_v46 }
0x1a74   :  { %v4781_v26 = vsel %vm1785_vm1, %v4778_v30, %v4768_v28 }
0x1a75   :  { %v4784_v0 = vmul.f32 %v8059_v13, %v4781_v26  ;;  %v4746_v22 = vpop.permute.xlu0 %4745  ;;  %v4734_v60 = vpop.permute.xlu1 %4733  ;;  %v6045_v13 = vpack.c.bf16 %v4858_v12, %v4857_v59  ;;  %v5303_v26 = vld [vmem:[#allocation8] ss:$0 sm:$0xff] }
0x1a76   :  { %v4776_v17 = vsel %vm569_vm4, %v4734_v60, %v4746_v22 }
0x1a77   :  { %v6042_v33 = vpack.c.bf16 %v4784_v0, %v4783_v8 }
0x1a79   :  { %v4770_v61 = vpop.permute.xlu0 %4769  ;;  %6043 = vmatpush3.bf16.msra.mxu1 %v6042_v33  ;;  %v4758_v20 = vpop.permute.xlu1 %4757 }
0x1a7a   :  { %v4779_v57 = vsel %vm1384_vm14, %v4776_v17, %v4758_v20  ;;  %5818 = vmatprep.subr.mxu1 %v8705_v55  ;;  %vm5023_vm14 = vcmp.eq.s32.totalorder %v7456_v4, %v5303_v26 }
0x1a7b   :  { %v4782_v44 = vsel %vm1785_vm1, %v4779_v57, %v4770_v61  ;;  %v5304_v22 = vsel %vm5023_vm14, 1.0, %v8705_v55 }
0x1a7c   :  { %v4785_v35 = vmul.f32 %v8070_v52, %v4782_v44  ;;  %v6048_v52 = vpack.c.bf16 %v4860_v16, %v4859_v1 }
0x1a7d   :  { %v4950_v37 = vpop.permute.xlu1 %4949  ;;  %v4944_v40 = vpop.permute.xlu0 %4943 }
0x1a7e   :  { %v4952_v11 = vmul.f32 %v4950_v37, %v8481_v29  ;;  %v4958_v3 = vmul.f32 %v4950_v37, %v8483_v56  ;;  %5819 = vmatpush3.msra.mxu1 %v4785_v35  ;;  %v4946_v63 = vmul.f32 %v4944_v40, %v8481_v29 }
0x1a7f   :  { %5821 = vmatmul.mubr.msk.f32.vlgmr.msra.gmra.mrb[74].mxu1 %vm411_vm2, %v8075_v48  ;;  %6044 = vmatprep.subr.bf16.mxu1 %v8706_v5 }
0x1a80   :  { %4960 = vrot.lane.b32.xlu0 %v4958_v3, %s6943_s14  ;;  %4954 = vrot.lane.b32.xlu1 %v4952_v11, %s6908_s13  ;;  %s6944_s13 = smov [#allocation42]  }
0x1a81   :  { %6046 = vmatpush3.bf16.msra.mxu1 %v6045_v13  ;;  %5831 = vmatprep.mubr.msk.f32.mxu1 %vm6931_vm0, %v8705_v55  ;;  %s5131_s17 = sshll.u32 %s6944_s13, 4  ;;  %s5132_s17 = int_to_ptr.vmem [resolvable:$true] %s5131_s17 }
0x1a82   :  { %6047 = vmatprep.subr.bf16.mxu1 %v8706_v5  ;;  %s6800_s9 = scalar_lea.vmem %s5132_s17, 128  ;;  %p6805_p5 = scmp.lt.s32.totalorder %s5132_s17, %s5132_s17 }
0x1a83   :  { %p6801_p4 = scmp.ne.s32.totalorder %s5132_s17, %s6800_s9  ;;  %p6806_p6 = scmp.lt.s32.totalorder %s6800_s9, %s6800_s9 }
0x1a85   :  { %6049 = vmatpush3.bf16.msra.mxu1 %v6048_v52  ;;  %p6807_p7 = por %p6806_p6, %p6805_p5 }
0x1a87   :  { %p6808_p8 = pnand %p6807_p7, %p6801_p4 }
0x1af2   :  { %v4955_v50 = vpop.permute.xlu1 %4954  ;;  %v4961_v42 = vpop.permute.xlu0 %4960 }
0x1af3   :  { %v4957_v25 = vadd.f32 %v4955_v50, %v4946_v63 }
0x1af5   :  { %v4963_v5 = vadd.f32 %v4961_v42, %v4957_v25 }
0x1b52   :  { %v4852_v56 = vpop.f32.mrb[74].mxu1 }
0x1b53   :  { %v5822_v32 = vpop.f32.mrb[75].mxu1  ;;  %5832 = vmatmul.mubr.msk.f32.vlgmr.msra.gmra.mrb[76].mxu1 %vm569_vm4, %v4852_v56 }
0x1c26   :  { %v4938_v48 = vpop.f32.mrb[76].mxu1 }
0x1c27   :  { %v4939_v36 = vadd.f32 %v5299_v53, %v4938_v48  ;;  %v5833_v10 = vpop.f32.mrb[77].mxu1 }
0x1c29   :  { %4970 = vrot.lane.b32.xlu0 %v4939_v36, %s6943_s14  ;;  %4965 = vrot.lane.b32.xlu1 %v4939_v36, %s6941_s24 }
0x1c9b   :  { %v4966_v21 = vpop.permute.xlu1 %4965  ;;  %v4971_v62 = vpop.permute.xlu0 %4970 }
0x1c9c   :  { %v4968_v23 = vmul.f32 %v4966_v21, %v4963_v5 }
0x1c9e   :  { %v4969_v27 = vadd.f32 %v4968_v23, %v8350_v9  ;;  %v5302_v9 = vld [vmem:[#allocation37] ss:$0 sm:$0xff] }
0x1ca0   :  { %v4973_v58 = vadd.f32 %v4971_v62, %v4969_v27 }
0x1ca2   :  { %v4974_v38 = vsel %vm569_vm4, %v4973_v58, 0.0 }
0x1ca3   :  { %4975 = vadd.xlane.f32.xlu1 %v4974_v38 }
0x1d30   :  { %v4976_v47 = vpop.xlane.xlu1 %4975 }
0x1d31   :  { %v4977_v2 = vmul.f32 0.03125, %v4976_v47 }
0x1d33   :  { %v4978_v18 = vsub.f32 %v4973_v58, %v4977_v2 }
0x1d35   :  { %v4979_v41 = vmul.f32 %v4978_v18, %v4978_v18 }
0x1d37   :  { %v4980_v39 = vsel %vm569_vm4, %v4979_v41, 0.0 }
0x1d38   :  { %4981 = vadd.xlane.f32.xlu0 %v4980_v39 }
0x1dc5   :  { %v4982_v29 = vpop.xlane.xlu0 %4981 }
0x1dc6   :  { %v4983_v7 = vmul.f32 0.03125, %v4982_v29 }
0x1dc8   :  { %v4984_v19 = vadd.f32 1e-05, %v4983_v7 }
0x1dca   :  { %6238 = vrsqrt.f32 %v4984_v19 }
0x1dd4   :  { %v6239_v15 = vpop.eup %6238 }
0x1dd5   :  { %v4986_v6 = vmul.f32 %v6239_v15, %v4978_v18 }
0x1dd7   :  { %v4994_v49 = vmul.f32 %v5301_v14, %v4986_v6 }
0x1dd9   :  { %v5002_v46 = vadd.f32 %v5302_v9, %v4994_v49 }
0x1ddb   :  { %v5003_v54 = vmul.f32 %v5002_v46, %v5002_v46 }
0x1ddd   :  { %v5004_v28 = vsel %vm569_vm4, %v5003_v54, 0.0 }
0x1dde   :  { %5005 = vadd.xlane.f32.xlu0 %v5004_v28 }
0x1e6b   :  { %v5006_v51 = vpop.xlane.xlu0 %5005 }
0x1e6c   :  { %6240 = vrsqrt.f32 %v5006_v51  ;;  %vm5009_vm0 = vcmp.eq.f32.partialorder %v5006_v51, inf  ;;  %v5012_v43 = vand.u32 2147483648, %v5006_v51  ;;  %vm5011_vm2 = vcmp.eq.f32.partialorder %v5006_v51, 0.0 }
0x1e76   :  { %v6241_v34 = vpop.eup %6240 }
0x1e77   :  { %v5008_v24 = vmul.f32 %v6241_v34, %v5006_v51 }
0x1e79   :  { %v5010_v31 = vsel %vm5009_vm0, %v5006_v51, %v5008_v24 }
0x1e7a   :  { %v5013_v45 = vsel %vm5011_vm2, %v5012_v43, %v5010_v31 }
0x1e7b   :  { %v5014_v30 = vmax.f32 %v5013_v45, 1e-12 }
0x1e7d   :  { %6242 = vrcp.f32 %v5014_v30 }
0x1e87   :  { %v6243_v8 = vpop.eup %6242 }
0x1e88   :  { %v5016_v0 = vmul.f32 %v6243_v8, %v5002_v46 }
0x1e8a   :  { %5835 = vmatpush3.msra.mxu0 %v5016_v0  ;;  %5017 = vst.msk [vmem:[#allocation42] sm:$0xff] %vm569_vm4, %v5016_v0 }
0x1e8b   :  { %5837 = vmatmul.mubr.msk.f32.vlgmr.msra.gmra.mrb[74].mxu0 %vm623_vm6, %v5304_v22 }
0x1f5e   :  { %v5095_v60 = vpop.f32.mrb[74].mxu0 }
0x1f5f   :  { %v5099_v33 = vmul.f32 %v5095_v60, %v5095_v60  ;;  %v5838_v17 = vpop.f32.mrb[75].mxu0 }
0x1f61   :  { %v5101_v61 = vsel %vm5100_vm9, %v5099_v33, 0.0 }
0x1f62   :  { %5102 = vadd.xlane.f32.xlu1 %v5101_v61 }
0x1f63   :  { %6811 = shalt.err (!%p6808_p8)
}
0x1f64   :  { %s8713_s4 = sld [smem:[#allocation75_spill]] }
0x1f6a   :  { %s6812_s19 = scalar_lea.hbm %s8713_s4, 128 }
0x1f6b   :  { %p6813_p9 = scmp.ne.s32.totalorder %s8713_s4, %s6812_s19  ;;  %p6816_p10 = scmp.lt.u32.totalorder %s6812_s19, %s8713_s4 }
0x1f6d   :  { %p6818_p11 = pnand %p6816_p10, %p6813_p9 }
0x1f6f   :  { %6821 = shalt.err (!%p6818_p11)
}
0x1f70   :  { %5134 = dma.vmem_to_hbm [thread:$0]  %s5132_s17, 128, %s8713_s4, [#allocation43]  }
0x1f71   :  { %s6822_s20 = scalar_lea.vmem %s5122_s29, 128  ;;  %p6827_p13 = scmp.lt.s32.totalorder %s5122_s29, %s5122_s29 }
0x1f72   :  { %p6823_p12 = scmp.ne.s32.totalorder %s5122_s29, %s6822_s20  ;;  %p6828_p0 = scmp.lt.s32.totalorder %s6822_s20, %s6822_s20 }
0x1f74   :  { %p6829_p1 = por %p6828_p0, %p6827_p13 }
0x1f76   :  { %p6830_p2 = pnand %p6829_p1, %p6823_p12 }
0x1f78   :  { %6833 = shalt.err (!%p6830_p2)
}
0x1f79   :  { %s8714_s27 = sld [smem:[#allocation74_spill]] }
0x1f7f   :  { %s6834_s30 = scalar_lea.hbm %s8714_s27, 128 }
0x1f80   :  { %p6835_p3 = scmp.ne.s32.totalorder %s8714_s27, %s6834_s30  ;;  %p6838_p4 = scmp.lt.u32.totalorder %s6834_s30, %s8714_s27 }
0x1f82   :  { %p6840_p5 = pnand %p6838_p4, %p6835_p3 }
0x1f84   :  { %6843 = shalt.err (!%p6840_p5)
}
0x1f85   :  { %5124 = dma.vmem_to_hbm [thread:$0]  %s5122_s29, 128, %s8714_s27, [#allocation4]  }
0x1f86   :  { %s6946_s1 = smov [#allocation44]  }
0x1f87   :  { %s5141_s22 = sshll.u32 %s6946_s1, 4  ;;  %s5142_s22 = int_to_ptr.vmem [resolvable:$true] %s5141_s22 }
0x1f88   :  { %s6844_s2 = scalar_lea.vmem %s5142_s22, 32  ;;  %p6849_p7 = scmp.lt.s32.totalorder %s5142_s22, %s5142_s22 }
0x1f89   :  { %p6845_p6 = scmp.ne.s32.totalorder %s5142_s22, %s6844_s2  ;;  %p6850_p8 = scmp.lt.s32.totalorder %s6844_s2, %s6844_s2 }
0x1f8b   :  { %p6851_p9 = por %p6850_p8, %p6849_p7 }
0x1f8d   :  { %p6852_p10 = pnand %p6851_p9, %p6845_p6 }
0x1fef   :  { %v5103_v4 = vpop.xlane.xlu1 %5102 }
0x1ff0   :  { %6244 = vrsqrt.f32 %v5103_v4  ;;  %vm5106_vm4 = vcmp.eq.f32.partialorder %v5103_v4, inf  ;;  %v5109_v57 = vand.u32 2147483648, %v5103_v4  ;;  %vm5108_vm6 = vcmp.eq.f32.partialorder %v5103_v4, 0.0 }
0x1ffa   :  { %v6245_v55 = vpop.eup %6244 }
0x1ffb   :  { %v5105_v20 = vmul.f32 %v6245_v55, %v5103_v4 }
0x1ffd   :  { %v5107_v59 = vsel %vm5106_vm4, %v5103_v4, %v5105_v20 }
0x1ffe   :  { %v5110_v12 = vsel %vm5108_vm6, %v5109_v57, %v5107_v59 }
0x1fff   :  { %v5111_v44 = vmax.f32 %v5110_v12, 1e-12 }
0x2001   :  { %6246 = vrcp.f32 %v5111_v44 }
0x200b   :  { %v6247_v35 = vpop.eup %6246 }
0x200c   :  { %v5113_v37 = vmul.f32 %v6247_v35, %v5095_v60 }
0x200e   :  { %5114 = vst.msk [vmem:[#allocation44] sm:$0x3] %vm5100_vm9, %v5113_v37 }
0x200f   :  { %6855 = shalt.err (!%p6852_p10)
}
0x2010   :  { %s8715_s13 = sld [smem:[#allocation76_spill]] }
0x2016   :  { %s6856_s17 = scalar_lea.hbm %s8715_s13, 32 }
0x2017   :  { %p6857_p11 = scmp.ne.s32.totalorder %s8715_s13, %s6856_s17  ;;  %p6860_p12 = scmp.lt.u32.totalorder %s6856_s17, %s8715_s13 }
0x2019   :  { %p6862_p13 = pnand %p6860_p12, %p6857_p11 }
0x201b   :  { %6865 = shalt.err (!%p6862_p13)
}
0x201c   :  { %5144 = dma.vmem_to_hbm [thread:$0]  %s5142_s22, 32, %s8715_s13, [#allocation43]  }
0x201d   :  { %6892 = dma.done.wait [#allocation4], 128  }
0x201e   :  { %6893 = vsyncadd [#allocation4], 4294967168 }
0x201f   :  { %6894 = dma.done.wait [#allocation43], 160  }
0x2020   :  { %6895 = vsyncadd [#allocation43], 4294967136 }
0x2021   :  { %5154 = vsyncpa [#allocation3], 1 }
0x2022   :  { %5155 = vsyncpa [#allocation6], 1 }
0x2023   :  { %5156 = vsyncpa [#allocation9], 1 }
0x2024   :  { %5157 = vsyncpa [#allocation12], 1 }
0x2025   :  { %5158 = vsyncpa [#allocation15], 1 }
0x2026   :  { %5159 = vsyncpa [#allocation18], 1 }
0x2027   :  { %5160 = vsyncpa [#allocation21], 1 }
0x2028   :  { %5161 = vsyncpa [#allocation24], 1 }
0x2029   :  { %5162 = vsyncpa [#allocation27], 1 }
0x202a   :  { %5163 = vsyncpa [#allocation30], 1 }
0x202b   :  { %5164 = vsyncpa [#allocation33], 1 }
0x202c   :  { %5165 = vsyncpa [#allocation36], 1 }
0x202d   :  { %5166 = vsyncpa [#allocation39], 1 }
0x202e   :  { %5167 = vsyncpa [#allocation4], 1 }
0x202f   :  { %5168 = vsyncpa [#allocation43], 1 }

</bundles_post_ra>
